<compile_context>
chip_gen: v5e
topology: v5e:2x2
jax: 0.10.0
libtpu: 0.0.40
codegen_flags: <defaults>
</compile_context>

<pallas_src>
import functools
import math

import jax
import jax.numpy as jnp
from jax.experimental import pallas as pl
from jax.experimental.pallas import tpu as pltpu

NEG_SLOPE = 0.01  # PyTorch LeakyReLU default negative_slope


def _fused_ae_kernel(out_dims, x_ref, bias_ref, *rest):
    """Fused forward: act = leaky_relu(act @ W_i + b_i) for all 16 layers.

    x_ref:    [B_pad, D0]     f32
    bias_ref: [L, max_out]    f32 (zero-padded along lanes)
    rest:     L weight refs ([in_i, out_i] bf16) followed by o_ref [B_pad, D_last] f32
    """
    w_refs = rest[:-1]
    o_ref = rest[-1]
    n_layers = len(w_refs)

    # bf16 operands feed the MXU; accumulate in f32; epilogue in f32 on the VPU.
    act = x_ref[...].astype(jnp.bfloat16)
    for i in range(n_layers):                       # static unroll (16 layers)
        out_dim = out_dims[i]
        w = w_refs[i][...]                          # [in_i, out_i] bf16
        b = bias_ref[i:i + 1, 0:out_dim]            # [1, out_i]    f32 (static slice)
        y = jnp.dot(act, w, preferred_element_type=jnp.float32) + b
        y = jnp.where(y >= 0, y, NEG_SLOPE * y)     # LeakyReLU (f32, VPU)
        # TODO(synk): Dropout(0.5) layers are identity (eval/inference mode).
        act = y.astype(jnp.bfloat16) if i + 1 < n_layers else y
    o_ref[...] = act.astype(o_ref.dtype)


@jax.jit
def autoencoder_forward(x, weights_bf16, bias_pack):
    """x: [B, C, H, W] -> [B, C, H, W] (f32), single fused Pallas kernel."""
    B = x.shape[0]
    out = x.reshape(B, -1).astype(jnp.float32)      # x.view(x.size(0), -1)

    # Pad batch to a multiple of 16 so both f32 (8-sublane) and bf16
    # (16-sublane packed) activation views are full -> unmasked vregs/stores.
    B_pad = max(16, -(-B // 16) * 16)
    if B_pad != B:
        out = jnp.pad(out, ((0, B_pad - B), (0, 0)))

    out_dims = tuple(int(w.shape[1]) for w in weights_bf16)
    n_layers = len(weights_bf16)

    flops = 2 * B_pad * sum(int(w.shape[0]) * int(w.shape[1]) for w in weights_bf16)
    bytes_accessed = (
        sum(w.size * w.dtype.itemsize for w in weights_bf16)
        + bias_pack.size * bias_pack.dtype.itemsize
        + out.size * 4
        + B_pad * out_dims[-1] * 4
    )

    vmem_spec = pl.BlockSpec(memory_space=pltpu.MemorySpace.VMEM)
    y = pl.pallas_call(
        functools.partial(_fused_ae_kernel, out_dims),
        out_shape=jax.ShapeDtypeStruct((B_pad, out_dims[-1]), jnp.float32),
        in_specs=[vmem_spec] * (2 + n_layers),      # x, bias_pack, 16 weights
        out_specs=vmem_spec,
        compiler_params=pltpu.CompilerParams(vmem_limit_bytes=32 * 1024 * 1024),
        cost_estimate=pl.CostEstimate(
            flops=flops, transcendentals=0, bytes_accessed=bytes_accessed),
    )(out, bias_pack, *weights_bf16)

    return y[:B].reshape(x.shape)                   # out.view(x.size())


# ----------------------------- parameter setup ------------------------------

def init_linear_params(key, in_dim, out_dim):
    """Mimics torch.nn.Linear default init: U[-1/sqrt(in), 1/sqrt(in)]."""
    kw, kb = jax.random.split(key)
    bound = 1.0 / math.sqrt(in_dim)
    w = jax.random.uniform(kw, (in_dim, out_dim), jnp.float32, -bound, bound)
    b = jax.random.uniform(kb, (out_dim,), jnp.float32, -bound, bound)
    return w, b


def build_autoencoder_params(key, input_dim, h1, h2, h3):
    # Linear layer dims in the exact order of the PyTorch Sequential modules.
    enc_dims = [
        (input_dim, h1), (h1, h1), (h1, h1),
        (h1, h2), (h2, h2), (h2, h2),
        (h2, h3), (h3, h3), (h3, h3),
    ]
    dec_dims = [
        (h3, h2), (h2, h2), (h2, h2),
        (h2, h1), (h1, h1), (h1, h1),
        (h1, input_dim),
    ]
    dims = enc_dims + dec_dims
    keys = jax.random.split(key, len(dims))
    ws, bs = [], []
    for k, (i, o) in zip(keys, dims):
        w, b = init_linear_params(k, i, o)
        ws.append(w)
        bs.append(b)
    return ws, bs


def pack_params(ws_f32, bs_f32):
    """bf16 weights + one zero-padded f32 bias matrix [L, max_out] (single DMA)."""
    ws_bf16 = [w.astype(jnp.bfloat16) for w in ws_f32]
    max_out = max(int(w.shape[1]) for w in ws_f32)
    bias_pack = jnp.zeros((len(bs_f32), max_out), jnp.float32)
    for i, b in enumerate(bs_f32):
        bias_pack = bias_pack.at[i, : b.shape[0]].set(b)
    return ws_bf16, bias_pack


def reference_forward(x, ws, bs):
    """Pure-JAX f32 reference (eval-mode PyTorch semantics)."""
    B = x.shape[0]
    out = x.reshape(B, -1).astype(jnp.float32)
    for w, b in zip(ws, bs):
        out = out @ w + b
        out = jnp.where(out >= 0, out, NEG_SLOPE * out)
    return out.reshape(x.shape)


if __name__ == "__main__":
    # Small shapes: batch=2, channels=4, spatial=16 -> input_dim = 4*16*16 = 1024
    B, C, H, W = 2, 4, 16, 16
    input_dim = C * H * W        # 1024
    hidden_dim1 = 256
    hidden_dim2 = 128
    hidden_dim3 = 128

    key = jax.random.PRNGKey(0)
    k_x, k_p = jax.random.split(key)
    x = jax.random.normal(k_x, (B, C, H, W), jnp.float32)

    ws, bs = build_autoencoder_params(k_p, input_dim, hidden_dim1, hidden_dim2, hidden_dim3)
    ws_bf16, bias_pack = pack_params(ws, bs)

    y = autoencoder_forward(x, ws_bf16, bias_pack)
    jax.block_until_ready(y)

    assert y.shape == x.shape and y.dtype == jnp.float32
    assert bool(jnp.all(jnp.isfinite(y)))

    # Loose parity check vs. f32 reference (bf16 weights -> small relative deviation).
    ref = reference_forward(x, ws, bs)
    max_err = float(jnp.max(jnp.abs(y - ref)))
    scale = float(jnp.max(jnp.abs(ref))) + 1e-6
    assert max_err <= 0.1 * scale, (max_err, scale)

    print("KERNEL_OK")
</pallas_src>

<mosaic_0001>
module attributes {stable_mosaic.version = 11 : i64} {
  func.func @_fused_ae_kernel(%arg0: memref<16x1024xf32, #tpu.memory_space<vmem>>, %arg1: memref<16x1024xf32, #tpu.memory_space<vmem>>, %arg2: memref<1024x256xbf16, #tpu.memory_space<vmem>>, %arg3: memref<256x256xbf16, #tpu.memory_space<vmem>>, %arg4: memref<256x256xbf16, #tpu.memory_space<vmem>>, %arg5: memref<256x128xbf16, #tpu.memory_space<vmem>>, %arg6: memref<128x128xbf16, #tpu.memory_space<vmem>>, %arg7: memref<128x128xbf16, #tpu.memory_space<vmem>>, %arg8: memref<128x128xbf16, #tpu.memory_space<vmem>>, %arg9: memref<128x128xbf16, #tpu.memory_space<vmem>>, %arg10: memref<128x128xbf16, #tpu.memory_space<vmem>>, %arg11: memref<128x128xbf16, #tpu.memory_space<vmem>>, %arg12: memref<128x128xbf16, #tpu.memory_space<vmem>>, %arg13: memref<128x128xbf16, #tpu.memory_space<vmem>>, %arg14: memref<128x256xbf16, #tpu.memory_space<vmem>>, %arg15: memref<256x256xbf16, #tpu.memory_space<vmem>>, %arg16: memref<256x256xbf16, #tpu.memory_space<vmem>>, %arg17: memref<256x1024xbf16, #tpu.memory_space<vmem>>, %arg18: memref<16x1024xf32, #tpu.memory_space<vmem>>) attributes {dimension_semantics = [], scalar_prefetch = 0 : i64, scratch_operands = 0 : i64, tpu.core_type = #tpu.core_type<tc>} {
    %c0 = arith.constant 0 : index
    %c0_0 = arith.constant 0 : index
    %0 = vector.load %arg0[%c0, %c0_0] : memref<16x1024xf32, #tpu.memory_space<vmem>>, vector<16x1024xf32>
    %1 = arith.truncf %0 : vector<16x1024xf32> to vector<16x1024xbf16>
    %c0_1 = arith.constant 0 : index
    %c0_2 = arith.constant 0 : index
    %2 = vector.load %arg2[%c0_1, %c0_2] : memref<1024x256xbf16, #tpu.memory_space<vmem>>, vector<1024x256xbf16>
    %c0_3 = arith.constant 0 : index
    %c0_4 = arith.constant 0 : index
    %3 = vector.load %arg1[%c0_3, %c0_4] : memref<16x1024xf32, #tpu.memory_space<vmem>>, vector<1x256xf32>
    %cst = arith.constant dense<0.000000e+00> : vector<16x256xf32>
    %4 = tpu.matmul %1, %2, %cst {dimension_numbers = #tpu.dot_dimension_numbers<[1], [0], [0], [1], [0, 0, 1, 1], [], []>} : vector<16x1024xbf16>, vector<1024x256xbf16>, vector<16x256xf32> -> vector<16x256xf32>
    %5 = vector.broadcast %3 : vector<1x256xf32> to vector<16x256xf32>
    %6 = arith.addf %4, %5 : vector<16x256xf32>
    %cst_5 = arith.constant 0.000000e+00 : f32
    %7 = vector.broadcast %cst_5 : f32 to vector<16x256xf32>
    %8 = arith.cmpf oge, %6, %7 : vector<16x256xf32>
    %cst_6 = arith.constant 0.00999999977 : f32
    %9 = vector.broadcast %cst_6 : f32 to vector<16x256xf32>
    %10 = arith.mulf %9, %6 : vector<16x256xf32>
    %11 = arith.select %8, %6, %10 : vector<16x256xi1>, vector<16x256xf32>
    %12 = arith.truncf %11 : vector<16x256xf32> to vector<16x256xbf16>
    %c0_7 = arith.constant 0 : index
    %c0_8 = arith.constant 0 : index
    %13 = vector.load %arg3[%c0_7, %c0_8] : memref<256x256xbf16, #tpu.memory_space<vmem>>, vector<256x256xbf16>
    %c1 = arith.constant 1 : index
    %c0_9 = arith.constant 0 : index
    %14 = vector.load %arg1[%c1, %c0_9] : memref<16x1024xf32, #tpu.memory_space<vmem>>, vector<1x256xf32>
    %cst_10 = arith.constant dense<0.000000e+00> : vector<16x256xf32>
    %15 = tpu.matmul %12, %13, %cst_10 {dimension_numbers = #tpu.dot_dimension_numbers<[1], [0], [0], [1], [0, 0, 1, 1], [], []>} : vector<16x256xbf16>, vector<256x256xbf16>, vector<16x256xf32> -> vector<16x256xf32>
    %16 = vector.broadcast %14 : vector<1x256xf32> to vector<16x256xf32>
    %17 = arith.addf %15, %16 : vector<16x256xf32>
    %cst_11 = arith.constant 0.000000e+00 : f32
    %18 = vector.broadcast %cst_11 : f32 to vector<16x256xf32>
    %19 = arith.cmpf oge, %17, %18 : vector<16x256xf32>
    %cst_12 = arith.constant 0.00999999977 : f32
    %20 = vector.broadcast %cst_12 : f32 to vector<16x256xf32>
    %21 = arith.mulf %20, %17 : vector<16x256xf32>
    %22 = arith.select %19, %17, %21 : vector<16x256xi1>, vector<16x256xf32>
    %23 = arith.truncf %22 : vector<16x256xf32> to vector<16x256xbf16>
    %c0_13 = arith.constant 0 : index
    %c0_14 = arith.constant 0 : index
    %24 = vector.load %arg4[%c0_13, %c0_14] : memref<256x256xbf16, #tpu.memory_space<vmem>>, vector<256x256xbf16>
    %c2 = arith.constant 2 : index
    %c0_15 = arith.constant 0 : index
    %25 = vector.load %arg1[%c2, %c0_15] : memref<16x1024xf32, #tpu.memory_space<vmem>>, vector<1x256xf32>
    %cst_16 = arith.constant dense<0.000000e+00> : vector<16x256xf32>
    %26 = tpu.matmul %23, %24, %cst_16 {dimension_numbers = #tpu.dot_dimension_numbers<[1], [0], [0], [1], [0, 0, 1, 1], [], []>} : vector<16x256xbf16>, vector<256x256xbf16>, vector<16x256xf32> -> vector<16x256xf32>
    %27 = vector.broadcast %25 : vector<1x256xf32> to vector<16x256xf32>
    %28 = arith.addf %26, %27 : vector<16x256xf32>
    %cst_17 = arith.constant 0.000000e+00 : f32
    %29 = vector.broadcast %cst_17 : f32 to vector<16x256xf32>
    %30 = arith.cmpf oge, %28, %29 : vector<16x256xf32>
    %cst_18 = arith.constant 0.00999999977 : f32
    %31 = vector.broadcast %cst_18 : f32 to vector<16x256xf32>
    %32 = arith.mulf %31, %28 : vector<16x256xf32>
    %33 = arith.select %30, %28, %32 : vector<16x256xi1>, vector<16x256xf32>
    %34 = arith.truncf %33 : vector<16x256xf32> to vector<16x256xbf16>
    %c0_19 = arith.constant 0 : index
    %c0_20 = arith.constant 0 : index
    %35 = vector.load %arg5[%c0_19, %c0_20] : memref<256x128xbf16, #tpu.memory_space<vmem>>, vector<256x128xbf16>
    %c3 = arith.constant 3 : index
    %c0_21 = arith.constant 0 : index
    %36 = vector.load %arg1[%c3, %c0_21] : memref<16x1024xf32, #tpu.memory_space<vmem>>, vector<1x128xf32>
    %cst_22 = arith.constant dense<0.000000e+00> : vector<16x128xf32>
    %37 = tpu.matmul %34, %35, %cst_22 {dimension_numbers = #tpu.dot_dimension_numbers<[1], [0], [0], [1], [0, 0, 1, 1], [], []>} : vector<16x256xbf16>, vector<256x128xbf16>, vector<16x128xf32> -> vector<16x128xf32>
    %38 = vector.broadcast %36 : vector<1x128xf32> to vector<16x128xf32>
    %39 = arith.addf %37, %38 : vector<16x128xf32>
    %cst_23 = arith.constant 0.000000e+00 : f32
    %40 = vector.broadcast %cst_23 : f32 to vector<16x128xf32>
    %41 = arith.cmpf oge, %39, %40 : vector<16x128xf32>
    %cst_24 = arith.constant 0.00999999977 : f32
    %42 = vector.broadcast %cst_24 : f32 to vector<16x128xf32>
    %43 = arith.mulf %42, %39 : vector<16x128xf32>
    %44 = arith.select %41, %39, %43 : vector<16x128xi1>, vector<16x128xf32>
    %45 = arith.truncf %44 : vector<16x128xf32> to vector<16x128xbf16>
    %c0_25 = arith.constant 0 : index
    %c0_26 = arith.constant 0 : index
    %46 = vector.load %arg6[%c0_25, %c0_26] : memref<128x128xbf16, #tpu.memory_space<vmem>>, vector<128x128xbf16>
    %c4 = arith.constant 4 : index
    %c0_27 = arith.constant 0 : index
    %47 = vector.load %arg1[%c4, %c0_27] : memref<16x1024xf32, #tpu.memory_space<vmem>>, vector<1x128xf32>
    %cst_28 = arith.constant dense<0.000000e+00> : vector<16x128xf32>
    %48 = tpu.matmul %45, %46, %cst_28 {dimension_numbers = #tpu.dot_dimension_numbers<[1], [0], [0], [1], [0, 0, 1, 1], [], []>} : vector<16x128xbf16>, vector<128x128xbf16>, vector<16x128xf32> -> vector<16x128xf32>
    %49 = vector.broadcast %47 : vector<1x128xf32> to vector<16x128xf32>
    %50 = arith.addf %48, %49 : vector<16x128xf32>
    %cst_29 = arith.constant 0.000000e+00 : f32
    %51 = vector.broadcast %cst_29 : f32 to vector<16x128xf32>
    %52 = arith.cmpf oge, %50, %51 : vector<16x128xf32>
    %cst_30 = arith.constant 0.00999999977 : f32
    %53 = vector.broadcast %cst_30 : f32 to vector<16x128xf32>
    %54 = arith.mulf %53, %50 : vector<16x128xf32>
    %55 = arith.select %52, %50, %54 : vector<16x128xi1>, vector<16x128xf32>
    %56 = arith.truncf %55 : vector<16x128xf32> to vector<16x128xbf16>
    %c0_31 = arith.constant 0 : index
    %c0_32 = arith.constant 0 : index
    %57 = vector.load %arg7[%c0_31, %c0_32] : memref<128x128xbf16, #tpu.memory_space<vmem>>, vector<128x128xbf16>
    %c5 = arith.constant 5 : index
    %c0_33 = arith.constant 0 : index
    %58 = vector.load %arg1[%c5, %c0_33] : memref<16x1024xf32, #tpu.memory_space<vmem>>, vector<1x128xf32>
    %cst_34 = arith.constant dense<0.000000e+00> : vector<16x128xf32>
    %59 = tpu.matmul %56, %57, %cst_34 {dimension_numbers = #tpu.dot_dimension_numbers<[1], [0], [0], [1], [0, 0, 1, 1], [], []>} : vector<16x128xbf16>, vector<128x128xbf16>, vector<16x128xf32> -> vector<16x128xf32>
    %60 = vector.broadcast %58 : vector<1x128xf32> to vector<16x128xf32>
    %61 = arith.addf %59, %60 : vector<16x128xf32>
    %cst_35 = arith.constant 0.000000e+00 : f32
    %62 = vector.broadcast %cst_35 : f32 to vector<16x128xf32>
    %63 = arith.cmpf oge, %61, %62 : vector<16x128xf32>
    %cst_36 = arith.constant 0.00999999977 : f32
    %64 = vector.broadcast %cst_36 : f32 to vector<16x128xf32>
    %65 = arith.mulf %64, %61 : vector<16x128xf32>
    %66 = arith.select %63, %61, %65 : vector<16x128xi1>, vector<16x128xf32>
    %67 = arith.truncf %66 : vector<16x128xf32> to vector<16x128xbf16>
    %c0_37 = arith.constant 0 : index
    %c0_38 = arith.constant 0 : index
    %68 = vector.load %arg8[%c0_37, %c0_38] : memref<128x128xbf16, #tpu.memory_space<vmem>>, vector<128x128xbf16>
    %c6 = arith.constant 6 : index
    %c0_39 = arith.constant 0 : index
    %69 = vector.load %arg1[%c6, %c0_39] : memref<16x1024xf32, #tpu.memory_space<vmem>>, vector<1x128xf32>
    %cst_40 = arith.constant dense<0.000000e+00> : vector<16x128xf32>
    %70 = tpu.matmul %67, %68, %cst_40 {dimension_numbers = #tpu.dot_dimension_numbers<[1], [0], [0], [1], [0, 0, 1, 1], [], []>} : vector<16x128xbf16>, vector<128x128xbf16>, vector<16x128xf32> -> vector<16x128xf32>
    %71 = vector.broadcast %69 : vector<1x128xf32> to vector<16x128xf32>
    %72 = arith.addf %70, %71 : vector<16x128xf32>
    %cst_41 = arith.constant 0.000000e+00 : f32
    %73 = vector.broadcast %cst_41 : f32 to vector<16x128xf32>
    %74 = arith.cmpf oge, %72, %73 : vector<16x128xf32>
    %cst_42 = arith.constant 0.00999999977 : f32
    %75 = vector.broadcast %cst_42 : f32 to vector<16x128xf32>
    %76 = arith.mulf %75, %72 : vector<16x128xf32>
    %77 = arith.select %74, %72, %76 : vector<16x128xi1>, vector<16x128xf32>
    %78 = arith.truncf %77 : vector<16x128xf32> to vector<16x128xbf16>
    %c0_43 = arith.constant 0 : index
    %c0_44 = arith.constant 0 : index
    %79 = vector.load %arg9[%c0_43, %c0_44] : memref<128x128xbf16, #tpu.memory_space<vmem>>, vector<128x128xbf16>
    %c7 = arith.constant 7 : index
    %c0_45 = arith.constant 0 : index
    %80 = vector.load %arg1[%c7, %c0_45] : memref<16x1024xf32, #tpu.memory_space<vmem>>, vector<1x128xf32>
    %cst_46 = arith.constant dense<0.000000e+00> : vector<16x128xf32>
    %81 = tpu.matmul %78, %79, %cst_46 {dimension_numbers = #tpu.dot_dimension_numbers<[1], [0], [0], [1], [0, 0, 1, 1], [], []>} : vector<16x128xbf16>, vector<128x128xbf16>, vector<16x128xf32> -> vector<16x128xf32>
    %82 = vector.broadcast %80 : vector<1x128xf32> to vector<16x128xf32>
    %83 = arith.addf %81, %82 : vector<16x128xf32>
    %cst_47 = arith.constant 0.000000e+00 : f32
    %84 = vector.broadcast %cst_47 : f32 to vector<16x128xf32>
    %85 = arith.cmpf oge, %83, %84 : vector<16x128xf32>
    %cst_48 = arith.constant 0.00999999977 : f32
    %86 = vector.broadcast %cst_48 : f32 to vector<16x128xf32>
    %87 = arith.mulf %86, %83 : vector<16x128xf32>
    %88 = arith.select %85, %83, %87 : vector<16x128xi1>, vector<16x128xf32>
    %89 = arith.truncf %88 : vector<16x128xf32> to vector<16x128xbf16>
    %c0_49 = arith.constant 0 : index
    %c0_50 = arith.constant 0 : index
    %90 = vector.load %arg10[%c0_49, %c0_50] : memref<128x128xbf16, #tpu.memory_space<vmem>>, vector<128x128xbf16>
    %c8 = arith.constant 8 : index
    %c0_51 = arith.constant 0 : index
    %91 = vector.load %arg1[%c8, %c0_51] : memref<16x1024xf32, #tpu.memory_space<vmem>>, vector<1x128xf32>
    %cst_52 = arith.constant dense<0.000000e+00> : vector<16x128xf32>
    %92 = tpu.matmul %89, %90, %cst_52 {dimension_numbers = #tpu.dot_dimension_numbers<[1], [0], [0], [1], [0, 0, 1, 1], [], []>} : vector<16x128xbf16>, vector<128x128xbf16>, vector<16x128xf32> -> vector<16x128xf32>
    %93 = vector.broadcast %91 : vector<1x128xf32> to vector<16x128xf32>
    %94 = arith.addf %92, %93 : vector<16x128xf32>
    %cst_53 = arith.constant 0.000000e+00 : f32
    %95 = vector.broadcast %cst_53 : f32 to vector<16x128xf32>
    %96 = arith.cmpf oge, %94, %95 : vector<16x128xf32>
    %cst_54 = arith.constant 0.00999999977 : f32
    %97 = vector.broadcast %cst_54 : f32 to vector<16x128xf32>
    %98 = arith.mulf %97, %94 : vector<16x128xf32>
    %99 = arith.select %96, %94, %98 : vector<16x128xi1>, vector<16x128xf32>
    %100 = arith.truncf %99 : vector<16x128xf32> to vector<16x128xbf16>
    %c0_55 = arith.constant 0 : index
    %c0_56 = arith.constant 0 : index
    %101 = vector.load %arg11[%c0_55, %c0_56] : memref<128x128xbf16, #tpu.memory_space<vmem>>, vector<128x128xbf16>
    %c9 = arith.constant 9 : index
    %c0_57 = arith.constant 0 : index
    %102 = vector.load %arg1[%c9, %c0_57] : memref<16x1024xf32, #tpu.memory_space<vmem>>, vector<1x128xf32>
    %cst_58 = arith.constant dense<0.000000e+00> : vector<16x128xf32>
    %103 = tpu.matmul %100, %101, %cst_58 {dimension_numbers = #tpu.dot_dimension_numbers<[1], [0], [0], [1], [0, 0, 1, 1], [], []>} : vector<16x128xbf16>, vector<128x128xbf16>, vector<16x128xf32> -> vector<16x128xf32>
    %104 = vector.broadcast %102 : vector<1x128xf32> to vector<16x128xf32>
    %105 = arith.addf %103, %104 : vector<16x128xf32>
    %cst_59 = arith.constant 0.000000e+00 : f32
    %106 = vector.broadcast %cst_59 : f32 to vector<16x128xf32>
    %107 = arith.cmpf oge, %105, %106 : vector<16x128xf32>
    %cst_60 = arith.constant 0.00999999977 : f32
    %108 = vector.broadcast %cst_60 : f32 to vector<16x128xf32>
    %109 = arith.mulf %108, %105 : vector<16x128xf32>
    %110 = arith.select %107, %105, %109 : vector<16x128xi1>, vector<16x128xf32>
    %111 = arith.truncf %110 : vector<16x128xf32> to vector<16x128xbf16>
    %c0_61 = arith.constant 0 : index
    %c0_62 = arith.constant 0 : index
    %112 = vector.load %arg12[%c0_61, %c0_62] : memref<128x128xbf16, #tpu.memory_space<vmem>>, vector<128x128xbf16>
    %c10 = arith.constant 10 : index
    %c0_63 = arith.constant 0 : index
    %113 = vector.load %arg1[%c10, %c0_63] : memref<16x1024xf32, #tpu.memory_space<vmem>>, vector<1x128xf32>
    %cst_64 = arith.constant dense<0.000000e+00> : vector<16x128xf32>
    %114 = tpu.matmul %111, %112, %cst_64 {dimension_numbers = #tpu.dot_dimension_numbers<[1], [0], [0], [1], [0, 0, 1, 1], [], []>} : vector<16x128xbf16>, vector<128x128xbf16>, vector<16x128xf32> -> vector<16x128xf32>
    %115 = vector.broadcast %113 : vector<1x128xf32> to vector<16x128xf32>
    %116 = arith.addf %114, %115 : vector<16x128xf32>
    %cst_65 = arith.constant 0.000000e+00 : f32
    %117 = vector.broadcast %cst_65 : f32 to vector<16x128xf32>
    %118 = arith.cmpf oge, %116, %117 : vector<16x128xf32>
    %cst_66 = arith.constant 0.00999999977 : f32
    %119 = vector.broadcast %cst_66 : f32 to vector<16x128xf32>
    %120 = arith.mulf %119, %116 : vector<16x128xf32>
    %121 = arith.select %118, %116, %120 : vector<16x128xi1>, vector<16x128xf32>
    %122 = arith.truncf %121 : vector<16x128xf32> to vector<16x128xbf16>
    %c0_67 = arith.constant 0 : index
    %c0_68 = arith.constant 0 : index
    %123 = vector.load %arg13[%c0_67, %c0_68] : memref<128x128xbf16, #tpu.memory_space<vmem>>, vector<128x128xbf16>
    %c11 = arith.constant 11 : index
    %c0_69 = arith.constant 0 : index
    %124 = vector.load %arg1[%c11, %c0_69] : memref<16x1024xf32, #tpu.memory_space<vmem>>, vector<1x128xf32>
    %cst_70 = arith.constant dense<0.000000e+00> : vector<16x128xf32>
    %125 = tpu.matmul %122, %123, %cst_70 {dimension_numbers = #tpu.dot_dimension_numbers<[1], [0], [0], [1], [0, 0, 1, 1], [], []>} : vector<16x128xbf16>, vector<128x128xbf16>, vector<16x128xf32> -> vector<16x128xf32>
    %126 = vector.broadcast %124 : vector<1x128xf32> to vector<16x128xf32>
    %127 = arith.addf %125, %126 : vector<16x128xf32>
    %cst_71 = arith.constant 0.000000e+00 : f32
    %128 = vector.broadcast %cst_71 : f32 to vector<16x128xf32>
    %129 = arith.cmpf oge, %127, %128 : vector<16x128xf32>
    %cst_72 = arith.constant 0.00999999977 : f32
    %130 = vector.broadcast %cst_72 : f32 to vector<16x128xf32>
    %131 = arith.mulf %130, %127 : vector<16x128xf32>
    %132 = arith.select %129, %127, %131 : vector<16x128xi1>, vector<16x128xf32>
    %133 = arith.truncf %132 : vector<16x128xf32> to vector<16x128xbf16>
    %c0_73 = arith.constant 0 : index
    %c0_74 = arith.constant 0 : index
    %134 = vector.load %arg14[%c0_73, %c0_74] : memref<128x256xbf16, #tpu.memory_space<vmem>>, vector<128x256xbf16>
    %c12 = arith.constant 12 : index
    %c0_75 = arith.constant 0 : index
    %135 = vector.load %arg1[%c12, %c0_75] : memref<16x1024xf32, #tpu.memory_space<vmem>>, vector<1x256xf32>
    %cst_76 = arith.constant dense<0.000000e+00> : vector<16x256xf32>
    %136 = tpu.matmul %133, %134, %cst_76 {dimension_numbers = #tpu.dot_dimension_numbers<[1], [0], [0], [1], [0, 0, 1, 1], [], []>} : vector<16x128xbf16>, vector<128x256xbf16>, vector<16x256xf32> -> vector<16x256xf32>
    %137 = vector.broadcast %135 : vector<1x256xf32> to vector<16x256xf32>
    %138 = arith.addf %136, %137 : vector<16x256xf32>
    %cst_77 = arith.constant 0.000000e+00 : f32
    %139 = vector.broadcast %cst_77 : f32 to vector<16x256xf32>
    %140 = arith.cmpf oge, %138, %139 : vector<16x256xf32>
    %cst_78 = arith.constant 0.00999999977 : f32
    %141 = vector.broadcast %cst_78 : f32 to vector<16x256xf32>
    %142 = arith.mulf %141, %138 : vector<16x256xf32>
    %143 = arith.select %140, %138, %142 : vector<16x256xi1>, vector<16x256xf32>
    %144 = arith.truncf %143 : vector<16x256xf32> to vector<16x256xbf16>
    %c0_79 = arith.constant 0 : index
    %c0_80 = arith.constant 0 : index
    %145 = vector.load %arg15[%c0_79, %c0_80] : memref<256x256xbf16, #tpu.memory_space<vmem>>, vector<256x256xbf16>
    %c13 = arith.constant 13 : index
    %c0_81 = arith.constant 0 : index
    %146 = vector.load %arg1[%c13, %c0_81] : memref<16x1024xf32, #tpu.memory_space<vmem>>, vector<1x256xf32>
    %cst_82 = arith.constant dense<0.000000e+00> : vector<16x256xf32>
    %147 = tpu.matmul %144, %145, %cst_82 {dimension_numbers = #tpu.dot_dimension_numbers<[1], [0], [0], [1], [0, 0, 1, 1], [], []>} : vector<16x256xbf16>, vector<256x256xbf16>, vector<16x256xf32> -> vector<16x256xf32>
    %148 = vector.broadcast %146 : vector<1x256xf32> to vector<16x256xf32>
    %149 = arith.addf %147, %148 : vector<16x256xf32>
    %cst_83 = arith.constant 0.000000e+00 : f32
    %150 = vector.broadcast %cst_83 : f32 to vector<16x256xf32>
    %151 = arith.cmpf oge, %149, %150 : vector<16x256xf32>
    %cst_84 = arith.constant 0.00999999977 : f32
    %152 = vector.broadcast %cst_84 : f32 to vector<16x256xf32>
    %153 = arith.mulf %152, %149 : vector<16x256xf32>
    %154 = arith.select %151, %149, %153 : vector<16x256xi1>, vector<16x256xf32>
    %155 = arith.truncf %154 : vector<16x256xf32> to vector<16x256xbf16>
    %c0_85 = arith.constant 0 : index
    %c0_86 = arith.constant 0 : index
    %156 = vector.load %arg16[%c0_85, %c0_86] : memref<256x256xbf16, #tpu.memory_space<vmem>>, vector<256x256xbf16>
    %c14 = arith.constant 14 : index
    %c0_87 = arith.constant 0 : index
    %157 = vector.load %arg1[%c14, %c0_87] : memref<16x1024xf32, #tpu.memory_space<vmem>>, vector<1x256xf32>
    %cst_88 = arith.constant dense<0.000000e+00> : vector<16x256xf32>
    %158 = tpu.matmul %155, %156, %cst_88 {dimension_numbers = #tpu.dot_dimension_numbers<[1], [0], [0], [1], [0, 0, 1, 1], [], []>} : vector<16x256xbf16>, vector<256x256xbf16>, vector<16x256xf32> -> vector<16x256xf32>
    %159 = vector.broadcast %157 : vector<1x256xf32> to vector<16x256xf32>
    %160 = arith.addf %158, %159 : vector<16x256xf32>
    %cst_89 = arith.constant 0.000000e+00 : f32
    %161 = vector.broadcast %cst_89 : f32 to vector<16x256xf32>
    %162 = arith.cmpf oge, %160, %161 : vector<16x256xf32>
    %cst_90 = arith.constant 0.00999999977 : f32
    %163 = vector.broadcast %cst_90 : f32 to vector<16x256xf32>
    %164 = arith.mulf %163, %160 : vector<16x256xf32>
    %165 = arith.select %162, %160, %164 : vector<16x256xi1>, vector<16x256xf32>
    %166 = arith.truncf %165 : vector<16x256xf32> to vector<16x256xbf16>
    %c0_91 = arith.constant 0 : index
    %c0_92 = arith.constant 0 : index
    %167 = vector.load %arg17[%c0_91, %c0_92] : memref<256x1024xbf16, #tpu.memory_space<vmem>>, vector<256x1024xbf16>
    %c15 = arith.constant 15 : index
    %c0_93 = arith.constant 0 : index
    %168 = vector.load %arg1[%c15, %c0_93] : memref<16x1024xf32, #tpu.memory_space<vmem>>, vector<1x1024xf32>
    %cst_94 = arith.constant dense<0.000000e+00> : vector<16x1024xf32>
    %169 = tpu.matmul %166, %167, %cst_94 {dimension_numbers = #tpu.dot_dimension_numbers<[1], [0], [0], [1], [0, 0, 1, 1], [], []>} : vector<16x256xbf16>, vector<256x1024xbf16>, vector<16x1024xf32> -> vector<16x1024xf32>
    %170 = vector.broadcast %168 : vector<1x1024xf32> to vector<16x1024xf32>
    %171 = arith.addf %169, %170 : vector<16x1024xf32>
    %cst_95 = arith.constant 0.000000e+00 : f32
    %172 = vector.broadcast %cst_95 : f32 to vector<16x1024xf32>
    %173 = arith.cmpf oge, %171, %172 : vector<16x1024xf32>
    %cst_96 = arith.constant 0.00999999977 : f32
    %174 = vector.broadcast %cst_96 : f32 to vector<16x1024xf32>
    %175 = arith.mulf %174, %171 : vector<16x1024xf32>
    %176 = arith.select %173, %171, %175 : vector<16x1024xi1>, vector<16x1024xf32>
    %c0_97 = arith.constant 0 : index
    %c0_98 = arith.constant 0 : index
    %177 = vector.load %arg18[%c0_97, %c0_98] : memref<16x1024xf32, #tpu.memory_space<vmem>>, vector<16x1024xf32>
    tpu.vector_store %arg18[%c0_97, %c0_98], %176 {strides = array<i32>} : memref<16x1024xf32, #tpu.memory_space<vmem>>, vector<16x1024xf32>,
    return
  }
}

</mosaic_0001>

<bundles_post_ra>
// kernel: autoencoder_forward.1
= control target key start
LH: loop header
LB: loop body
LE: loop exit
PB: predicated region body
PF: predicated region fallthrough
CT: control target
= control target key end

     0   :  { %s7909_s0 = inlined_call_operand.vmem [shape: f32[16,1024], index: 0, kind: input, shape index: {}]   ;;  %s7910_s1 = inlined_call_operand.hbm [shape: f32[16,1024], index: 1, kind: input, shape index: {}]   ;;  %s7911_s2 = inlined_call_operand.hbm [shape: bf16[1024,256], index: 2, kind: input, shape index: {}]   ;;  %s7912_s3 = inlined_call_operand.vmem [shape: bf16[256,256], index: 3, kind: input, shape index: {}]   ;;  %s7913_s4 = inlined_call_operand.hbm [shape: bf16[256,256], index: 4, kind: input, shape index: {}]   ;;  %s7914_s5 = inlined_call_operand.hbm [shape: bf16[256,128], index: 5, kind: input, shape index: {}]   ;;  %s7915_s6 = inlined_call_operand.hbm [shape: bf16[128,128], index: 6, kind: input, shape index: {}]   ;;  %s7916_s7 = inlined_call_operand.hbm [shape: bf16[128,128], index: 7, kind: input, shape index: {}]   ;;  %s7917_s8 = inlined_call_operand.hbm [shape: bf16[128,128], index: 8, kind: input, shape index: {}]   ;;  %s7918_s9 = inlined_call_operand.hbm [shape: bf16[128,128], index: 9, kind: input, shape index: {}]   ;;  %s7919_s10 = inlined_call_operand.hbm [shape: bf16[128,128], index: 10, kind: input, shape index: {}]   ;;  %s7920_s11 = inlined_call_operand.hbm [shape: bf16[128,128], index: 11, kind: input, shape index: {}]   ;;  %s7921_s12 = inlined_call_operand.hbm [shape: bf16[128,128], index: 12, kind: input, shape index: {}]   ;;  %s7922_s13 = inlined_call_operand.hbm [shape: bf16[128,128], index: 13, kind: input, shape index: {}]   ;;  %s7923_s14 = inlined_call_operand.hbm [shape: bf16[128,256], index: 14, kind: input, shape index: {}]   ;;  %s7924_s15 = inlined_call_operand.hbm [shape: bf16[256,256], index: 15, kind: input, shape index: {}]   ;;  %s7925_s16 = inlined_call_operand.hbm [shape: bf16[256,256], index: 16, kind: input, shape index: {}]   ;;  %s7926_s17 = inlined_call_operand.hbm [shape: bf16[256,1024], index: 17, kind: input, shape index: {}]   ;;  %s7927_s18 = inlined_call_operand.vmem [shape: f32[16,1024], index: 18, kind: output, shape index: {}]  }
   0x1   :  { %7929 = sst [smem:[#allocation36_spill]] %s7909_s0 }
   0x2   :  { %7930 = sst [smem:[#allocation37_spill]] %s7910_s1 }
   0x3   :  { %7931 = sst [smem:[#allocation38_spill]] %s7911_s2 }
   0x4   :  { %23 = vsyncpa [#allocation3], 0 }
   0x5   :  { %24 = vsyncpa [#allocation5], 0 }
   0x6   :  { %25 = vsyncpa [#allocation8], 0 }
   0x7   :  { %26 = vsyncpa [#allocation11], 0 }
   0x8   :  { %27 = vsyncpa [#allocation14], 0 }
   0x9   :  { %28 = vsyncpa [#allocation17], 0 }
   0xa   :  { %29 = vsyncpa [#allocation20], 0 }
   0xb   :  { %30 = vsyncpa [#allocation23], 0  ;;  %s7932_s29 = sld [smem:[#allocation38_spill]] }
  0x11   :  { %s51_s30 = sshll.u32 %s7932_s29, 4  ;;  %s52_s30 = int_to_ptr.hbm [resolvable:$true] %s51_s30 }
  0x12   :  { %31 = vsyncpa [#allocation26], 0  ;;  %s7332_s0 = smov [#allocation4]   ;;  %s7333_s1 = smov 128  }
  0x13   :  { %s53_s19 = sshll.u32 %s7332_s0, 4  ;;  %s7334_s20 = smov 8   ;;  %s54_s19 = int_to_ptr.vmem [resolvable:$true] %s53_s19 }
  0x14   :  { %59 = dma.hbm_to_vmem [thread:$0]  %s52_s30, 16384, %s54_s19, [#allocation5], %s7333_s1, %s7333_s1, %s7334_s20  }
  0x15   :  { %s79_s2 = sshll.u32 %s7914_s5, 4  ;;  %s7335_s23 = smov [#allocation7]   ;;  %s80_s2 = int_to_ptr.hbm [resolvable:$true] %s79_s2 }
  0x16   :  { %s81_s24 = sshll.u32 %s7335_s23, 4  ;;  %s7336_s25 = smov 64   ;;  %s82_s24 = int_to_ptr.vmem [resolvable:$true] %s81_s24 }
  0x17   :  { %s7337_s26 = smov 4   ;;  %s105_s29 = sshll.u32 %s7916_s7, 4  ;;  %s106_s29 = int_to_ptr.hbm [resolvable:$true] %s105_s29 }
  0x18   :  { %87 = dma.hbm_to_vmem [thread:$0]  %s80_s2, 2048, %s82_s24, [#allocation8], %s7336_s25, %s7336_s25, %s7337_s26  }
  0x19   :  { %s7338_s30 = smov [#allocation10]   ;;  %s131_s21 = sshll.u32 %s7918_s9, 4  ;;  %s132_s21 = int_to_ptr.hbm [resolvable:$true] %s131_s21 }
  0x1a   :  { %s107_s0 = sshll.u32 %s7338_s30, 4  ;;  %s7339_s22 = smov [#allocation13]   ;;  %s108_s0 = int_to_ptr.vmem [resolvable:$true] %s107_s0 }
  0x1b   :  { %113 = dma.hbm_to_vmem [thread:$0]  %s106_s29, 1024, %s108_s0, [#allocation11], %s7336_s25, %s7336_s25, %s7337_s26  }
  0x1c   :  { %s133_s23 = sshll.u32 %s7339_s22, 4  ;;  %s157_s27 = sshll.u32 %s7920_s11, 4  ;;  %s134_s23 = int_to_ptr.vmem [resolvable:$true] %s133_s23  ;;  %s158_s27 = int_to_ptr.hbm [resolvable:$true] %s157_s27 }
  0x1d   :  { %139 = dma.hbm_to_vmem [thread:$0]  %s132_s21, 1024, %s134_s23, [#allocation14], %s7336_s25, %s7336_s25, %s7337_s26  }
  0x1e   :  { %s183_s9 = sshll.u32 %s7922_s13, 4  ;;  %s7340_s30 = smov [#allocation16]   ;;  %s184_s9 = int_to_ptr.hbm [resolvable:$true] %s183_s9 }
  0x1f   :  { %s159_s19 = sshll.u32 %s7340_s30, 4  ;;  %s7341_s29 = smov [#allocation19]   ;;  %s160_s19 = int_to_ptr.vmem [resolvable:$true] %s159_s19 }
  0x20   :  { %165 = dma.hbm_to_vmem [thread:$0]  %s158_s27, 1024, %s160_s19, [#allocation17], %s7336_s25, %s7336_s25, %s7337_s26  }
  0x21   :  { %s185_s11 = sshll.u32 %s7341_s29, 4  ;;  %s209_s22 = sshll.u32 %s7924_s15, 4  ;;  %s186_s11 = int_to_ptr.vmem [resolvable:$true] %s185_s11  ;;  %s210_s22 = int_to_ptr.hbm [resolvable:$true] %s209_s22 }
  0x22   :  { %191 = dma.hbm_to_vmem [thread:$0]  %s184_s9, 1024, %s186_s11, [#allocation20], %s7336_s25, %s7336_s25, %s7337_s26  }
  0x23   :  { %s7933_s23 = sld [smem:[#allocation37_spill]]  ;;  %s7342_s24 = smov [#allocation22]  }
  0x24   :  { %s211_s7 = sshll.u32 %s7342_s24, 4  ;;  %s7343_s27 = smov [#allocation2]   ;;  %s212_s7 = int_to_ptr.vmem [resolvable:$true] %s211_s7 }
  0x25   :  { %217 = dma.hbm_to_vmem [thread:$0]  %s210_s22, 4096, %s212_s7, [#allocation23], %s7333_s1, %s7333_s1, %s7334_s20  }
  0x26   :  { %s40_s15 = sshll.u32 %s7343_s27, 4  ;;  %s66_s19 = sshll.u32 %s7913_s4, 4  ;;  %s41_s15 = int_to_ptr.vmem [resolvable:$true] %s40_s15  ;;  %s67_s19 = int_to_ptr.hbm [resolvable:$true] %s66_s19 }
  0x27   :  { %s7344_s9 = smov 1024   ;;  %s7345_s29 = smov [#allocation6]  }
  0x28   :  { %s68_s11 = sshll.u32 %s7345_s29, 4  ;;  %s92_s13 = sshll.u32 %s7915_s6, 4  ;;  %s69_s11 = int_to_ptr.vmem [resolvable:$true] %s68_s11  ;;  %s93_s13 = int_to_ptr.hbm [resolvable:$true] %s92_s13 }
  0x29   :  { %s38_s2 = sshll.u32 %s7933_s23, 4  ;;  %s118_s4 = sshll.u32 %s7917_s8, 4  ;;  %s39_s2 = int_to_ptr.hbm [resolvable:$true] %s38_s2  ;;  %s119_s4 = int_to_ptr.hbm [resolvable:$true] %s118_s4 }
  0x2a   :  { %46 = dma.hbm_to_vmem [thread:$0]  %s39_s2, 2048, %s41_s15, [#allocation3], %s7344_s9, %s7344_s9, %s7336_s25  }
  0x2b   :  { %74 = dma.hbm_to_vmem [thread:$0]  %s67_s19, 4096, %s69_s11, [#allocation5], %s7333_s1, %s7333_s1, %s7334_s20  }
  0x2c   :  { %s7346_s23 = smov [#allocation9]   ;;  %s7347_s2 = smov [#allocation12]  }
  0x2d   :  { %s94_s24 = sshll.u32 %s7346_s23, 4  ;;  %s120_s6 = sshll.u32 %s7347_s2, 4  ;;  %s95_s24 = int_to_ptr.vmem [resolvable:$true] %s94_s24  ;;  %s121_s6 = int_to_ptr.vmem [resolvable:$true] %s120_s6 }
  0x2e   :  { %100 = dma.hbm_to_vmem [thread:$0]  %s93_s13, 1024, %s95_s24, [#allocation8], %s7336_s25, %s7336_s25, %s7337_s26  }
  0x2f   :  { %s144_s15 = sshll.u32 %s7919_s10, 4  ;;  %s170_s30 = sshll.u32 %s7921_s12, 4  ;;  %s145_s15 = int_to_ptr.hbm [resolvable:$true] %s144_s15  ;;  %s171_s30 = int_to_ptr.hbm [resolvable:$true] %s170_s30 }
  0x30   :  { %126 = dma.hbm_to_vmem [thread:$0]  %s119_s4, 1024, %s121_s6, [#allocation11], %s7336_s25, %s7336_s25, %s7337_s26  }
  0x31   :  { %s7348_s19 = smov [#allocation15]   ;;  %s7349_s29 = smov [#allocation18]  }
  0x32   :  { %s146_s9 = sshll.u32 %s7348_s19, 4  ;;  %s172_s10 = sshll.u32 %s7349_s29, 4  ;;  %s147_s9 = int_to_ptr.vmem [resolvable:$true] %s146_s9  ;;  %s173_s10 = int_to_ptr.vmem [resolvable:$true] %s172_s10 }
  0x33   :  { %152 = dma.hbm_to_vmem [thread:$0]  %s145_s15, 1024, %s147_s9, [#allocation14], %s7336_s25, %s7336_s25, %s7337_s26  }
  0x34   :  { %s196_s5 = sshll.u32 %s7923_s14, 4  ;;  %s222_s22 = sshll.u32 %s7925_s16, 4  ;;  %s197_s5 = int_to_ptr.hbm [resolvable:$true] %s196_s5  ;;  %s223_s22 = int_to_ptr.hbm [resolvable:$true] %s222_s22 }
  0x35   :  { %178 = dma.hbm_to_vmem [thread:$0]  %s171_s30, 1024, %s173_s10, [#allocation17], %s7336_s25, %s7336_s25, %s7337_s26  }
  0x36   :  { %s7350_s21 = smov [#allocation21]   ;;  %s7351_s23 = smov [#allocation24]  }
  0x37   :  { %s198_s4 = sshll.u32 %s7350_s21, 4  ;;  %s224_s14 = sshll.u32 %s7351_s23, 4  ;;  %s199_s4 = int_to_ptr.vmem [resolvable:$true] %s198_s4  ;;  %s225_s14 = int_to_ptr.vmem [resolvable:$true] %s224_s14 }
  0x38   :  { %204 = dma.hbm_to_vmem [thread:$0]  %s197_s5, 2048, %s199_s4, [#allocation20], %s7333_s1, %s7333_s1, %s7334_s20  }
  0x39   :  { %s235_s6 = sshll.u32 %s7926_s17, 4  ;;  %s7352_s16 = smov [#allocation25]   ;;  %s236_s6 = int_to_ptr.hbm [resolvable:$true] %s235_s6 }
  0x3a   :  { %230 = dma.hbm_to_vmem [thread:$0]  %s223_s22, 4096, %s225_s14, [#allocation23], %s7333_s1, %s7333_s1, %s7334_s20  }
  0x3b   :  { %s237_s25 = sshll.u32 %s7352_s16, 4  ;;  %s7353_s26 = smov 512   ;;  %s238_s25 = int_to_ptr.vmem [resolvable:$true] %s237_s25 }
  0x3c   :  { %s7354_s7 = smov 32  }
  0x3d   :  { %243 = dma.hbm_to_vmem [thread:$0]  %s236_s6, 16384, %s238_s25, [#allocation26], %s7353_s26, %s7353_s26, %s7354_s7  }
  0x3e   :  { %7314 = dma.done.wait [#allocation3], 2048  }
  0x3f   :  { %7315 = vsyncadd [#allocation3], 4294965248 }
  0x40   :  { %7316 = dma.done.wait [#allocation5], 20480  }
  0x41   :  { %7317 = vsyncadd [#allocation5], 4294946816 }
  0x42   :  { %7318 = dma.done.wait [#allocation8], 3072  }
  0x43   :  { %7319 = vsyncadd [#allocation8], 4294964224 }
  0x44   :  { %7320 = dma.done.wait [#allocation11], 2048  }
  0x45   :  { %7321 = vsyncadd [#allocation11], 4294965248 }
  0x46   :  { %7322 = dma.done.wait [#allocation14], 2048  }
  0x47   :  { %7323 = vsyncadd [#allocation14], 4294965248 }
  0x48   :  { %7324 = dma.done.wait [#allocation17], 2048  }
  0x49   :  { %7325 = vsyncadd [#allocation17], 4294965248 }
  0x4a   :  { %7326 = dma.done.wait [#allocation20], 3072  }
  0x4b   :  { %7327 = vsyncadd [#allocation20], 4294964224 }
  0x4c   :  { %7328 = dma.done.wait [#allocation23], 8192  }
  0x4d   :  { %7329 = vsyncadd [#allocation23], 4294959104 }
  0x4e   :  { %7330 = dma.done.wait [#allocation26], 16384  }
  0x4f   :  { %7331 = vsyncadd [#allocation26], 4294950912  ;;  %v4565_v0 = vld [vmem:[#allocation4 + $0x70] sm:$0xf]  ;;  %v6442_v1 = vld [vmem:[#allocation4 + $0x74] sm:$0xf0] }
  0x50   :  { %v4629_v2 = vld [vmem:[#allocation4 + $0xf0] sm:$0xf]  ;;  %v4566_v3 = vor.u32 %v6442_v1, %v4565_v0  ;;  %v6458_v4 = vld [vmem:[#allocation4 + $0xf4] sm:$0xf0]  ;;  %v4557_v11 = vld [vmem:[#allocation4 + $0x60] sm:$0xf] }
  0x51   :  { %v4693_v5 = vld [vmem:[#allocation4 + $0x170] sm:$0xf]  ;;  %v6474_v6 = vld [vmem:[#allocation4 + $0x174] sm:$0xf0]  ;;  %v4630_v7 = vor.u32 %v6458_v4, %v4629_v2  ;;  %v6440_v13 = vld [vmem:[#allocation4 + $0x64] sm:$0xf0] }
  0x52   :  { %v4694_v8 = vor.u32 %v6474_v6, %v4693_v5  ;;  %v4757_v9 = vld [vmem:[#allocation4 + $0x1f0] sm:$0xf]  ;;  %v6490_v10 = vld [vmem:[#allocation4 + $0x1f4] sm:$0xf0]  ;;  %1106 = vmatpush.bf16.msra.mxu0 %v4566_v3  ;;  %v4621_v14 = vld [vmem:[#allocation4 + $0xe0] sm:$0xf]  ;;  %v4558_v16 = vor.u32 %v6440_v13, %v4557_v11 }
  0x53   :  { %v4758_v12 = vor.u32 %v6490_v10, %v4757_v9  ;;  %v6456_v15 = vld [vmem:[#allocation4 + $0xe4] sm:$0xf0]  ;;  %1120 = vmatpush.bf16.msra.mxu1 %v4630_v7  ;;  %v4685_v18 = vld [vmem:[#allocation4 + $0x160] sm:$0xf]  ;;  %v4549_v23 = vld [vmem:[#allocation4 + $0x50] sm:$0xf] }
  0x54   :  { %1134 = vmatpush.bf16.msra.mxu2 %v4694_v8  ;;  %v4622_v17 = vor.u32 %v6456_v15, %v4621_v14  ;;  %v6472_v19 = vld [vmem:[#allocation4 + $0x164] sm:$0xf0]  ;;  %v4749_v20 = vld [vmem:[#allocation4 + $0x1e0] sm:$0xf]  ;;  %v6438_v24 = vld [vmem:[#allocation4 + $0x54] sm:$0xf0] }
  0x55   :  { %1148 = vmatpush.bf16.msra.mxu3 %v4758_v12  ;;  %v4686_v21 = vor.u32 %v6472_v19, %v4685_v18  ;;  %v6488_v22 = vld [vmem:[#allocation4 + $0x1e4] sm:$0xf0]  ;;  %v4613_v26 = vld [vmem:[#allocation4 + $0xd0] sm:$0xf]  ;;  %v6454_v27 = vld [vmem:[#allocation4 + $0xd4] sm:$0xf0]  ;;  %v4550_v29 = vor.u32 %v6438_v24, %v4549_v23 }
  0x56   :  { %v4750_v25 = vor.u32 %v6488_v22, %v4749_v20  ;;  %v4677_v28 = vld [vmem:[#allocation4 + $0x150] sm:$0xf]  ;;  %1107 = vmatpush.bf16.msra.mxu0 %v4558_v16  ;;  %v6470_v30 = vld [vmem:[#allocation4 + $0x154] sm:$0xf0]  ;;  %v4614_v33 = vor.u32 %v6454_v27, %v4613_v26  ;;  %v4541_v35 = vld [vmem:[#allocation4 + $0x40] sm:$0xf] }
  0x57   :  { %v4741_v31 = vld [vmem:[#allocation4 + $0x1d0] sm:$0xf]  ;;  %v6486_v32 = vld [vmem:[#allocation4 + $0x1d4] sm:$0xf0]  ;;  %1121 = vmatpush.bf16.msra.mxu1 %v4622_v17  ;;  %v4678_v34 = vor.u32 %v6470_v30, %v4677_v28  ;;  %v6436_v36 = vld [vmem:[#allocation4 + $0x44] sm:$0xf0] }
  0x58   :  { %1135 = vmatpush.bf16.msra.mxu2 %v4686_v21  ;;  %v4605_v37 = vld [vmem:[#allocation4 + $0xc0] sm:$0xf]  ;;  %v4742_v38 = vor.u32 %v6486_v32, %v4741_v31  ;;  %v6452_v39 = vld [vmem:[#allocation4 + $0xc4] sm:$0xf0]  ;;  %v4542_v44 = vor.u32 %v6436_v36, %v4541_v35  ;;  %v4533_v47 = vld [vmem:[#allocation4 + $0x30] sm:$0xf] }
  0x59   :  { %1149 = vmatpush.bf16.msra.mxu3 %v4750_v25  ;;  %v4669_v40 = vld [vmem:[#allocation4 + $0x140] sm:$0xf]  ;;  %v6468_v41 = vld [vmem:[#allocation4 + $0x144] sm:$0xf0]  ;;  %v4606_v45 = vor.u32 %v6452_v39, %v4605_v37  ;;  %v6434_v48 = vld [vmem:[#allocation4 + $0x34] sm:$0xf0] }
  0x5a   :  { %v4733_v42 = vld [vmem:[#allocation4 + $0x1c0] sm:$0xf]  ;;  %v6484_v43 = vld [vmem:[#allocation4 + $0x1c4] sm:$0xf0]  ;;  %1108 = vmatpush.bf16.msra.mxu0 %v4550_v29  ;;  %v4670_v46 = vor.u32 %v6468_v41, %v4669_v40  ;;  %v4597_v49 = vld [vmem:[#allocation4 + $0xb0] sm:$0xf]  ;;  %v4534_v56 = vor.u32 %v6434_v48, %v4533_v47 }
  0x5b   :  { %1122 = vmatpush.bf16.msra.mxu1 %v4614_v33  ;;  %v4734_v50 = vor.u32 %v6484_v43, %v4733_v42  ;;  %v6450_v51 = vld [vmem:[#allocation4 + $0xb4] sm:$0xf0]  ;;  %v4661_v52 = vld [vmem:[#allocation4 + $0x130] sm:$0xf]  ;;  %v4525_v59 = vld [vmem:[#allocation4 + $0x20] sm:$0xf] }
  0x5c   :  { %1136 = vmatpush.bf16.msra.mxu2 %v4678_v34  ;;  %v6466_v53 = vld [vmem:[#allocation4 + $0x134] sm:$0xf0]  ;;  %v4725_v54 = vld [vmem:[#allocation4 + $0x1b0] sm:$0xf]  ;;  %v4598_v57 = vor.u32 %v6450_v51, %v4597_v49  ;;  %v6432_v60 = vld [vmem:[#allocation4 + $0x24] sm:$0xf0] }
  0x5d   :  { %1150 = vmatpush.bf16.msra.mxu3 %v4742_v38  ;;  %v6482_v55 = vld [vmem:[#allocation4 + $0x1b4] sm:$0xf0]  ;;  %v4662_v58 = vor.u32 %v6466_v53, %v4661_v52  ;;  %v4589_v61 = vld [vmem:[#allocation4 + $0xa0] sm:$0xf]  ;;  %v6448_v63 = vld [vmem:[#allocation4 + $0xa4] sm:$0xf0]  ;;  %v4526_v4 = vor.u32 %v6432_v60, %v4525_v59 }
  0x5e   :  { %1109 = vmatpush.bf16.msra.mxu0 %v4542_v44  ;;  %v4726_v62 = vor.u32 %v6482_v55, %v4725_v54  ;;  %v4653_v0 = vld [vmem:[#allocation4 + $0x120] sm:$0xf]  ;;  %v6464_v1 = vld [vmem:[#allocation4 + $0x124] sm:$0xf0]  ;;  %v4590_v5 = vor.u32 %v6448_v63, %v4589_v61  ;;  %v4517_v7 = vld [vmem:[#allocation4 + $0x10] sm:$0xf] }
  0x5f   :  { %1123 = vmatpush.bf16.msra.mxu1 %v4606_v45  ;;  %v4717_v2 = vld [vmem:[#allocation4 + $0x1a0] sm:$0xf]  ;;  %v6480_v3 = vld [vmem:[#allocation4 + $0x1a4] sm:$0xf0]  ;;  %v4654_v6 = vor.u32 %v6464_v1, %v4653_v0  ;;  %v6430_v8 = vld [vmem:[#allocation4 + $0x14] sm:$0xf0] }
  0x60   :  { %1137 = vmatpush.bf16.msra.mxu2 %v4670_v46  ;;  %v4581_v9 = vld [vmem:[#allocation4 + $0x90] sm:$0xf]  ;;  %v4718_v10 = vor.u32 %v6480_v3, %v4717_v2  ;;  %v6446_v11 = vld [vmem:[#allocation4 + $0x94] sm:$0xf0]  ;;  %v4518_v16 = vor.u32 %v6430_v8, %v4517_v7  ;;  %v4509_v17 = vld [vmem:[#allocation4] sm:$0xf] }
  0x61   :  { %1151 = vmatpush.bf16.msra.mxu3 %v4734_v50  ;;  %v4645_v12 = vld [vmem:[#allocation4 + $0x110] sm:$0xf]  ;;  %v6462_v13 = vld [vmem:[#allocation4 + $0x114] sm:$0xf0]  ;;  %v6428_v18 = vld [vmem:[#allocation4 + $0x4] sm:$0xf0]  ;;  %v4582_v19 = vor.u32 %v6446_v11, %v4581_v9 }
  0x62   :  { %1110 = vmatpush.bf16.msra.mxu0 %v4534_v56  ;;  %v4709_v14 = vld [vmem:[#allocation4 + $0x190] sm:$0xf]  ;;  %v6478_v15 = vld [vmem:[#allocation4 + $0x194] sm:$0xf0]  ;;  %v4646_v20 = vor.u32 %v6462_v13, %v4645_v12  ;;  %v4573_v21 = vld [vmem:[#allocation4 + $0x80] sm:$0xf]  ;;  %v4510_v31 = vor.u32 %v6428_v18, %v4509_v17 }
  0x63   :  { %1124 = vmatpush.bf16.msra.mxu1 %v4598_v57  ;;  %v6444_v22 = vld [vmem:[#allocation4 + $0x84] sm:$0xf0]  ;;  %v4637_v23 = vld [vmem:[#allocation4 + $0x100] sm:$0xf]  ;;  %v4710_v24 = vor.u32 %v6478_v15, %v4709_v14  ;;  %v4821_v28 = vld [vmem:[#allocation4 + $0x270] sm:$0xf] }
  0x64   :  { %1138 = vmatpush.bf16.msra.mxu2 %v4662_v58  ;;  %v6460_v25 = vld [vmem:[#allocation4 + $0x104] sm:$0xf0]  ;;  %v4701_v26 = vld [vmem:[#allocation4 + $0x180] sm:$0xf]  ;;  %v6506_v29 = vld [vmem:[#allocation4 + $0x274] sm:$0xf0]  ;;  %v4574_v35 = vor.u32 %v6444_v22, %v4573_v21 }
  0x65   :  { %1152 = vmatpush.bf16.msra.mxu3 %v4726_v62  ;;  %v6476_v27 = vld [vmem:[#allocation4 + $0x184] sm:$0xf0]  ;;  %v4885_v30 = vld [vmem:[#allocation4 + $0x2f0] sm:$0xf]  ;;  %v6522_v32 = vld [vmem:[#allocation4 + $0x2f4] sm:$0xf0]  ;;  %v4638_v36 = vor.u32 %v6460_v25, %v4637_v23  ;;  %v4822_v40 = vor.u32 %v6506_v29, %v4821_v28 }
  0x66   :  { %1111 = vmatpush.bf16.msra.mxu0 %v4526_v4  ;;  %v4949_v33 = vld [vmem:[#allocation4 + $0x370] sm:$0xf]  ;;  %v6538_v34 = vld [vmem:[#allocation4 + $0x374] sm:$0xf0]  ;;  %v4702_v39 = vor.u32 %v6476_v27, %v4701_v26  ;;  %v4813_v41 = vld [vmem:[#allocation4 + $0x260] sm:$0xf]  ;;  %v4886_v43 = vor.u32 %v6522_v32, %v4885_v30 }
  0x67   :  { %1125 = vmatpush.bf16.msra.mxu1 %v4590_v5  ;;  %v5013_v37 = vld [vmem:[#allocation4 + $0x3f0] sm:$0xf]  ;;  %v6554_v38 = vld [vmem:[#allocation4 + $0x3f4] sm:$0xf0]  ;;  %v6504_v42 = vld [vmem:[#allocation4 + $0x264] sm:$0xf0]  ;;  %v4950_v44 = vor.u32 %v6538_v34, %v4949_v33 }
  0x68   :  { %1139 = vmatpush.bf16.msra.mxu2 %v4654_v6  ;;  %v4877_v45 = vld [vmem:[#allocation4 + $0x2e0] sm:$0xf]  ;;  %v6520_v46 = vld [vmem:[#allocation4 + $0x2e4] sm:$0xf0]  ;;  %v5014_v48 = vor.u32 %v6554_v38, %v5013_v37  ;;  %s7934_s20 = sld [smem:[#allocation36_spill]]  ;;  %v4814_v55 = vor.u32 %v6504_v42, %v4813_v41 }
  0x69   :  { %1153 = vmatpush.bf16.msra.mxu3 %v4718_v10  ;;  %v4941_v47 = vld [vmem:[#allocation4 + $0x360] sm:$0xf]  ;;  %v6536_v49 = vld [vmem:[#allocation4 + $0x364] sm:$0xf0]  ;;  %v4805_v56 = vld [vmem:[#allocation4 + $0x250] sm:$0xf]  ;;  %v4878_v60 = vor.u32 %v6520_v46, %v4877_v45 }
  0x6a   :  { %1112 = vmatpush.bf16.msra.mxu0 %v4518_v16  ;;  %v5005_v50 = vld [vmem:[#allocation4 + $0x3e0] sm:$0xf]  ;;  %v6552_v51 = vld [vmem:[#allocation4 + $0x3e4] sm:$0xf0]  ;;  %v6502_v57 = vld [vmem:[#allocation4 + $0x254] sm:$0xf0]  ;;  %v4942_v61 = vor.u32 %v6536_v49, %v4941_v47 }
  0x6b   :  { %1126 = vmatpush.bf16.msra.mxu1 %v4582_v19  ;;  %v4869_v62 = vld [vmem:[#allocation4 + $0x2d0] sm:$0xf]  ;;  %v6518_v63 = vld [vmem:[#allocation4 + $0x2d4] sm:$0xf0]  ;;  %v5006_v2 = vor.u32 %v6552_v51, %v5005_v50  ;;  %v4806_v9 = vor.u32 %v6502_v57, %v4805_v56  ;;  %v4797_v14 = vld [vmem:[#allocation4 + $0x240] sm:$0xf] }
  0x6c   :  { %1140 = vmatpush.bf16.msra.mxu2 %v4646_v20  ;;  %v4933_v0 = vld [vmem:[#allocation4 + $0x350] sm:$0xf]  ;;  %v6534_v3 = vld [vmem:[#allocation4 + $0x354] sm:$0xf0]  ;;  %v4870_v12 = vor.u32 %v6518_v63, %v4869_v62  ;;  %v6500_v15 = vld [vmem:[#allocation4 + $0x244] sm:$0xf0] }
  0x6d   :  { %1154 = vmatpush.bf16.msra.mxu3 %v4710_v24  ;;  %v4997_v4 = vld [vmem:[#allocation4 + $0x3d0] sm:$0xf]  ;;  %v6550_v5 = vld [vmem:[#allocation4 + $0x3d4] sm:$0xf0]  ;;  %v4934_v13 = vor.u32 %v6534_v3, %v4933_v0  ;;  %v4861_v16 = vld [vmem:[#allocation4 + $0x2c0] sm:$0xf]  ;;  %v4798_v24 = vor.u32 %v6500_v15, %v4797_v14 }
  0x6e   :  { %1113 = vmatpush.bf16.msra.mxu0 %v4510_v31  ;;  %v308_v52 = vld [vmem:[%s7934_s20] sm:$0xff]  ;;  %v310_v54 = vld [vmem:[%s7934_s20 + $0x10] sm:$0xff]  ;;  %v309_v6 = vld [vmem:[%s7934_s20 + $0x8] sm:$0xff]  ;;  %v4998_v18 = vor.u32 %v6550_v5, %v4997_v4 }
  0x6f   :  { %1127 = vmatpush.bf16.msra.mxu1 %v4574_v35  ;;  %v316_v53 = vld [vmem:[%s7934_s20 + $0x40] sm:$0xff]  ;;  %v318_v59 = vld [vmem:[%s7934_s20 + $0x50] sm:$0xff]  ;;  %v317_v7 = vld [vmem:[%s7934_s20 + $0x48] sm:$0xff] }
  0x70   :  { %1141 = vmatpush.bf16.msra.mxu2 %v4638_v36  ;;  %v7550_v58 = vpack.c.bf16 %v316_v53, %v308_v52  ;;  %v7555_v1 = vpack.c.bf16 %v318_v59, %v310_v54  ;;  %v311_v8 = vld [vmem:[%s7934_s20 + $0x18] sm:$0xff]  ;;  %v7568_v10 = vpack.c.bf16 %v317_v7, %v309_v6  ;;  %v6516_v19 = vld [vmem:[#allocation4 + $0x2c4] sm:$0xf0]  ;;  %v4925_v20 = vld [vmem:[#allocation4 + $0x340] sm:$0xf] }
  0x71   :  { %1155 = vmatpush.bf16.msra.mxu3 %v4702_v39  ;;  %v319_v11 = vld [vmem:[%s7934_s20 + $0x58] sm:$0xff]  ;;  %v6532_v21 = vld [vmem:[#allocation4 + $0x344] sm:$0xf0]  ;;  %v4989_v22 = vld [vmem:[#allocation4 + $0x3c0] sm:$0xf]  ;;  %v4862_v25 = vor.u32 %v6516_v19, %v4861_v16 }
  0x72   :  { %1162 = vmatpush.bf16.msrb.mxu0 %v4822_v40  ;;  %v7573_v17 = vpack.c.bf16 %v319_v11, %v311_v8  ;;  %1128 = vmatmul.bf16.vlgmr.msra.gmra.mxu1 %v7568_v10  ;;  %v6548_v23 = vld [vmem:[#allocation4 + $0x3c4] sm:$0xf0]  ;;  %v4926_v26 = vor.u32 %v6532_v21, %v4925_v20  ;;  %v4789_v27 = vld [vmem:[#allocation4 + $0x230] sm:$0xf]  ;;  %v6498_v28 = vld [vmem:[#allocation4 + $0x234] sm:$0xf0] }
  0x73   :  { %1176 = vmatpush.bf16.msrb.mxu1 %v4886_v43  ;;  %1114 = vmatmul.bf16.vlgmr.msra.gmra.mxu0 %v7550_v58  ;;  %v4853_v29 = vld [vmem:[#allocation4 + $0x2b0] sm:$0xf]  ;;  %v4990_v30 = vor.u32 %v6548_v23, %v4989_v22  ;;  %v6514_v31 = vld [vmem:[#allocation4 + $0x2b4] sm:$0xf0]  ;;  %v4790_v36 = vor.u32 %v6498_v28, %v4789_v27  ;;  %v4781_v39 = vld [vmem:[#allocation4 + $0x220] sm:$0xf] }
  0x74   :  { %1190 = vmatpush.bf16.msrb.mxu2 %v4950_v44  ;;  %1156 = vmatmul.bf16.vlgmr.msra.gmra.mxu3 %v7573_v17  ;;  %v4917_v32 = vld [vmem:[#allocation4 + $0x330] sm:$0xf]  ;;  %v6530_v33 = vld [vmem:[#allocation4 + $0x334] sm:$0xf0]  ;;  %v4854_v37 = vor.u32 %v6514_v31, %v4853_v29  ;;  %v6496_v40 = vld [vmem:[#allocation4 + $0x224] sm:$0xf0] }
  0x75   :  { %1204 = vmatpush.bf16.msrb.mxu3 %v5014_v48  ;;  %1142 = vmatmul.bf16.vlgmr.msra.gmra.mxu2 %v7555_v1  ;;  %v4981_v34 = vld [vmem:[#allocation4 + $0x3b0] sm:$0xf]  ;;  %v6546_v35 = vld [vmem:[#allocation4 + $0x3b4] sm:$0xf0]  ;;  %v4918_v38 = vor.u32 %v6530_v33, %v4917_v32  ;;  %v4845_v41 = vld [vmem:[#allocation4 + $0x2a0] sm:$0xf]  ;;  %v4782_v48 = vor.u32 %v6496_v40, %v4781_v39 }
  0x76   :  { %1163 = vmatpush.bf16.msrb.mxu0 %v4814_v55  ;;  %v4982_v42 = vor.u32 %v6546_v35, %v4981_v34  ;;  %v6512_v43 = vld [vmem:[#allocation4 + $0x2a4] sm:$0xf0]  ;;  %v4909_v44 = vld [vmem:[#allocation4 + $0x320] sm:$0xf]  ;;  %v4773_v49 = vld [vmem:[#allocation4 + $0x210] sm:$0xf] }
  0x77   :  { %1177 = vmatpush.bf16.msrb.mxu1 %v4878_v60  ;;  %v6528_v45 = vld [vmem:[#allocation4 + $0x324] sm:$0xf0]  ;;  %v4973_v46 = vld [vmem:[#allocation4 + $0x3a0] sm:$0xf]  ;;  %v4846_v50 = vor.u32 %v6512_v43, %v4845_v41  ;;  %v6494_v52 = vld [vmem:[#allocation4 + $0x214] sm:$0xf0] }
  0x78   :  { %1191 = vmatpush.bf16.msrb.mxu2 %v4942_v61  ;;  %v6544_v47 = vld [vmem:[#allocation4 + $0x3a4] sm:$0xf0]  ;;  %v4910_v51 = vor.u32 %v6528_v45, %v4909_v44  ;;  %v4837_v53 = vld [vmem:[#allocation4 + $0x290] sm:$0xf]  ;;  %v6510_v54 = vld [vmem:[#allocation4 + $0x294] sm:$0xf0]  ;;  %v4774_v63 = vor.u32 %v6494_v52, %v4773_v49 }
  0x79   :  { %1205 = vmatpush.bf16.msrb.mxu3 %v5006_v2  ;;  %v4974_v55 = vor.u32 %v6544_v47, %v4973_v46  ;;  %v4901_v56 = vld [vmem:[#allocation4 + $0x310] sm:$0xf]  ;;  %v6526_v57 = vld [vmem:[#allocation4 + $0x314] sm:$0xf0]  ;;  %v4765_v61 = vld [vmem:[#allocation4 + $0x200] sm:$0xf]  ;;  %v4838_v5 = vor.u32 %v6510_v54, %v4837_v53 }
  0x7a   :  { %1164 = vmatpush.bf16.msrb.mxu0 %v4806_v9  ;;  %v4965_v59 = vld [vmem:[#allocation4 + $0x390] sm:$0xf]  ;;  %v6542_v60 = vld [vmem:[#allocation4 + $0x394] sm:$0xf0]  ;;  %v6492_v62 = vld [vmem:[#allocation4 + $0x204] sm:$0xf0]  ;;  %v4902_v6 = vor.u32 %v6526_v57, %v4901_v56 }
  0x7b   :  { %1178 = vmatpush.bf16.msrb.mxu1 %v4870_v12  ;;  %v4829_v0 = vld [vmem:[#allocation4 + $0x280] sm:$0xf]  ;;  %v6508_v2 = vld [vmem:[#allocation4 + $0x284] sm:$0xf0]  ;;  %v6441_v9 = vld [vmem:[#allocation4 + $0x74] sm:$0xf]  ;;  %v4966_v11 = vor.u32 %v6542_v60, %v4965_v59  ;;  %v4766_v19 = vor.u32 %v6492_v62, %v4765_v61 }
  0x7c   :  { %1192 = vmatpush.bf16.msrb.mxu2 %v4934_v13  ;;  %v4893_v3 = vld [vmem:[#allocation4 + $0x300] sm:$0xf]  ;;  %v6524_v4 = vld [vmem:[#allocation4 + $0x304] sm:$0xf0]  ;;  %v4567_v12 = vld [vmem:[#allocation4 + $0x78] sm:$0xf0]  ;;  %v4830_v23 = vor.u32 %v6508_v2, %v4829_v0 }
  0x7d   :  { %1206 = vmatpush.bf16.msrb.mxu3 %v4998_v18  ;;  %v4957_v7 = vld [vmem:[#allocation4 + $0x380] sm:$0xf]  ;;  %v6540_v8 = vld [vmem:[#allocation4 + $0x384] sm:$0xf0]  ;;  %v6457_v13 = vld [vmem:[#allocation4 + $0xf4] sm:$0xf]  ;;  %v4570_v29 = vor.u32 %v6441_v9, %v4567_v12 }
  0x7e   :  { %1165 = vmatpush.bf16.msrb.mxu0 %v4798_v24  ;;  %v4631_v14 = vld [vmem:[#allocation4 + $0xf8] sm:$0xf0]  ;;  %v6473_v15 = vld [vmem:[#allocation4 + $0x174] sm:$0xf]  ;;  %v312_v21 = vld [vmem:[%s7934_s20 + $0x20] sm:$0xff]  ;;  %v4894_v24 = vor.u32 %v6524_v4, %v4893_v3  ;;  %v4958_v28 = vor.u32 %v6540_v8, %v4957_v7 }
  0x7f   :  { %1179 = vmatpush.bf16.msrb.mxu1 %v4862_v25  ;;  %v4695_v16 = vld [vmem:[#allocation4 + $0x178] sm:$0xf0]  ;;  %v6489_v18 = vld [vmem:[#allocation4 + $0x1f4] sm:$0xf]  ;;  %v320_v22 = vld [vmem:[%s7934_s20 + $0x60] sm:$0xff]  ;;  %v4634_v33 = vor.u32 %v6457_v13, %v4631_v14 }
  0x80   :  { %1193 = vmatpush.bf16.msrb.mxu2 %v4926_v26  ;;  %v4759_v20 = vld [vmem:[#allocation4 + $0x1f8] sm:$0xf0]  ;;  %v314_v25 = vld [vmem:[%s7934_s20 + $0x30] sm:$0xff]  ;;  %v313_v27 = vld [vmem:[%s7934_s20 + $0x28] sm:$0xff]  ;;  %v4698_v34 = vor.u32 %v6473_v15, %v4695_v16  ;;  %v7601_v39 = vpack.c.bf16 %v320_v22, %v312_v21 }
  0x81   :  { %1207 = vmatpush.bf16.msrb.mxu3 %v4990_v30  ;;  %v322_v26 = vld [vmem:[%s7934_s20 + $0x70] sm:$0xff]  ;;  %v321_v30 = vld [vmem:[%s7934_s20 + $0x68] sm:$0xff]  ;;  %v315_v31 = vld [vmem:[%s7934_s20 + $0x38] sm:$0xff] }
  0x82   :  { %1166 = vmatpush.bf16.msrb.mxu0 %v4790_v36  ;;  %v323_v32 = vld [vmem:[%s7934_s20 + $0x78] sm:$0xff]  ;;  %v6439_v35 = vld [vmem:[#allocation4 + $0x64] sm:$0xf]  ;;  %v4559_v36 = vld [vmem:[#allocation4 + $0x68] sm:$0xf0]  ;;  %v7603_v43 = vpack.c.bf16 %v322_v26, %v314_v25  ;;  %v7605_v44 = vpack.c.bf16 %v321_v30, %v313_v27 }
  0x83   :  { %1180 = vmatpush.bf16.msrb.mxu1 %v4854_v37  ;;  %v6455_v37 = vld [vmem:[#allocation4 + $0xe4] sm:$0xf]  ;;  %v4623_v40 = vld [vmem:[#allocation4 + $0xe8] sm:$0xf0]  ;;  %v7607_v47 = vpack.c.bf16 %v323_v32, %v315_v31  ;;  %v4551_v52 = vld [vmem:[#allocation4 + $0x58] sm:$0xf0] }
  0x84   :  { %1194 = vmatpush.bf16.msrb.mxu2 %v4918_v38  ;;  %v4762_v38 = vor.u32 %v6489_v18, %v4759_v20  ;;  %v6471_v41 = vld [vmem:[#allocation4 + $0x164] sm:$0xf]  ;;  %v4751_v46 = vld [vmem:[#allocation4 + $0x1e8] sm:$0xf0]  ;;  %v4626_v49 = vor.u32 %v6455_v37, %v4623_v40  ;;  %v6453_v53 = vld [vmem:[#allocation4 + $0xd4] sm:$0xf] }
  0x85   :  { %1208 = vmatpush.bf16.msrb.mxu3 %v4982_v42  ;;  %v4687_v42 = vld [vmem:[#allocation4 + $0x168] sm:$0xf0]  ;;  %v6487_v45 = vld [vmem:[#allocation4 + $0x1e4] sm:$0xf]  ;;  %v6469_v56 = vld [vmem:[#allocation4 + $0x154] sm:$0xf] }
  0x86   :  { %1167 = vmatpush.bf16.msrb.mxu0 %v4782_v48  ;;  %v4562_v48 = vor.u32 %v6439_v35, %v4559_v36  ;;  %v4754_v54 = vor.u32 %v6487_v45, %v4751_v46  ;;  %v4679_v57 = vld [vmem:[#allocation4 + $0x158] sm:$0xf0]  ;;  %v6485_v59 = vld [vmem:[#allocation4 + $0x1d4] sm:$0xf]  ;;  %v6435_v0 = vld [vmem:[#allocation4 + $0x44] sm:$0xf] }
  0x87   :  { %1181 = vmatpush.bf16.msrb.mxu1 %v4846_v50  ;;  %v4690_v50 = vor.u32 %v6471_v41, %v4687_v42  ;;  %v4743_v60 = vld [vmem:[#allocation4 + $0x1d8] sm:$0xf0]  ;;  %v4543_v2 = vld [vmem:[#allocation4 + $0x48] sm:$0xf0]  ;;  %v6451_v3 = vld [vmem:[#allocation4 + $0xc4] sm:$0xf] }
  0x88   :  { %1195 = vmatpush.bf16.msrb.mxu2 %v4910_v51  ;;  %v6437_v51 = vld [vmem:[#allocation4 + $0x54] sm:$0xf]  ;;  %v4746_v4 = vor.u32 %v6485_v59, %v4743_v60  ;;  %v4671_v7 = vld [vmem:[#allocation4 + $0x148] sm:$0xf0]  ;;  %v6483_v8 = vld [vmem:[#allocation4 + $0x1c4] sm:$0xf] }
  0x89   :  { %1209 = vmatpush.bf16.msrb.mxu3 %v4974_v55  ;;  %v4615_v55 = vld [vmem:[#allocation4 + $0xd8] sm:$0xf0]  ;;  %v4554_v61 = vor.u32 %v6437_v51, %v4551_v52  ;;  %v4735_v9 = vld [vmem:[#allocation4 + $0x1c8] sm:$0xf0]  ;;  %v6433_v14 = vld [vmem:[#allocation4 + $0x34] sm:$0xf] }
  0x8a   :  { %1168 = vmatpush.bf16.msrb.mxu0 %v4774_v63  ;;  %v4618_v62 = vor.u32 %v6453_v53, %v4615_v55  ;;  %v4682_v63 = vor.u32 %v6469_v56, %v4679_v57  ;;  %v4535_v15 = vld [vmem:[#allocation4 + $0x38] sm:$0xf0]  ;;  %v6449_v16 = vld [vmem:[#allocation4 + $0xb4] sm:$0xf]  ;;  %v4738_v18 = vor.u32 %v6483_v8, %v4735_v9  ;;  %v6431_v27 = vld [vmem:[#allocation4 + $0x24] sm:$0xf] }
  0x8b   :  { %1182 = vmatpush.bf16.msrb.mxu1 %v4838_v5  ;;  %v4607_v5 = vld [vmem:[#allocation4 + $0xc8] sm:$0xf0]  ;;  %v6465_v20 = vld [vmem:[#allocation4 + $0x134] sm:$0xf]  ;;  %v4663_v21 = vld [vmem:[#allocation4 + $0x138] sm:$0xf0] }
  0x8c   :  { %1196 = vmatpush.bf16.msrb.mxu2 %v4902_v6  ;;  %v6467_v6 = vld [vmem:[#allocation4 + $0x144] sm:$0xf]  ;;  %v4610_v12 = vor.u32 %v6451_v3, %v4607_v5  ;;  %v6481_v22 = vld [vmem:[#allocation4 + $0x1b4] sm:$0xf]  ;;  %v4666_v26 = vor.u32 %v6465_v20, %v4663_v21  ;;  %v4591_v31 = vld [vmem:[#allocation4 + $0xa8] sm:$0xf0] }
  0x8d   :  { %1210 = vmatpush.bf16.msrb.mxu3 %v4966_v11  ;;  %v4546_v11 = vor.u32 %v6435_v0, %v4543_v2  ;;  %v4674_v13 = vor.u32 %v6467_v6, %v4671_v7  ;;  %v6463_v32 = vld [vmem:[#allocation4 + $0x124] sm:$0xf]  ;;  %v4719_v35 = vld [vmem:[#allocation4 + $0x1a8] sm:$0xf0]  ;;  %v6429_v40 = vld [vmem:[#allocation4 + $0x14] sm:$0xf] }
  0x8e   :  { %1169 = vmatpush.bf16.msrb.mxu0 %v4766_v19  ;;  %v4599_v19 = vld [vmem:[#allocation4 + $0xb8] sm:$0xf0]  ;;  %v6445_v42 = vld [vmem:[#allocation4 + $0x94] sm:$0xf]  ;;  %v6427_v53 = vld [vmem:[#allocation4 + $0x4] sm:$0xf] }
  0x8f   :  { %1183 = vmatpush.bf16.msrb.mxu1 %v4830_v23  ;;  %v4727_v23 = vld [vmem:[#allocation4 + $0x1b8] sm:$0xf0]  ;;  %v4602_v25 = vor.u32 %v6449_v16, %v4599_v19  ;;  %v6443_v57 = vld [vmem:[#allocation4 + $0x84] sm:$0xf]  ;;  %v4575_v59 = vld [vmem:[#allocation4 + $0x88] sm:$0xf0] }
  0x90   :  { %1197 = vmatpush.bf16.msrb.mxu2 %v4894_v24  ;;  %v4538_v24 = vor.u32 %v6433_v14, %v4535_v15  ;;  %v4730_v30 = vor.u32 %v6481_v22, %v4727_v23  ;;  %v4519_v41 = vld [vmem:[#allocation4 + $0x18] sm:$0xf0]  ;;  %v6459_v60 = vld [vmem:[#allocation4 + $0x104] sm:$0xf]  ;;  %v4703_v0 = vld [vmem:[#allocation4 + $0x188] sm:$0xf0]  ;;  %v4578_v9 = vor.u32 %v6443_v57, %v4575_v59 }
  0x91   :  { %1211 = vmatpush.bf16.msrb.mxu3 %v4958_v28  ;;  %1170 = vmatmul.bf16.vlgmr.msrb.gmra.mxu0 %v7601_v39  ;;  %v4527_v28 = vld [vmem:[#allocation4 + $0x28] sm:$0xf0]  ;;  %v4583_v46 = vld [vmem:[#allocation4 + $0x98] sm:$0xf0]  ;;  %v4522_v52 = vor.u32 %v6429_v40, %v4519_v41  ;;  %v6505_v2 = vld [vmem:[#allocation4 + $0x274] sm:$0xf] }
  0x92   :  { %1218 = vmatpush.bf16.msra.mxu0 %v4570_v29  ;;  %1184 = vmatmul.bf16.vlgmr.msrb.gmra.mxu1 %v7605_v44  ;;  %v6447_v29 = vld [vmem:[#allocation4 + $0xa4] sm:$0xf]  ;;  %v4530_v36 = vor.u32 %v6431_v27, %v4527_v28  ;;  %v4711_v51 = vld [vmem:[#allocation4 + $0x198] sm:$0xf0]  ;;  %v4586_v55 = vor.u32 %v6445_v42, %v4583_v46  ;;  %v6537_v7 = vld [vmem:[#allocation4 + $0x374] sm:$0xf] }
  0x93   :  { %1232 = vmatpush.bf16.msra.mxu1 %v4634_v33  ;;  %1198 = vmatmul.bf16.vlgmr.msrb.gmra.mxu2 %v7603_v43  ;;  %v4655_v33 = vld [vmem:[#allocation4 + $0x128] sm:$0xf0]  ;;  %v4594_v37 = vor.u32 %v6447_v29, %v4591_v31  ;;  %v4823_v3 = vld [vmem:[#allocation4 + $0x278] sm:$0xf0]  ;;  %v6503_v19 = vld [vmem:[#allocation4 + $0x264] sm:$0xf] }
  0x94   :  { %1246 = vmatpush.bf16.msra.mxu2 %v4698_v34  ;;  %1212 = vmatmul.bf16.vlgmr.msrb.gmra.mxu3 %v7607_v47  ;;  %v6479_v34 = vld [vmem:[#allocation4 + $0x1a4] sm:$0xf]  ;;  %v4887_v6 = vld [vmem:[#allocation4 + $0x2f8] sm:$0xf0]  ;;  %v4826_v15 = vor.u32 %v6505_v2, %v4823_v3  ;;  %v4815_v20 = vld [vmem:[#allocation4 + $0x268] sm:$0xf0] }
  0x95   :  { %1260 = vmatpush.bf16.msra.mxu3 %v4762_v38  ;;  %v4658_v38 = vor.u32 %v6463_v32, %v4655_v33  ;;  %v4722_v45 = vor.u32 %v6479_v34, %v4719_v35  ;;  %v4951_v8 = vld [vmem:[#allocation4 + $0x378] sm:$0xf0]  ;;  %v6519_v21 = vld [vmem:[#allocation4 + $0x2e4] sm:$0xf]  ;;  %v4879_v23 = vld [vmem:[#allocation4 + $0x2e8] sm:$0xf0]  ;;  %v4818_v28 = vor.u32 %v6503_v19, %v4815_v20 }
  0x96   :  { %1219 = vmatpush.bf16.msra.mxu0 %v4562_v48  ;;  %v6461_v48 = vld [vmem:[#allocation4 + $0x114] sm:$0xf]  ;;  %v5007_v27 = vld [vmem:[#allocation4 + $0x3e8] sm:$0xf0]  ;;  %v4882_v29 = vor.u32 %v6519_v21, %v4879_v23  ;;  %v4807_v32 = vld [vmem:[#allocation4 + $0x258] sm:$0xf0] }
  0x97   :  { %1233 = vmatpush.bf16.msra.mxu1 %v4626_v49  ;;  %v4647_v49 = vld [vmem:[#allocation4 + $0x118] sm:$0xf0]  ;;  %v6501_v31 = vld [vmem:[#allocation4 + $0x254] sm:$0xf]  ;;  %v6499_v46 = vld [vmem:[#allocation4 + $0x244] sm:$0xf] }
  0x98   :  { %1247 = vmatpush.bf16.msra.mxu2 %v4690_v50  ;;  %v6477_v50 = vld [vmem:[#allocation4 + $0x194] sm:$0xf]  ;;  %v4650_v56 = vor.u32 %v6461_v48, %v4647_v49  ;;  %v4871_v35 = vld [vmem:[#allocation4 + $0x2d8] sm:$0xf0]  ;;  %v4810_v41 = vor.u32 %v6501_v31, %v4807_v32  ;;  %v4799_v48 = vld [vmem:[#allocation4 + $0x248] sm:$0xf0] }
  0x99   :  { %1261 = vmatpush.bf16.msra.mxu3 %v4754_v54  ;;  %v4511_v54 = vld [vmem:[#allocation4 + $0x8] sm:$0xf0]  ;;  %v6517_v33 = vld [vmem:[#allocation4 + $0x2d4] sm:$0xf]  ;;  %v4999_v40 = vld [vmem:[#allocation4 + $0x3d8] sm:$0xf0] }
  0x9a   :  { %1220 = vmatpush.bf16.msra.mxu0 %v4554_v61  ;;  %v4714_v61 = vor.u32 %v6477_v50, %v4711_v51  ;;  %v4514_v5 = vor.u32 %v6427_v53, %v4511_v54  ;;  %v4874_v42 = vor.u32 %v6517_v33, %v4871_v35  ;;  %v4863_v50 = vld [vmem:[#allocation4 + $0x2c8] sm:$0xf0]  ;;  %v6531_v51 = vld [vmem:[#allocation4 + $0x344] sm:$0xf]  ;;  %v6513_v57 = vld [vmem:[#allocation4 + $0x2b4] sm:$0xf] }
  0x9b   :  { %1234 = vmatpush.bf16.msra.mxu1 %v4618_v62  ;;  %v4639_v62 = vld [vmem:[#allocation4 + $0x108] sm:$0xf0]  ;;  %v6547_v53 = vld [vmem:[#allocation4 + $0x3c4] sm:$0xf]  ;;  %v6493_v19 = vld [vmem:[#allocation4 + $0x214] sm:$0xf] }
  0x9c   :  { %1248 = vmatpush.bf16.msra.mxu2 %v4682_v63  ;;  %v6475_v63 = vld [vmem:[#allocation4 + $0x184] sm:$0xf]  ;;  %v4775_v20 = vld [vmem:[#allocation4 + $0x218] sm:$0xf0]  ;;  %v6509_v21 = vld [vmem:[#allocation4 + $0x294] sm:$0xf] }
  0x9d   :  { %1262 = vmatpush.bf16.msra.mxu3 %v4746_v4  ;;  %v6521_v4 = vld [vmem:[#allocation4 + $0x2f4] sm:$0xf]  ;;  %v4706_v14 = vor.u32 %v6475_v63, %v4703_v0  ;;  %v4983_v0 = vld [vmem:[#allocation4 + $0x3b8] sm:$0xf0]  ;;  %v6491_v31 = vld [vmem:[#allocation4 + $0x204] sm:$0xf] }
  0x9e   :  { %1221 = vmatpush.bf16.msra.mxu0 %v4546_v11  ;;  %v4642_v11 = vor.u32 %v6459_v60, %v4639_v62  ;;  %v4890_v16 = vor.u32 %v6521_v4, %v4887_v6  ;;  %v4855_v60 = vld [vmem:[#allocation4 + $0x2b8] sm:$0xf0]  ;;  %v6545_v63 = vld [vmem:[#allocation4 + $0x3b4] sm:$0xf]  ;;  %v4783_v6 = vld [vmem:[#allocation4 + $0x228] sm:$0xf0] }
  0x9f   :  { %1235 = vmatpush.bf16.msra.mxu1 %v4610_v12  ;;  %v6553_v12 = vld [vmem:[#allocation4 + $0x3f4] sm:$0xf]  ;;  %v4919_v62 = vld [vmem:[#allocation4 + $0x338] sm:$0xf0]  ;;  %v4858_v3 = vor.u32 %v6513_v57, %v4855_v60  ;;  %v4767_v32 = vld [vmem:[#allocation4 + $0x208] sm:$0xf0] }
  0xa0   :  { %1249 = vmatpush.bf16.msra.mxu2 %v4674_v13  ;;  %v5015_v13 = vld [vmem:[#allocation4 + $0x3f8] sm:$0xf0]  ;;  %v6507_v33 = vld [vmem:[#allocation4 + $0x284] sm:$0xf]  ;;  %v4831_v35 = vld [vmem:[#allocation4 + $0x288] sm:$0xf0] }
  0xa1   :  { %1263 = vmatpush.bf16.msra.mxu3 %v4738_v18  ;;  %v4954_v18 = vor.u32 %v6537_v7, %v4951_v8  ;;  %v5018_v22 = vor.u32 %v6553_v12, %v5015_v13  ;;  %v6511_v7 = vld [vmem:[#allocation4 + $0x2a4] sm:$0xf]  ;;  %v4986_v8 = vor.u32 %v6545_v63, %v4983_v0  ;;  %v4911_v12 = vld [vmem:[#allocation4 + $0x328] sm:$0xf0]  ;;  %v4839_v23 = vld [vmem:[#allocation4 + $0x298] sm:$0xf0] }
  0xa2   :  { %1222 = vmatpush.bf16.msra.mxu0 %v4538_v24  ;;  %v6535_v24 = vld [vmem:[#allocation4 + $0x364] sm:$0xf]  ;;  %v6564_v60 = vld [vmem:[%s7912_s3 + $0x44] sm:$0xf0]  ;;  %v5055_v63 = vld [vmem:[%s7912_s3 + $0x48] sm:$0xf0] }
  0xa3   :  { %1236 = vmatpush.bf16.msra.mxu1 %v4602_v25  ;;  %v4943_v25 = vld [vmem:[#allocation4 + $0x368] sm:$0xf0]  ;;  %v6543_v13 = vld [vmem:[#allocation4 + $0x3a4] sm:$0xf] }
  0xa4   :  { %1250 = vmatpush.bf16.msra.mxu2 %v4666_v26  ;;  %v6551_v26 = vld [vmem:[#allocation4 + $0x3e4] sm:$0xf] }
  0xa5   :  { %1264 = vmatpush.bf16.msra.mxu3 %v4730_v30  ;;  %v4946_v30 = vor.u32 %v6535_v24, %v4943_v25  ;;  %v5010_v34 = vor.u32 %v6551_v26, %v5007_v27  ;;  %v6525_v24 = vld [vmem:[#allocation4 + $0x314] sm:$0xf]  ;;  %v4903_v25 = vld [vmem:[#allocation4 + $0x318] sm:$0xf0] }
  0xa6   :  { %1223 = vmatpush.bf16.msra.mxu0 %v4530_v36  ;;  %v6533_v36 = vld [vmem:[#allocation4 + $0x354] sm:$0xf]  ;;  %v4967_v27 = vld [vmem:[#allocation4 + $0x398] sm:$0xf0] }
  0xa7   :  { %1237 = vmatpush.bf16.msra.mxu1 %v4594_v37  ;;  %v4935_v37 = vld [vmem:[#allocation4 + $0x358] sm:$0xf0]  ;;  %v6541_v26 = vld [vmem:[#allocation4 + $0x394] sm:$0xf] }
  0xa8   :  { %1251 = vmatpush.bf16.msra.mxu2 %v4658_v38  ;;  %v6549_v38 = vld [vmem:[#allocation4 + $0x3d4] sm:$0xf] }
  0xa9   :  { %1265 = vmatpush.bf16.msra.mxu3 %v4722_v45  ;;  %v4938_v45 = vor.u32 %v6533_v36, %v4935_v37  ;;  %v5002_v49 = vor.u32 %v6549_v38, %v4999_v40  ;;  %v6523_v36 = vld [vmem:[#allocation4 + $0x304] sm:$0xf]  ;;  %v4895_v37 = vld [vmem:[#allocation4 + $0x308] sm:$0xf0] }
  0xaa   :  { %1224 = vmatpush.bf16.msra.mxu0 %v4522_v52  ;;  %v4927_v52 = vld [vmem:[#allocation4 + $0x348] sm:$0xf0]  ;;  %v6539_v38 = vld [vmem:[#allocation4 + $0x384] sm:$0xf] }
  0xab   :  { %1238 = vmatpush.bf16.msra.mxu1 %v4586_v55  ;;  %v6497_v55 = vld [vmem:[#allocation4 + $0x234] sm:$0xf]  ;;  %v4959_v40 = vld [vmem:[#allocation4 + $0x388] sm:$0xf0] }
  0xac   :  { %1252 = vmatpush.bf16.msra.mxu2 %v4650_v56  ;;  %v4791_v56 = vld [vmem:[#allocation4 + $0x238] sm:$0xf0] }
  0xad   :  { %1266 = vmatpush.bf16.msra.mxu3 %v4714_v61  ;;  %v6529_v61 = vld [vmem:[#allocation4 + $0x334] sm:$0xf]  ;;  %v4794_v2 = vor.u32 %v6497_v55, %v4791_v56  ;;  %v5063_v56 = vld [vmem:[%s7912_s3 + $0x58] sm:$0xf0] }
  0xae   :  { %1225 = vmatpush.bf16.msra.mxu0 %v4514_v5  ;;  %v4922_v4 = vor.u32 %v6529_v61, %v4919_v62  ;;  %v6495_v5 = vld [vmem:[#allocation4 + $0x224] sm:$0xf] }
  0xaf   :  { %1239 = vmatpush.bf16.msra.mxu1 %v4578_v9  ;;  %v4847_v9 = vld [vmem:[#allocation4 + $0x2a8] sm:$0xf0]  ;;  %v6563_v61 = vld [vmem:[%s7912_s3 + $0x44] sm:$0xf] }
  0xb0   :  { %1253 = vmatpush.bf16.msra.mxu2 %v4642_v11  ;;  %v6527_v11 = vld [vmem:[#allocation4 + $0x324] sm:$0xf]  ;;  %v5058_v0 = vor.u32 %v6563_v61, %v5055_v63  ;;  %v5133_v63 = vld [vmem:[%s7912_s3 + $0xe0] sm:$0xf] }
  0xb1   :  { %1267 = vmatpush.bf16.msra.mxu3 %v4706_v14  ;;  %1226 = vmatmul.bf16.vlgmr.msra.gmra.mxu0 %v7550_v58  ;;  %v4991_v58 = vld [vmem:[#allocation4 + $0x3c8] sm:$0xf0] }
  0xb2   :  { %1274 = vmatpush.bf16.msrb.mxu0 %v4826_v15  ;;  %1240 = vmatmul.bf16.vlgmr.msra.gmra.mxu1 %v7568_v10  ;;  %v4930_v10 = vor.u32 %v6531_v51, %v4927_v52  ;;  %v4994_v59 = vor.u32 %v6547_v53, %v4991_v58  ;;  %v4975_v14 = vld [vmem:[#allocation4 + $0x3a8] sm:$0xf0]  ;;  %v4786_v15 = vor.u32 %v6495_v5, %v4783_v6  ;;  %v6567_v51 = vld [vmem:[%s7912_s3 + $0x64] sm:$0xf]  ;;  %v5047_v6 = vld [vmem:[%s7912_s3 + $0x38] sm:$0xf0] }
  0xb3   :  { %1288 = vmatpush.bf16.msrb.mxu1 %v4890_v16  ;;  %1254 = vmatmul.bf16.vlgmr.msra.gmra.mxu2 %v7555_v1  ;;  %v6515_v1 = vld [vmem:[#allocation4 + $0x2c4] sm:$0xf]  ;;  %v4850_v16 = vor.u32 %v6511_v7, %v4847_v9  ;;  %v5071_v52 = vld [vmem:[%s7912_s3 + $0x68] sm:$0xf0] }
  0xb4   :  { %1302 = vmatpush.bf16.msrb.mxu2 %v4954_v18  ;;  %1268 = vmatmul.bf16.vlgmr.msra.gmra.mxu3 %v7573_v17  ;;  %v4802_v17 = vor.u32 %v6499_v46, %v4799_v48  ;;  %v4866_v54 = vor.u32 %v6515_v1, %v4863_v50  ;;  %v4914_v18 = vor.u32 %v6527_v11, %v4911_v12  ;;  %v5077_v48 = vld [vmem:[%s7912_s3 + $0x70] sm:$0xf]  ;;  %v6570_v1 = vld [vmem:[%s7912_s3 + $0x74] sm:$0xf0]  ;;  %v5037_v12 = vld [vmem:[%s7912_s3 + $0x20] sm:$0xf] }
  0xb5   :  { %1316 = vmatpush.bf16.msrb.mxu3 %v5018_v22  ;;  %v4978_v22 = vor.u32 %v6543_v13, %v4975_v14  ;;  %v4962_v46 = vor.u32 %v6539_v38, %v4959_v40  ;;  %v5078_v50 = vor.u32 %v6570_v1, %v5077_v48  ;;  %v5074_v58 = vor.u32 %v6567_v51, %v5071_v52  ;;  %v7681_v7 = vld [vmem:[#allocation2] ss:$8 sm:$0x3]  ;;  %v6559_v14 = vld [vmem:[%s7912_s3 + $0x24] sm:$0xf] }
  0xb6   :  { %1275 = vmatpush.bf16.msrb.mxu0 %v4818_v28  ;;  %v4778_v28 = vor.u32 %v6493_v19, %v4775_v20  ;;  %v6560_v13 = vld [vmem:[%s7912_s3 + $0x24] sm:$0xf0]  ;;  %v5029_v20 = vld [vmem:[%s7912_s3 + $0x10] sm:$0xf] }
  0xb7   :  { %1289 = vmatpush.bf16.msrb.mxu1 %v4882_v29  ;;  %v4842_v29 = vor.u32 %v6509_v21, %v4839_v23  ;;  %v6558_v21 = vld [vmem:[%s7912_s3 + $0x14] sm:$0xf0] }
  0xb8   :  { %1303 = vmatpush.bf16.msrb.mxu2 %v4946_v30  ;;  %v4906_v30 = vor.u32 %v6525_v24, %v4903_v25  ;;  %v5030_v24 = vor.u32 %v6558_v21, %v5029_v20  ;;  %v5031_v25 = vld [vmem:[%s7912_s3 + $0x18] sm:$0xf0] }
  0xb9   :  { %1317 = vmatpush.bf16.msrb.mxu3 %v5010_v34  ;;  %v4970_v34 = vor.u32 %v6541_v26, %v4967_v27  ;;  %v5127_v20 = vld [vmem:[%s7912_s3 + $0xd8] sm:$0xf0] }
  0xba   :  { %1276 = vmatpush.bf16.msrb.mxu0 %v4810_v41  ;;  %v4770_v41 = vor.u32 %v6491_v31, %v4767_v32  ;;  %v6555_v31 = vld [vmem:[%s7912_s3 + $0x4] sm:$0xf] }
  0xbb   :  { %1290 = vmatpush.bf16.msrb.mxu1 %v4874_v42  ;;  %v4834_v42 = vor.u32 %v6507_v33, %v4831_v35  ;;  %v5023_v35 = vld [vmem:[%s7912_s3 + $0x8] sm:$0xf0] }
  0xbc   :  { %1304 = vmatpush.bf16.msrb.mxu2 %v4938_v45  ;;  %v4898_v45 = vor.u32 %v6523_v36, %v4895_v37  ;;  %v5026_v37 = vor.u32 %v6555_v31, %v5023_v35  ;;  %v6576_v35 = vld [vmem:[%s7912_s3 + $0xa4] sm:$0xf0] }
  0xbd   :  { %1318 = vmatpush.bf16.msrb.mxu3 %v5002_v49  ;;  %v6569_v49 = vld [vmem:[%s7912_s3 + $0x74] sm:$0xf] }
  0xbe   :  { %1277 = vmatpush.bf16.msrb.mxu0 %v4802_v17  ;;  %v5061_v17 = vld [vmem:[%s7912_s3 + $0x50] sm:$0xf] }
  0xbf   :  { %1291 = vmatpush.bf16.msrb.mxu1 %v4866_v54  ;;  %v6566_v54 = vld [vmem:[%s7912_s3 + $0x54] sm:$0xf0] }
  0xc0   :  { %1305 = vmatpush.bf16.msrb.mxu2 %v4930_v10  ;;  %v6565_v10 = vld [vmem:[%s7912_s3 + $0x54] sm:$0xf]  ;;  %v5062_v55 = vor.u32 %v6566_v54, %v5061_v17 }
  0xc1   :  { %1319 = vmatpush.bf16.msrb.mxu3 %v4994_v59  ;;  %v5066_v57 = vor.u32 %v6565_v10, %v5063_v56  ;;  %v5053_v59 = vld [vmem:[%s7912_s3 + $0x40] sm:$0xf]  ;;  %v6586_v56 = vld [vmem:[%s7912_s3 + $0xf4] sm:$0xf0] }
  0xc2   :  { %1278 = vmatpush.bf16.msrb.mxu0 %v4794_v2  ;;  %v5054_v62 = vor.u32 %v6564_v60, %v5053_v59  ;;  %v5045_v2 = vld [vmem:[%s7912_s3 + $0x30] sm:$0xf] }
  0xc3   :  { %1292 = vmatpush.bf16.msrb.mxu1 %v4858_v3  ;;  %v6562_v3 = vld [vmem:[%s7912_s3 + $0x34] sm:$0xf0] }
  0xc4   :  { %1306 = vmatpush.bf16.msrb.mxu2 %v4922_v4  ;;  %v6561_v4 = vld [vmem:[%s7912_s3 + $0x34] sm:$0xf]  ;;  %v5046_v5 = vor.u32 %v6562_v3, %v5045_v2  ;;  %v6583_v3 = vld [vmem:[%s7912_s3 + $0xe4] sm:$0xf] }
  0xc5   :  { %1320 = vmatpush.bf16.msrb.mxu3 %v4986_v8  ;;  %v5050_v8 = vor.u32 %v6561_v4, %v5047_v6  ;;  %v5135_v4 = vld [vmem:[%s7912_s3 + $0xe8] sm:$0xf0] }
  0xc6   :  { %1279 = vmatpush.bf16.msrb.mxu0 %v4786_v15  ;;  %v462_v15 = vperm.slane %v7681_v7, 0 }
  0xc7   :  { %1293 = vmatpush.bf16.msrb.mxu1 %v4850_v16  ;;  %v5038_v16 = vor.u32 %v6560_v13, %v5037_v12 }
  0xc8   :  { %1307 = vmatpush.bf16.msrb.mxu2 %v4914_v18  ;;  %v5039_v18 = vld [vmem:[%s7912_s3 + $0x28] sm:$0xf0] }
  0xc9   :  { %1321 = vmatpush.bf16.msrb.mxu3 %v4978_v22  ;;  %v5042_v19 = vor.u32 %v6559_v14, %v5039_v18  ;;  %v6557_v22 = vld [vmem:[%s7912_s3 + $0x14] sm:$0xf] }
  0xca   :  { %1280 = vmatpush.bf16.msrb.mxu0 %v4778_v28  ;;  %v5034_v27 = vor.u32 %v6557_v22, %v5031_v25  ;;  %v6581_v18 = vld [vmem:[%s7912_s3 + $0xd4] sm:$0xf]  ;;  %v5117_v22 = vld [vmem:[%s7912_s3 + $0xc0] sm:$0xf] }
  0xcb   :  { %1294 = vmatpush.bf16.msrb.mxu1 %v4842_v29  ;;  %v5021_v29 = vld [vmem:[%s7912_s3] sm:$0xf]  ;;  %v5130_v21 = vor.u32 %v6581_v18, %v5127_v20 }
  0xcc   :  { %1308 = vmatpush.bf16.msrb.mxu2 %v4906_v30  ;;  %v6556_v30 = vld [vmem:[%s7912_s3 + $0x4] sm:$0xf0] }
  0xcd   :  { %1322 = vmatpush.bf16.msrb.mxu3 %v4970_v34  ;;  %v5022_v34 = vor.u32 %v6556_v30, %v5021_v29  ;;  %v6578_v29 = vld [vmem:[%s7912_s3 + $0xb4] sm:$0xf0]  ;;  %v6577_v30 = vld [vmem:[%s7912_s3 + $0xb4] sm:$0xf] }
  0xce   :  { %1281 = vmatpush.bf16.msrb.mxu0 %v4770_v41 }
  0xcf   :  { %1295 = vmatpush.bf16.msrb.mxu1 %v4834_v42 }
  0xd0   :  { %1309 = vmatpush.bf16.msrb.mxu2 %v4898_v45 }
  0xd1   :  { %1323 = vmatpush.bf16.msrb.mxu3 %v4962_v46  ;;  %1282 = vmatmul.bf16.vlgmr.msrb.gmra.mxu0 %v7601_v39  ;;  %v5079_v39 = vld [vmem:[%s7912_s3 + $0x78] sm:$0xf0] }
  0xd2   :  { %1296 = vmatmul.bf16.vlgmr.msrb.gmra.mxu1 %v7605_v44  ;;  %v6568_v44 = vld [vmem:[%s7912_s3 + $0x64] sm:$0xf0]  ;;  %1543 = vmatpush.bf16.msra.mxu0 %v5078_v50 }
  0xd3   :  { %1310 = vmatmul.bf16.vlgmr.msrb.gmra.mxu2 %v7603_v43  ;;  %v5069_v43 = vld [vmem:[%s7912_s3 + $0x60] sm:$0xf] }
  0xd4   :  { %1324 = vmatmul.bf16.vlgmr.msrb.gmra.mxu3 %v7607_v47  ;;  %v5082_v47 = vor.u32 %v6569_v49, %v5079_v39  ;;  %v5070_v53 = vor.u32 %v6568_v44, %v5069_v43 }
  0xd6   :  { %1571 = vmatpush.bf16.msra.mxu2 %v5082_v47  ;;  %1544 = vmatpush.bf16.msra.mxu0 %v5070_v53 }
  0xda   :  { %1572 = vmatpush.bf16.msra.mxu2 %v5074_v58  ;;  %1545 = vmatpush.bf16.msra.mxu0 %v5062_v55  ;;  %v5141_v55 = vld [vmem:[%s7912_s3 + $0xf0] sm:$0xf] }
  0xdb   :  { %v5142_v61 = vor.u32 %v6586_v56, %v5141_v55 }
  0xdd   :  { %1557 = vmatpush.bf16.msra.mxu1 %v5142_v61 }
  0xde   :  { %1573 = vmatpush.bf16.msra.mxu2 %v5066_v57  ;;  %1546 = vmatpush.bf16.msra.mxu0 %v5054_v62  ;;  %v6585_v57 = vld [vmem:[%s7912_s3 + $0xf4] sm:$0xf]  ;;  %v5143_v62 = vld [vmem:[%s7912_s3 + $0xf8] sm:$0xf0] }
  0xdf   :  { %v5146_v2 = vor.u32 %v6585_v57, %v5143_v62 }
  0xe1   :  { %1585 = vmatpush.bf16.msra.mxu3 %v5146_v2 }
  0xe2   :  { %1574 = vmatpush.bf16.msra.mxu2 %v5058_v0  ;;  %1547 = vmatpush.bf16.msra.mxu0 %v5046_v5  ;;  %v6584_v0 = vld [vmem:[%s7912_s3 + $0xe4] sm:$0xf0] }
  0xe6   :  { %1575 = vmatpush.bf16.msra.mxu2 %v5050_v8  ;;  %1548 = vmatpush.bf16.msra.mxu0 %v5038_v16  ;;  %v5134_v8 = vor.u32 %v6584_v0, %v5133_v63  ;;  %v6582_v16 = vld [vmem:[%s7912_s3 + $0xd4] sm:$0xf0] }
  0xe8   :  { %1558 = vmatpush.bf16.msra.mxu1 %v5134_v8 }
  0xea   :  { %1576 = vmatpush.bf16.msra.mxu2 %v5042_v19  ;;  %1549 = vmatpush.bf16.msra.mxu0 %v5030_v24  ;;  %v6579_v24 = vld [vmem:[%s7912_s3 + $0xc4] sm:$0xf] }
  0xee   :  { %1577 = vmatpush.bf16.msra.mxu2 %v5034_v27  ;;  %1550 = vmatpush.bf16.msra.mxu0 %v5022_v34  ;;  %v5101_v34 = vld [vmem:[%s7912_s3 + $0xa0] sm:$0xf] }
  0xef   :  { %v1129_v11 = vpop.f32.mrf.mxu1 }
  0xf0   :  { %v1115_v9 = vpop.f32.mrf.mxu0 }
  0xf1   :  { %v1116_v23 = vadd.f32 %v1115_v9, %v462_v15  ;;  %v5138_v9 = vor.u32 %v6583_v3, %v5135_v4 }
  0xf2   :  { %1578 = vmatpush.bf16.msra.mxu2 %v5026_v37  ;;  %v5102_v37 = vor.u32 %v6576_v35, %v5101_v34  ;;  %v6599_v34 = vld [vmem:[#allocation6 + $0x64] sm:$0xf]  ;;  %v5199_v35 = vld [vmem:[#allocation6 + $0x68] sm:$0xf0] }
  0xf3   :  { %v1130_v32 = vadd.f32 %v1129_v11, %v1116_v23  ;;  %1586 = vmatpush.bf16.msra.mxu3 %v5138_v9  ;;  %v6580_v23 = vld [vmem:[%s7912_s3 + $0xc4] sm:$0xf0] }
  0xf4   :  { %v5118_v25 = vor.u32 %v6580_v23, %v5117_v22 }
  0xf7   :  { %v1157_v28 = vpop.f32.mrf.mxu3  ;;  %v1131_v36 = vpop.f32.mrf.mxu1  ;;  %1587 = vmatpush.bf16.msra.mxu3 %v5130_v21 }
  0xf8   :  { %v1143_v26 = vpop.f32.mrf.mxu2  ;;  %v1117_v33 = vpop.f32.mrf.mxu0 }
  0xf9   :  { %v1144_v38 = vadd.f32 %v1143_v26, %v1130_v32  ;;  %v1118_v40 = vadd.f32 %v1117_v33, %v462_v15  ;;  %v5125_v15 = vld [vmem:[%s7912_s3 + $0xd0] sm:$0xf]  ;;  %v5119_v26 = vld [vmem:[%s7912_s3 + $0xc8] sm:$0xf0]  ;;  %v5111_v32 = vld [vmem:[%s7912_s3 + $0xb8] sm:$0xf0] }
  0xfa   :  { %v5126_v19 = vor.u32 %v6582_v16, %v5125_v15  ;;  %v5122_v27 = vor.u32 %v6579_v24, %v5119_v26  ;;  %v5114_v33 = vor.u32 %v6577_v30, %v5111_v32  ;;  %v5205_v26 = vld [vmem:[#allocation6 + $0x70] sm:$0xf]  ;;  %v5207_v30 = vld [vmem:[#allocation6 + $0x78] sm:$0xf0]  ;;  %v6600_v32 = vld [vmem:[#allocation6 + $0x64] sm:$0xf0] }
  0xfb   :  { %v1158_v42 = vadd.f32 %v1157_v28, %v1144_v38  ;;  %v1132_v45 = vadd.f32 %v1131_v36, %v1118_v40  ;;  %v5109_v28 = vld [vmem:[%s7912_s3 + $0xb0] sm:$0xf]  ;;  %v6575_v36 = vld [vmem:[%s7912_s3 + $0xa4] sm:$0xf]  ;;  %v5103_v38 = vld [vmem:[%s7912_s3 + $0xa8] sm:$0xf0] }
  0xfc   :  { %1559 = vmatpush.bf16.msra.mxu1 %v5126_v19  ;;  %1588 = vmatpush.bf16.msra.mxu3 %v5122_v27  ;;  %v5110_v31 = vor.u32 %v6578_v29, %v5109_v28  ;;  %v6602_v27 = vld [vmem:[#allocation6 + $0x74] sm:$0xf0]  ;;  %v6601_v28 = vld [vmem:[#allocation6 + $0x74] sm:$0xf] }
  0xfd   :  { %v5206_v29 = vor.u32 %v6602_v27, %v5205_v26  ;;  %v5239_v26 = vld [vmem:[#allocation6 + $0xb8] sm:$0xf0] }
  0xff   :  { %v1159_v46 = vpop.f32.mrf.mxu3  ;;  %1812 = vmatpush.bf16.msrb.mxu0 %v5206_v29  ;;  %v6590_v29 = vld [vmem:[#allocation6 + $0x14] sm:$0xf0] }
 0x100   :  { %v1145_v41 = vpop.f32.mrf.mxu2  ;;  %1560 = vmatpush.bf16.msra.mxu1 %v5118_v25  ;;  %1589 = vmatpush.bf16.msra.mxu3 %v5114_v33  ;;  %v5210_v33 = vor.u32 %v6601_v28, %v5207_v30  ;;  %v5157_v28 = vld [vmem:[#allocation6 + $0x10] sm:$0xf]  ;;  %v6589_v30 = vld [vmem:[#allocation6 + $0x14] sm:$0xf] }
 0x101   :  { %v1146_v49 = vadd.f32 %v1145_v41, %v1132_v45  ;;  %v5106_v41 = vor.u32 %v6575_v36, %v5103_v38  ;;  %v6574_v45 = vld [vmem:[%s7912_s3 + $0x94] sm:$0xf0]  ;;  %v5269_v36 = vld [vmem:[#allocation6 + $0xf0] sm:$0xf] }
 0x102   :  { %v6618_v38 = vld [vmem:[#allocation6 + $0xf4] sm:$0xf0]  ;;  %1840 = vmatpush.bf16.msrb.mxu2 %v5210_v33 }
 0x103   :  { %v1160_v39 = vadd.f32 %v1159_v46, %v1146_v49  ;;  %v6573_v46 = vld [vmem:[%s7912_s3 + $0x94] sm:$0xf]  ;;  %v5095_v49 = vld [vmem:[%s7912_s3 + $0x98] sm:$0xf0] }
 0x104   :  { %1561 = vmatpush.bf16.msra.mxu1 %v5110_v31  ;;  %1590 = vmatpush.bf16.msra.mxu3 %v5106_v41  ;;  %v5197_v31 = vld [vmem:[#allocation6 + $0x60] sm:$0xf]  ;;  %v5271_v41 = vld [vmem:[#allocation6 + $0xf8] sm:$0xf0] }
 0x108   :  { %1562 = vmatpush.bf16.msra.mxu1 %v5102_v37  ;;  %v5198_v37 = vor.u32 %v6600_v32, %v5197_v31  ;;  %v5158_v31 = vor.u32 %v6590_v29, %v5157_v28  ;;  %v5159_v32 = vld [vmem:[#allocation6 + $0x18] sm:$0xf0]  ;;  %v6623_v28 = vld [vmem:[#allocation7 + $0x20] sm:$0xff]  ;;  %v6632_v29 = vld [vmem:[#allocation7 + $0x68] sm:$0xff] }
 0x109   :  { %v5162_v33 = vor.u32 %v6589_v30, %v5159_v32  ;;  %v6622_v30 = vld [vmem:[#allocation7 + $0x18] sm:$0xff]  ;;  %v6621_v32 = vld [vmem:[#allocation7 + $0x10] sm:$0xff] }
 0x10a   :  { %1813 = vmatpush.bf16.msrb.mxu0 %v5198_v37 }
 0x10e   :  { %v1171_v48 = vpop.f32.mrf.mxu0 }
 0x10f   :  { %v1185_v1 = vpop.f32.mrf.mxu1  ;;  %v1172_v50 = vadd.f32 %v1171_v48, %v1158_v42  ;;  %v5093_v42 = vld [vmem:[%s7912_s3 + $0x90] sm:$0xf] }
 0x111   :  { %v1186_v43 = vadd.f32 %v1185_v1, %v1172_v50  ;;  %v5094_v1 = vor.u32 %v6574_v45, %v5093_v42  ;;  %v463_v50 = vperm.slane %v7681_v7, 1  ;;  %v5087_v7 = vld [vmem:[%s7912_s3 + $0x88] sm:$0xf0]  ;;  %v5202_v42 = vor.u32 %v6599_v34, %v5199_v35  ;;  %v5229_v34 = vld [vmem:[#allocation6 + $0xa0] sm:$0xf] }
 0x112   :  { %v5270_v45 = vor.u32 %v6618_v38, %v5269_v36  ;;  %v6608_v35 = vld [vmem:[#allocation6 + $0xa4] sm:$0xf0]  ;;  %v6607_v36 = vld [vmem:[#allocation6 + $0xa4] sm:$0xf]  ;;  %v5231_v38 = vld [vmem:[#allocation6 + $0xa8] sm:$0xf0] }
 0x113   :  { %1563 = vmatpush.bf16.msra.mxu1 %v5094_v1  ;;  %v6598_v1 = vld [vmem:[#allocation6 + $0x54] sm:$0xf0]  ;;  %1841 = vmatpush.bf16.msrb.mxu2 %v5202_v42  ;;  %v5230_v37 = vor.u32 %v6608_v35, %v5229_v34  ;;  %v6588_v42 = vld [vmem:[#allocation6 + $0x4] sm:$0xf0]  ;;  %v6629_v35 = vld [vmem:[#allocation7 + $0x50] sm:$0xff] }
 0x114   :  { %v6620_v34 = vld [vmem:[#allocation7 + $0x8] sm:$0xff] }
 0x116   :  { %v1199_v44 = vpop.f32.mrf.mxu2  ;;  %v1173_v47 = vpop.f32.mrf.mxu0 }
 0x117   :  { %v1213_v51 = vpop.f32.mrf.mxu3  ;;  %v1200_v52 = vadd.f32 %v1199_v44, %v1186_v43  ;;  %v1174_v53 = vadd.f32 %v1173_v47, %v1160_v39  ;;  %v1187_v58 = vpop.f32.mrf.mxu1  ;;  %v5098_v39 = vor.u32 %v6573_v46, %v5095_v49  ;;  %v5085_v43 = vld [vmem:[%s7912_s3 + $0x80] sm:$0xf]  ;;  %v6572_v44 = vld [vmem:[%s7912_s3 + $0x84] sm:$0xf0]  ;;  %v6571_v47 = vld [vmem:[%s7912_s3 + $0x84] sm:$0xf] }
 0x118   :  { %v6597_v49 = vld [vmem:[#allocation6 + $0x54] sm:$0xf] }
 0x119   :  { %v1214_v17 = vadd.f32 %v1213_v51, %v1200_v52  ;;  %v1188_v54 = vadd.f32 %v1187_v58, %v1174_v53  ;;  %1591 = vmatpush.bf16.msra.mxu3 %v5098_v39  ;;  %v5086_v52 = vor.u32 %v6572_v44, %v5085_v43  ;;  %v5261_v39 = vld [vmem:[#allocation6 + $0xe0] sm:$0xf]  ;;  %v6616_v43 = vld [vmem:[#allocation6 + $0xe4] sm:$0xf0] }
 0x11a   :  { %v5262_v44 = vor.u32 %v6616_v43, %v5261_v39  ;;  %v6605_v39 = vld [vmem:[#allocation6 + $0x94] sm:$0xf] }
 0x11b   :  { %v1334_v5 = vmul.f32 0.01, %v1214_v17  ;;  %vm1330_vm0 = vcmp.ge.f32.partialorder %v1214_v17, 0.0  ;;  %1564 = vmatpush.bf16.msra.mxu1 %v5086_v52 }
 0x11d   :  { %v1338_v12 = vsel %vm1330_vm0, %v1214_v17, %v1334_v5  ;;  %v5090_v17 = vor.u32 %v6571_v47, %v5087_v7  ;;  %v6615_v47 = vld [vmem:[#allocation6 + $0xe4] sm:$0xf] }
 0x11e   :  { %v1201_v10 = vpop.f32.mrf.mxu2 }
 0x11f   :  { %v1202_v59 = vadd.f32 %v1201_v10, %v1188_v54  ;;  %v1215_v60 = vpop.f32.mrf.mxu3  ;;  %1592 = vmatpush.bf16.msra.mxu3 %v5090_v17  ;;  %1826 = vmatpush.bf16.msrb.mxu1 %v5270_v45  ;;  %v6587_v45 = vld [vmem:[#allocation6 + $0x4] sm:$0xf] }
 0x121   :  { %v1216_v6 = vadd.f32 %v1215_v60, %v1202_v59 }
 0x123   :  { %vm1332_vm1 = vcmp.ge.f32.partialorder %v1216_v6, 0.0  ;;  %v1336_v11 = vmul.f32 0.01, %v1216_v6  ;;  %1827 = vmatpush.bf16.msrb.mxu1 %v5262_v44  ;;  %v5223_v44 = vld [vmem:[#allocation6 + $0x98] sm:$0xf0] }
 0x125   :  { %v1340_v13 = vsel %vm1332_vm1, %v1216_v6, %v1336_v11 }
 0x126   :  { %v1342_v14 = vpack.c.bf16 %v1340_v13, %v1338_v12 }
 0x128   :  { %1551 = vmatmul.bf16.vlgmr.msra.gmra.mxu0 %v1342_v14  ;;  %1579 = vmatmul.bf16.vlgmr.msra.gmra.mxu2 %v1342_v14 }
 0x12e   :  { %v1227_v40 = vpop.f32.mrf.mxu0 }
 0x12f   :  { %v1241_v48 = vpop.f32.mrf.mxu1  ;;  %v1228_v53 = vadd.f32 %v1227_v40, %v463_v50  ;;  %v6617_v40 = vld [vmem:[#allocation6 + $0xf4] sm:$0xf] }
 0x130   :  { %v5274_v46 = vor.u32 %v6617_v40, %v5271_v41  ;;  %v5234_v40 = vor.u32 %v6607_v36, %v5231_v38  ;;  %v5149_v41 = vld [vmem:[#allocation6] sm:$0xf] }
 0x131   :  { %v1242_v10 = vadd.f32 %v1241_v48, %v1228_v53  ;;  %v5189_v48 = vld [vmem:[#allocation6 + $0x50] sm:$0xf]  ;;  %v5181_v53 = vld [vmem:[#allocation6 + $0x40] sm:$0xf] }
 0x132   :  { %1854 = vmatpush.bf16.msrb.mxu3 %v5274_v46  ;;  %v5190_v52 = vor.u32 %v6598_v1, %v5189_v48  ;;  %v5150_v46 = vor.u32 %v6588_v42, %v5149_v41  ;;  %v5151_v48 = vld [vmem:[#allocation6 + $0x8] sm:$0xf0]  ;;  %v6619_v36 = vld [vmem:[#allocation7] sm:$0xff]  ;;  %v6641_v41 = vld [vmem:[#allocation9 + $0x30] sm:$0xff] }
 0x133   :  { %v5154_v1 = vor.u32 %v6587_v45, %v5151_v48  ;;  %v6627_v38 = vld [vmem:[#allocation7 + $0x40] sm:$0xff] }
 0x134   :  { %1814 = vmatpush.bf16.msrb.mxu0 %v5190_v52  ;;  %v6604_v52 = vld [vmem:[#allocation6 + $0x84] sm:$0xf0] }
 0x135   :  { %v1646_v45 = vld [vmem:[#allocation2 + $0x2] ss:$8 sm:$0x3] }
 0x136   :  { %v1255_v51 = vpop.f32.mrf.mxu2  ;;  %v1229_v54 = vpop.f32.mrf.mxu0  ;;  %v1648_v48 = vperm.slane %v1646_v45, 0 }
 0x137   :  { %v1269_v58 = vpop.f32.mrf.mxu3  ;;  %v1243_v55 = vpop.f32.mrf.mxu1  ;;  %v1230_v56 = vadd.f32 %v1229_v54, %v463_v50  ;;  %v1256_v57 = vadd.f32 %v1255_v51, %v1242_v10  ;;  %v5191_v50 = vld [vmem:[#allocation6 + $0x58] sm:$0xf0]  ;;  %v5263_v51 = vld [vmem:[#allocation6 + $0xe8] sm:$0xf0]  ;;  %v5253_v54 = vld [vmem:[#allocation6 + $0xd0] sm:$0xf] }
 0x138   :  { %v5266_v7 = vor.u32 %v6615_v47, %v5263_v51  ;;  %v5194_v17 = vor.u32 %v6597_v49, %v5191_v50  ;;  %v6614_v10 = vld [vmem:[#allocation6 + $0xd4] sm:$0xf0]  ;;  %v5221_v49 = vld [vmem:[#allocation6 + $0x90] sm:$0xf]  ;;  %v5226_v47 = vor.u32 %v6605_v39, %v5223_v44  ;;  %v5213_v51 = vld [vmem:[#allocation6 + $0x80] sm:$0xf] }
 0x139   :  { %v1244_v60 = vadd.f32 %v1243_v55, %v1230_v56  ;;  %v1270_v63 = vadd.f32 %v1269_v58, %v1256_v57  ;;  %v6596_v58 = vld [vmem:[#allocation6 + $0x44] sm:$0xf0]  ;;  %v6613_v55 = vld [vmem:[#allocation6 + $0xd4] sm:$0xf]  ;;  %v6595_v56 = vld [vmem:[#allocation6 + $0x44] sm:$0xf] }
 0x13a   :  { %v5183_v57 = vld [vmem:[#allocation6 + $0x48] sm:$0xf0]  ;;  %1855 = vmatpush.bf16.msrb.mxu3 %v5266_v7  ;;  %1842 = vmatpush.bf16.msrb.mxu2 %v5194_v17  ;;  %v6606_v50 = vld [vmem:[#allocation6 + $0x94] sm:$0xf0]  ;;  %v6603_v7 = vld [vmem:[#allocation6 + $0x84] sm:$0xf] }
 0x13b   :  { %v5222_v43 = vor.u32 %v6606_v50, %v5221_v49  ;;  %v1649_v44 = vperm.slane %v1646_v45, 1 }
 0x13e   :  { %v1257_v59 = vpop.f32.mrf.mxu2 }
 0x13f   :  { %v1271_v61 = vpop.f32.mrf.mxu3  ;;  %v1258_v2 = vadd.f32 %v1257_v59, %v1244_v60  ;;  %v5255_v59 = vld [vmem:[#allocation6 + $0xd8] sm:$0xf0]  ;;  %v5254_v60 = vor.u32 %v6614_v10, %v5253_v54 }
 0x140   :  { %v6626_v54 = vld [vmem:[#allocation7 + $0x38] sm:$0xff] }
 0x141   :  { %v1272_v5 = vadd.f32 %v1271_v61, %v1258_v2  ;;  %v5258_v61 = vor.u32 %v6613_v55, %v5255_v59  ;;  %1828 = vmatpush.bf16.msrb.mxu1 %v5254_v60  ;;  %v6594_v2 = vld [vmem:[#allocation6 + $0x34] sm:$0xf0]  ;;  %v6625_v55 = vld [vmem:[#allocation7 + $0x30] sm:$0xff]  ;;  %v6624_v59 = vld [vmem:[#allocation7 + $0x28] sm:$0xff] }
 0x142   :  { %v6634_v10 = vld [vmem:[#allocation7 + $0x78] sm:$0xff] }
 0x143   :  { %1856 = vmatpush.bf16.msrb.mxu3 %v5258_v61 }
 0x14e   :  { %v1283_v62 = vpop.f32.mrf.mxu0 }
 0x14f   :  { %v1297_v0 = vpop.f32.mrf.mxu1  ;;  %v1284_v3 = vadd.f32 %v1283_v62, %v1270_v63  ;;  %v5182_v62 = vor.u32 %v6596_v58, %v5181_v53  ;;  %v5186_v63 = vor.u32 %v6595_v56, %v5183_v57  ;;  %v5214_v53 = vor.u32 %v6604_v52, %v5213_v51  ;;  %v5215_v58 = vld [vmem:[#allocation6 + $0x88] sm:$0xf0]  ;;  %v1377_v57 = vld [vmem:[#allocation2 + $0x1] ss:$8 sm:$0x3] }
 0x150   :  { %v5218_v17 = vor.u32 %v6603_v7, %v5215_v58  ;;  %v1379_v60 = vperm.slane %v1377_v57, 0 }
 0x151   :  { %v1298_v6 = vadd.f32 %v1297_v0, %v1284_v3  ;;  %1815 = vmatpush.bf16.msrb.mxu0 %v5182_v62  ;;  %1843 = vmatpush.bf16.msrb.mxu2 %v5186_v63  ;;  %v5173_v0 = vld [vmem:[#allocation6 + $0x30] sm:$0xf]  ;;  %v6593_v3 = vld [vmem:[#allocation6 + $0x34] sm:$0xf] }
 0x156   :  { %v1311_v4 = vpop.f32.mrf.mxu2  ;;  %v1285_v9 = vpop.f32.mrf.mxu0 }
 0x157   :  { %v1325_v8 = vpop.f32.mrf.mxu3  ;;  %v1312_v11 = vadd.f32 %v1311_v4, %v1298_v6  ;;  %v1286_v12 = vadd.f32 %v1285_v9, %v1272_v5  ;;  %v1299_v13 = vpop.f32.mrf.mxu1  ;;  %v5174_v4 = vor.u32 %v6594_v2, %v5173_v0  ;;  %v5175_v5 = vld [vmem:[#allocation6 + $0x38] sm:$0xf0]  ;;  %v6612_v9 = vld [vmem:[#allocation6 + $0xc4] sm:$0xf0]  ;;  %v1380_v2 = vperm.slane %v1377_v57, 1 }
 0x158   :  { %v5178_v6 = vor.u32 %v6593_v3, %v5175_v5 }
 0x159   :  { %v1326_v14 = vadd.f32 %v1325_v8, %v1312_v11  ;;  %v1300_v15 = vadd.f32 %v1299_v13, %v1286_v12  ;;  %v5245_v8 = vld [vmem:[#allocation6 + $0xc0] sm:$0xf]  ;;  %v6611_v11 = vld [vmem:[#allocation6 + $0xc4] sm:$0xf]  ;;  %1816 = vmatpush.bf16.msrb.mxu0 %v5174_v4  ;;  %v5247_v13 = vld [vmem:[#allocation6 + $0xc8] sm:$0xf0] }
 0x15a   :  { %v5246_v12 = vor.u32 %v6612_v9, %v5245_v8  ;;  %1844 = vmatpush.bf16.msrb.mxu2 %v5178_v6 }
 0x15b   :  { %v1335_v20 = vmul.f32 0.01, %v1326_v14  ;;  %vm1331_vm2 = vcmp.ge.f32.partialorder %v1326_v14, 0.0 }
 0x15c   :  { %1829 = vmatpush.bf16.msrb.mxu1 %v5246_v12 }
 0x15d   :  { %v1339_v23 = vsel %vm1331_vm2, %v1326_v14, %v1335_v20  ;;  %v5250_v14 = vor.u32 %v6611_v11, %v5247_v13  ;;  %v5167_v20 = vld [vmem:[#allocation6 + $0x28] sm:$0xf0] }
 0x15e   :  { %v1313_v16 = vpop.f32.mrf.mxu2 }
 0x15f   :  { %v1314_v18 = vadd.f32 %v1313_v16, %v1300_v15  ;;  %v1327_v19 = vpop.f32.mrf.mxu3  ;;  %v5165_v15 = vld [vmem:[#allocation6 + $0x20] sm:$0xf]  ;;  %v6592_v16 = vld [vmem:[#allocation6 + $0x24] sm:$0xf0]  ;;  %1857 = vmatpush.bf16.msrb.mxu3 %v5250_v14 }
 0x161   :  { %v1328_v21 = vadd.f32 %v1327_v19, %v1314_v18  ;;  %v6591_v18 = vld [vmem:[#allocation6 + $0x24] sm:$0xf]  ;;  %v5166_v19 = vor.u32 %v6592_v16, %v5165_v15 }
 0x163   :  { %vm1333_vm3 = vcmp.ge.f32.partialorder %v1328_v21, 0.0  ;;  %v1337_v22 = vmul.f32 0.01, %v1328_v21  ;;  %1817 = vmatpush.bf16.msrb.mxu0 %v5166_v19 }
 0x165   :  { %v1341_v24 = vsel %vm1333_vm3, %v1328_v21, %v1337_v22  ;;  %v5170_v21 = vor.u32 %v6591_v18, %v5167_v20  ;;  %v5237_v22 = vld [vmem:[#allocation6 + $0xb0] sm:$0xf] }
 0x166   :  { %v1343_v25 = vpack.c.bf16 %v1341_v24, %v1339_v23  ;;  %v6610_v23 = vld [vmem:[#allocation6 + $0xb4] sm:$0xf0]  ;;  %v6609_v24 = vld [vmem:[#allocation6 + $0xb4] sm:$0xf] }
 0x167   :  { %1845 = vmatpush.bf16.msrb.mxu2 %v5170_v21  ;;  %v5242_v27 = vor.u32 %v6609_v24, %v5239_v26  ;;  %1818 = vmatpush.bf16.msrb.mxu0 %v5158_v31  ;;  %v6631_v31 = vld [vmem:[#allocation7 + $0x60] sm:$0xff] }
 0x168   :  { %1565 = vmatmul.bf16.vlgmr.msra.gmra.mxu1 %v1343_v25  ;;  %1593 = vmatmul.bf16.vlgmr.msra.gmra.mxu3 %v1343_v25  ;;  %v5238_v25 = vor.u32 %v6610_v23, %v5237_v22 }
 0x169   :  { %1858 = vmatpush.bf16.msrb.mxu3 %v5242_v27  ;;  %v6633_v27 = vld [vmem:[#allocation7 + $0x70] sm:$0xff] }
 0x16a   :  { %1830 = vmatpush.bf16.msrb.mxu1 %v5238_v25 }
 0x16b   :  { %1846 = vmatpush.bf16.msrb.mxu2 %v5162_v33  ;;  %1819 = vmatpush.bf16.msrb.mxu0 %v5150_v46  ;;  %v6630_v33 = vld [vmem:[#allocation7 + $0x58] sm:$0xff]  ;;  %v6640_v46 = vld [vmem:[#allocation9 + $0x28] sm:$0xff] }
 0x16d   :  { %1859 = vmatpush.bf16.msrb.mxu3 %v5234_v40  ;;  %v6642_v40 = vld [vmem:[#allocation9 + $0x38] sm:$0xff] }
 0x16e   :  { %1831 = vmatpush.bf16.msrb.mxu1 %v5230_v37  ;;  %v6628_v37 = vld [vmem:[#allocation7 + $0x48] sm:$0xff] }
 0x16f   :  { %1847 = vmatpush.bf16.msrb.mxu2 %v5154_v1  ;;  %2011 = vmatpush.bf16.msra.mxu0 %v6626_v54 }
 0x171   :  { %1860 = vmatpush.bf16.msrb.mxu3 %v5226_v47 }
 0x172   :  { %1832 = vmatpush.bf16.msrb.mxu1 %v5222_v43 }
 0x173   :  { %2012 = vmatpush.bf16.msra.mxu0 %v6625_v55  ;;  %2111 = vmatpush.bf16.msra.mxu2 %v6642_v40  ;;  %v2062_v40 = vld [vmem:[#allocation2 + $0x4] ss:$0 sm:$0xff] }
 0x175   :  { %1861 = vmatpush.bf16.msrb.mxu3 %v5218_v17 }
 0x176   :  { %1833 = vmatpush.bf16.msrb.mxu1 %v5214_v53 }
 0x177   :  { %2013 = vmatpush.bf16.msra.mxu0 %v6624_v59  ;;  %2112 = vmatpush.bf16.msra.mxu2 %v6641_v41 }
 0x17a   :  { %2025 = vmatpush.bf16.msra.mxu1 %v6634_v10 }
 0x17b   :  { %2014 = vmatpush.bf16.msra.mxu0 %v6623_v28  ;;  %2113 = vmatpush.bf16.msra.mxu2 %v6640_v46 }
 0x17e   :  { %2026 = vmatpush.bf16.msra.mxu1 %v6633_v27 }
 0x17f   :  { %2015 = vmatpush.bf16.msra.mxu0 %v6622_v30  ;;  %v6646_v30 = vld [vmem:[#allocation10 + $0x18] sm:$0xff] }
 0x182   :  { %2027 = vmatpush.bf16.msra.mxu1 %v6632_v29 }
 0x183   :  { %2016 = vmatpush.bf16.msra.mxu0 %v6621_v32  ;;  %v6644_v32 = vld [vmem:[#allocation10 + $0x8] sm:$0xff] }
 0x186   :  { %2028 = vmatpush.bf16.msra.mxu1 %v6631_v31  ;;  %v6645_v31 = vld [vmem:[#allocation10 + $0x10] sm:$0xff] }
 0x187   :  { %2017 = vmatpush.bf16.msra.mxu0 %v6620_v34  ;;  %v6658_v34 = vld [vmem:[#allocation12 + $0x38] sm:$0xff] }
 0x18a   :  { %2029 = vmatpush.bf16.msra.mxu1 %v6630_v33  ;;  %v6643_v33 = vld [vmem:[#allocation10] sm:$0xff] }
 0x18b   :  { %2018 = vmatpush.bf16.msra.mxu0 %v6619_v36  ;;  %v6656_v36 = vld [vmem:[#allocation12 + $0x28] sm:$0xff] }
 0x18e   :  { %2030 = vmatpush.bf16.msra.mxu1 %v6629_v35  ;;  %v6657_v35 = vld [vmem:[#allocation12 + $0x30] sm:$0xff] }
 0x192   :  { %2031 = vmatpush.bf16.msra.mxu1 %v6628_v37  ;;  %v6655_v37 = vld [vmem:[#allocation12 + $0x20] sm:$0xff] }
 0x196   :  { %2032 = vmatpush.bf16.msra.mxu1 %v6627_v38 }
 0x1a5   :  { %v1552_v56 = vpop.f32.mrf.mxu0 }
 0x1a6   :  { %v1553_v63 = vadd.f32 %v1552_v56, %v1379_v60 }
 0x1ab   :  { %v1580_v61 = vpop.f32.mrf.mxu2 }
 0x1ac   :  { %v1581_v8 = vadd.f32 %v1580_v61, %v1380_v2 }
 0x1ad   :  { %v1554_v0 = vpop.f32.mrf.mxu0 }
 0x1ae   :  { %v1555_v5 = vadd.f32 %v1554_v0, %v1379_v60 }
 0x1b3   :  { %v1582_v12 = vpop.f32.mrf.mxu2 }
 0x1b4   :  { %v1583_v15 = vadd.f32 %v1582_v12, %v1380_v2  ;;  %v6649_v12 = vld [vmem:[#allocation10 + $0x30] sm:$0xff] }
 0x1e5   :  { %v1566_v62 = vpop.f32.mrf.mxu1 }
 0x1e6   :  { %v1567_v3 = vadd.f32 %v1566_v62, %v1553_v63 }
 0x1e8   :  { %v1603_v9 = vmul.f32 0.01, %v1567_v3  ;;  %vm1599_vm4 = vcmp.ge.f32.partialorder %v1567_v3, 0.0 }
 0x1ea   :  { %v1607_v16 = vsel %vm1599_vm4, %v1567_v3, %v1603_v9  ;;  %v6635_v9 = vld [vmem:[#allocation9] sm:$0xff] }
 0x1eb   :  { %v1594_v4 = vpop.f32.mrf.mxu3 }
 0x1ec   :  { %v1595_v13 = vadd.f32 %v1594_v4, %v1581_v8  ;;  %v6639_v4 = vld [vmem:[#allocation9 + $0x20] sm:$0xff]  ;;  %v6636_v8 = vld [vmem:[#allocation9 + $0x8] sm:$0xff] }
 0x1ed   :  { %v1568_v6 = vpop.f32.mrf.mxu1  ;;  %2114 = vmatpush.bf16.msra.mxu2 %v6639_v4  ;;  %v6673_v4 = vld [vmem:[#allocation15 + $0x30] sm:$0xff] }
 0x1ee   :  { %v1569_v11 = vadd.f32 %v1568_v6, %v1555_v5  ;;  %v1604_v21 = vmul.f32 0.01, %v1595_v13  ;;  %vm1600_vm6 = vcmp.ge.f32.partialorder %v1595_v13, 0.0  ;;  %v6638_v5 = vld [vmem:[#allocation9 + $0x18] sm:$0xff]  ;;  %v6637_v6 = vld [vmem:[#allocation9 + $0x10] sm:$0xff] }
 0x1f0   :  { %vm1601_vm5 = vcmp.ge.f32.partialorder %v1569_v11, 0.0  ;;  %v1605_v14 = vmul.f32 0.01, %v1569_v11  ;;  %v1608_v24 = vsel %vm1600_vm6, %v1595_v13, %v1604_v21  ;;  %v6648_v13 = vld [vmem:[#allocation10 + $0x28] sm:$0xff] }
 0x1f1   :  { %2115 = vmatpush.bf16.msra.mxu2 %v6638_v5  ;;  %v6672_v5 = vld [vmem:[#allocation15 + $0x28] sm:$0xff] }
 0x1f2   :  { %v1609_v18 = vsel %vm1601_vm5, %v1569_v11, %v1605_v14  ;;  %v6650_v11 = vld [vmem:[#allocation10 + $0x38] sm:$0xff] }
 0x1f3   :  { %v1611_v19 = vpack.c.bf16 %v1609_v18, %v1607_v16  ;;  %v1596_v20 = vpop.f32.mrf.mxu3  ;;  %2197 = vmatpush.bf16.msra.mxu3 %v6650_v11  ;;  %v1914_v16 = vld [vmem:[#allocation2 + $0x3] ss:$0 sm:$0xff] }
 0x1f4   :  { %v1597_v22 = vadd.f32 %v1596_v20, %v1583_v15  ;;  %v6647_v15 = vld [vmem:[#allocation10 + $0x20] sm:$0xff] }
 0x1f5   :  { %1820 = vmatmul.bf16.vlgmr.msrb.gmra.mxu0 %v1611_v19  ;;  %1848 = vmatmul.bf16.vlgmr.msrb.gmra.mxu2 %v1611_v19 }
 0x1f6   :  { %vm1602_vm7 = vcmp.ge.f32.partialorder %v1597_v22, 0.0  ;;  %v1606_v23 = vmul.f32 0.01, %v1597_v22  ;;  %2116 = vmatpush.bf16.msra.mxu2 %v6637_v6  ;;  %2283 = vmatpush.bf16.msrb.mxu0 %v6658_v34  ;;  %v6671_v6 = vld [vmem:[#allocation15 + $0x20] sm:$0xff] }
 0x1f7   :  { %2198 = vmatpush.bf16.msra.mxu3 %v6649_v12 }
 0x1f8   :  { %v1610_v25 = vsel %vm1602_vm7, %v1597_v22, %v1606_v23 }
 0x1f9   :  { %v1612_v26 = vpack.c.bf16 %v1610_v25, %v1608_v24 }
 0x1fa   :  { %2117 = vmatpush.bf16.msra.mxu2 %v6636_v8  ;;  %2284 = vmatpush.bf16.msrb.mxu0 %v6657_v35 }
 0x1fb   :  { %1834 = vmatmul.bf16.vlgmr.msrb.gmra.mxu1 %v1612_v26  ;;  %1862 = vmatmul.bf16.vlgmr.msrb.gmra.mxu3 %v1612_v26 }
 0x1fc   :  { %2199 = vmatpush.bf16.msra.mxu3 %v6648_v13 }
 0x1fe   :  { %2118 = vmatpush.bf16.msra.mxu2 %v6635_v9  ;;  %2285 = vmatpush.bf16.msrb.mxu0 %v6656_v36  ;;  %v2234_v9 = vld [vmem:[#allocation2 + $0x6] ss:$0 sm:$0xff] }
 0x200   :  { %2200 = vmatpush.bf16.msra.mxu3 %v6647_v15 }
 0x202   :  { %2286 = vmatpush.bf16.msrb.mxu0 %v6655_v37 }
 0x204   :  { %2201 = vmatpush.bf16.msra.mxu3 %v6646_v30 }
 0x208   :  { %2202 = vmatpush.bf16.msra.mxu3 %v6645_v31 }
 0x20c   :  { %2203 = vmatpush.bf16.msra.mxu3 %v6644_v32 }
 0x210   :  { %2204 = vmatpush.bf16.msra.mxu3 %v6643_v33 }
 0x272   :  { %v1821_v42 = vpop.f32.mrf.mxu0 }
 0x273   :  { %v1822_v50 = vadd.f32 %v1821_v42, %v1648_v48 }
 0x278   :  { %v1835_v1 = vpop.f32.mrf.mxu1  ;;  %v1849_v49 = vpop.f32.mrf.mxu2 }
 0x279   :  { %v1836_v43 = vadd.f32 %v1835_v1, %v1822_v50  ;;  %v1850_v53 = vadd.f32 %v1849_v49, %v1649_v44 }
 0x27a   :  { %v1823_v39 = vpop.f32.mrf.mxu0 }
 0x27b   :  { %v1824_v51 = vadd.f32 %v1823_v39, %v1648_v48  ;;  %v1872_v7 = vmul.f32 0.01, %v1836_v43  ;;  %vm1868_vm8 = vcmp.ge.f32.partialorder %v1836_v43, 0.0  ;;  %v6654_v39 = vld [vmem:[#allocation12 + $0x18] sm:$0xff] }
 0x27c   :  { %2287 = vmatpush.bf16.msrb.mxu0 %v6654_v39 }
 0x27d   :  { %v1876_v55 = vsel %vm1868_vm8, %v1836_v43, %v1872_v7  ;;  %v6653_v43 = vld [vmem:[#allocation12 + $0x10] sm:$0xff]  ;;  %v6664_v7 = vld [vmem:[#allocation13 + $0x28] sm:$0xff] }
 0x27e   :  { %v1863_v47 = vpop.f32.mrf.mxu3 }
 0x27f   :  { %v1864_v54 = vadd.f32 %v1863_v47, %v1850_v53  ;;  %v6651_v47 = vld [vmem:[#allocation12] sm:$0xff] }
 0x280   :  { %v1837_v52 = vpop.f32.mrf.mxu1  ;;  %v1851_v17 = vpop.f32.mrf.mxu2  ;;  %2288 = vmatpush.bf16.msrb.mxu0 %v6653_v43  ;;  %v6663_v53 = vld [vmem:[#allocation13 + $0x20] sm:$0xff] }
 0x281   :  { %v1838_v58 = vadd.f32 %v1837_v52, %v1824_v51  ;;  %v1852_v57 = vadd.f32 %v1851_v17, %v1649_v44  ;;  %v1873_v61 = vmul.f32 0.01, %v1864_v54  ;;  %vm1869_vm10 = vcmp.ge.f32.partialorder %v1864_v54, 0.0  ;;  %v6652_v44 = vld [vmem:[#allocation12 + $0x8] sm:$0xff]  ;;  %v6666_v51 = vld [vmem:[#allocation13 + $0x38] sm:$0xff]  ;;  %v6665_v52 = vld [vmem:[#allocation13 + $0x30] sm:$0xff] }
 0x282   :  { %2369 = vmatpush.bf16.msrb.mxu1 %v6666_v51  ;;  %v2148_v17 = vld [vmem:[#allocation2 + $0x5] ss:$0 sm:$0xff] }
 0x283   :  { %vm1870_vm9 = vcmp.ge.f32.partialorder %v1838_v58, 0.0  ;;  %v1874_v10 = vmul.f32 0.01, %v1838_v58  ;;  %v1877_v0 = vsel %vm1869_vm10, %v1864_v54, %v1873_v61 }
 0x284   :  { %2289 = vmatpush.bf16.msrb.mxu0 %v6652_v44 }
 0x285   :  { %v1878_v56 = vsel %vm1870_vm9, %v1838_v58, %v1874_v10 }
 0x286   :  { %v1880_v59 = vpack.c.bf16 %v1878_v56, %v1876_v55  ;;  %v1865_v60 = vpop.f32.mrf.mxu3  ;;  %2370 = vmatpush.bf16.msrb.mxu1 %v6665_v52 }
 0x287   :  { %v1866_v62 = vadd.f32 %v1865_v60, %v1852_v57 }
 0x288   :  { %2019 = vmatmul.bf16.vlgmr.msra.gmra.mxu0 %v1880_v59 }
 0x289   :  { %vm1871_vm11 = vcmp.ge.f32.partialorder %v1866_v62, 0.0  ;;  %v1875_v63 = vmul.f32 0.01, %v1866_v62  ;;  %2290 = vmatpush.bf16.msrb.mxu0 %v6651_v47 }
 0x28a   :  { %2371 = vmatpush.bf16.msrb.mxu1 %v6664_v7 }
 0x28b   :  { %v1879_v2 = vsel %vm1871_vm11, %v1866_v62, %v1875_v63  ;;  %v6662_v62 = vld [vmem:[#allocation13 + $0x18] sm:$0xff]  ;;  %v6661_v63 = vld [vmem:[#allocation13 + $0x10] sm:$0xff] }
 0x28c   :  { %v1881_v3 = vpack.c.bf16 %v1879_v2, %v1877_v0  ;;  %v6660_v0 = vld [vmem:[#allocation13 + $0x8] sm:$0xff]  ;;  %v6659_v2 = vld [vmem:[#allocation13] sm:$0xff] }
 0x28e   :  { %2033 = vmatmul.bf16.vlgmr.msra.gmra.mxu1 %v1881_v3  ;;  %v6674_v3 = vld [vmem:[#allocation15 + $0x38] sm:$0xff] }
 0x28f   :  { %2372 = vmatpush.bf16.msrb.mxu1 %v6663_v53  ;;  %2455 = vmatpush.bf16.msrb.mxu2 %v6674_v3 }
 0x293   :  { %2373 = vmatpush.bf16.msrb.mxu1 %v6662_v62  ;;  %2456 = vmatpush.bf16.msrb.mxu2 %v6673_v4 }
 0x297   :  { %2374 = vmatpush.bf16.msrb.mxu1 %v6661_v63  ;;  %2457 = vmatpush.bf16.msrb.mxu2 %v6672_v5 }
 0x29b   :  { %2375 = vmatpush.bf16.msrb.mxu1 %v6660_v0  ;;  %2458 = vmatpush.bf16.msrb.mxu2 %v6671_v6 }
 0x29f   :  { %2376 = vmatpush.bf16.msrb.mxu1 %v6659_v2 }
 0x305   :  { %v2020_v14 = vpop.f32.mrf.mxu0 }
 0x306   :  { %v2021_v19 = vadd.f32 %v2020_v14, %v1914_v16 }
 0x30b   :  { %v2034_v18 = vpop.f32.mrf.mxu1 }
 0x30c   :  { %v2035_v21 = vadd.f32 %v2034_v18, %v2021_v19 }
 0x30d   :  { %v2022_v20 = vpop.f32.mrf.mxu0 }
 0x30e   :  { %v2023_v22 = vadd.f32 %v2022_v20, %v1914_v16  ;;  %v2041_v24 = vmul.f32 0.01, %v2035_v21  ;;  %vm2039_vm12 = vcmp.ge.f32.partialorder %v2035_v21, 0.0  ;;  %v6670_v20 = vld [vmem:[#allocation15 + $0x18] sm:$0xff] }
 0x30f   :  { %2459 = vmatpush.bf16.msrb.mxu2 %v6670_v20  ;;  %v6712_v20 = vld [vmem:[#allocation21 + $0x64] sm:$0xf0] }
 0x310   :  { %v2043_v27 = vsel %vm2039_vm12, %v2035_v21, %v2041_v24  ;;  %v6669_v21 = vld [vmem:[#allocation15 + $0x10] sm:$0xff]  ;;  %v6682_v24 = vld [vmem:[#allocation16 + $0x38] sm:$0xff] }
 0x311   :  { %2541 = vmatpush.bf16.msrb.mxu3 %v6682_v24 }
 0x313   :  { %v2036_v23 = vpop.f32.mrf.mxu1  ;;  %2460 = vmatpush.bf16.msrb.mxu2 %v6669_v21 }
 0x314   :  { %v2037_v25 = vadd.f32 %v2036_v23, %v2023_v22  ;;  %v6668_v22 = vld [vmem:[#allocation15 + $0x8] sm:$0xff]  ;;  %v6667_v23 = vld [vmem:[#allocation15] sm:$0xff] }
 0x316   :  { %vm2040_vm13 = vcmp.ge.f32.partialorder %v2037_v25, 0.0  ;;  %v2042_v26 = vmul.f32 0.01, %v2037_v25 }
 0x317   :  { %2461 = vmatpush.bf16.msrb.mxu2 %v6668_v22  ;;  %v6711_v22 = vld [vmem:[#allocation21 + $0x64] sm:$0xf] }
 0x318   :  { %v2044_v28 = vsel %vm2040_vm13, %v2037_v25, %v2042_v26  ;;  %v6681_v25 = vld [vmem:[#allocation16 + $0x30] sm:$0xff]  ;;  %v6680_v26 = vld [vmem:[#allocation16 + $0x28] sm:$0xff] }
 0x319   :  { %v2045_v29 = vpack.c.bf16 %v2044_v28, %v2043_v27  ;;  %2542 = vmatpush.bf16.msrb.mxu3 %v6681_v25  ;;  %v6679_v27 = vld [vmem:[#allocation16 + $0x20] sm:$0xff] }
 0x31b   :  { %2119 = vmatmul.bf16.vlgmr.msra.gmra.mxu2 %v2045_v29  ;;  %v2320_v29 = vld [vmem:[#allocation2 + $0x7] ss:$0 sm:$0xff] }
 0x31c   :  { %2462 = vmatpush.bf16.msrb.mxu2 %v6667_v23  ;;  %v5647_v23 = vld [vmem:[#allocation21 + $0x68] sm:$0xf0] }
 0x31d   :  { %2543 = vmatpush.bf16.msrb.mxu3 %v6680_v26  ;;  %v5650_v25 = vor.u32 %v6711_v22, %v5647_v23  ;;  %v5637_v26 = vld [vmem:[#allocation21 + $0x50] sm:$0xf]  ;;  %v5773_v22 = vld [vmem:[#allocation22 + $0xe0] sm:$0xf]  ;;  %v6744_v23 = vld [vmem:[#allocation22 + $0xe4] sm:$0xf0] }
 0x321   :  { %2544 = vmatpush.bf16.msrb.mxu3 %v6679_v27  ;;  %v6710_v27 = vld [vmem:[#allocation21 + $0x54] sm:$0xf0] }
 0x39e   :  { %v2120_v38 = vpop.f32.mrf.mxu2 }
 0x39f   :  { %v2121_v41 = vadd.f32 %v2120_v38, %v2062_v40  ;;  %v6678_v38 = vld [vmem:[#allocation16 + $0x18] sm:$0xff] }
 0x3a0   :  { %2545 = vmatpush.bf16.msrb.mxu3 %v6678_v38 }
 0x3a1   :  { %v2127_v45 = vmul.f32 0.01, %v2121_v41  ;;  %vm2125_vm14 = vcmp.ge.f32.partialorder %v2121_v41, 0.0 }
 0x3a3   :  { %v2129_v1 = vsel %vm2125_vm14, %v2121_v41, %v2127_v45  ;;  %v6676_v41 = vld [vmem:[#allocation16 + $0x8] sm:$0xff]  ;;  %v6690_v45 = vld [vmem:[#allocation18 + $0x38] sm:$0xff] }
 0x3a4   :  { %2627 = vmatpush.bf16.msra.mxu0 %v6690_v45 }
 0x3a6   :  { %v2122_v42 = vpop.f32.mrf.mxu2 }
 0x3a7   :  { %v2123_v46 = vadd.f32 %v2122_v42, %v2062_v40  ;;  %v6677_v40 = vld [vmem:[#allocation16 + $0x10] sm:$0xff]  ;;  %v6675_v42 = vld [vmem:[#allocation16] sm:$0xff] }
 0x3a8   :  { %2546 = vmatpush.bf16.msrb.mxu3 %v6677_v40  ;;  %v2578_v40 = vld [vmem:[#allocation2 + $0x42] ss:$0 sm:$0xff] }
 0x3a9   :  { %vm2126_vm15 = vcmp.ge.f32.partialorder %v2123_v46, 0.0  ;;  %v2128_v48 = vmul.f32 0.01, %v2123_v46 }
 0x3ab   :  { %v2130_v49 = vsel %vm2126_vm15, %v2123_v46, %v2128_v48  ;;  %v6689_v46 = vld [vmem:[#allocation18 + $0x30] sm:$0xff]  ;;  %v6688_v48 = vld [vmem:[#allocation18 + $0x28] sm:$0xff] }
 0x3ac   :  { %v2131_v50 = vpack.c.bf16 %v2130_v49, %v2129_v1  ;;  %2547 = vmatpush.bf16.msrb.mxu3 %v6676_v41  ;;  %2628 = vmatpush.bf16.msra.mxu0 %v6689_v46  ;;  %v6687_v1 = vld [vmem:[#allocation18 + $0x20] sm:$0xff] }
 0x3ae   :  { %2205 = vmatmul.bf16.vlgmr.msra.gmra.mxu3 %v2131_v50  ;;  %v2406_v50 = vld [vmem:[#allocation2 + $0x40] ss:$0 sm:$0xff] }
 0x3b0   :  { %2548 = vmatpush.bf16.msrb.mxu3 %v6675_v42  ;;  %2629 = vmatpush.bf16.msra.mxu0 %v6688_v48 }
 0x3b4   :  { %2630 = vmatpush.bf16.msra.mxu0 %v6687_v1 }
 0x431   :  { %v2206_v58 = vpop.f32.mrf.mxu3 }
 0x432   :  { %v2207_v54 = vadd.f32 %v2206_v58, %v2148_v17  ;;  %v6686_v58 = vld [vmem:[#allocation18 + $0x18] sm:$0xff] }
 0x433   :  { %2631 = vmatpush.bf16.msra.mxu0 %v6686_v58  ;;  %v6703_v58 = vld [vmem:[#allocation21 + $0x24] sm:$0xf] }
 0x434   :  { %v2213_v55 = vmul.f32 0.01, %v2207_v54  ;;  %vm2211_vm0 = vcmp.ge.f32.partialorder %v2207_v54, 0.0 }
 0x436   :  { %v2215_v59 = vsel %vm2211_vm0, %v2207_v54, %v2213_v55  ;;  %v6684_v54 = vld [vmem:[#allocation18 + $0x8] sm:$0xff]  ;;  %v6698_v55 = vld [vmem:[#allocation19 + $0x38] sm:$0xff] }
 0x437   :  { %2713 = vmatpush.bf16.msra.mxu1 %v6698_v55  ;;  %v5605_v55 = vld [vmem:[#allocation21 + $0x10] sm:$0xf] }
 0x439   :  { %v2208_v10 = vpop.f32.mrf.mxu3 }
 0x43a   :  { %v2209_v56 = vadd.f32 %v2208_v10, %v2148_v17  ;;  %v6685_v17 = vld [vmem:[#allocation18 + $0x10] sm:$0xff]  ;;  %v6683_v10 = vld [vmem:[#allocation18] sm:$0xff] }
 0x43b   :  { %2632 = vmatpush.bf16.msra.mxu0 %v6685_v17 }
 0x43c   :  { %vm2212_vm1 = vcmp.ge.f32.partialorder %v2209_v56, 0.0  ;;  %v2214_v57 = vmul.f32 0.01, %v2209_v56 }
 0x43e   :  { %v2216_v60 = vsel %vm2212_vm1, %v2209_v56, %v2214_v57  ;;  %v6697_v56 = vld [vmem:[#allocation19 + $0x30] sm:$0xff]  ;;  %v6696_v57 = vld [vmem:[#allocation19 + $0x28] sm:$0xff] }
 0x43f   :  { %v2217_v61 = vpack.c.bf16 %v2216_v60, %v2215_v59  ;;  %2633 = vmatpush.bf16.msra.mxu0 %v6684_v54  ;;  %2714 = vmatpush.bf16.msra.mxu1 %v6697_v56  ;;  %v6695_v59 = vld [vmem:[#allocation19 + $0x20] sm:$0xff]  ;;  %v5615_v54 = vld [vmem:[#allocation21 + $0x28] sm:$0xf0]  ;;  %v6702_v56 = vld [vmem:[#allocation21 + $0x14] sm:$0xf0] }
 0x441   :  { %2291 = vmatmul.bf16.vlgmr.msrb.gmra.mxu0 %v2217_v61  ;;  %v2492_v61 = vld [vmem:[#allocation2 + $0x41] ss:$0 sm:$0xff] }
 0x443   :  { %2634 = vmatpush.bf16.msra.mxu0 %v6683_v10  ;;  %2715 = vmatpush.bf16.msra.mxu1 %v6696_v57  ;;  %v5618_v10 = vor.u32 %v6703_v58, %v5615_v54  ;;  %v6701_v57 = vld [vmem:[#allocation21 + $0x14] sm:$0xf] }
 0x447   :  { %2716 = vmatpush.bf16.msra.mxu1 %v6695_v59  ;;  %v5606_v59 = vor.u32 %v6702_v56, %v5605_v55 }
 0x4be   :  { %v2292_v8 = vpop.f32.mrf.mxu0 }
 0x4bf   :  { %v2293_v11 = vadd.f32 %v2292_v8, %v2234_v9  ;;  %v6694_v8 = vld [vmem:[#allocation19 + $0x18] sm:$0xff] }
 0x4c0   :  { %2717 = vmatpush.bf16.msra.mxu1 %v6694_v8  ;;  %v5781_v8 = vld [vmem:[#allocation22 + $0xf0] sm:$0xf] }
 0x4c1   :  { %v2299_v13 = vmul.f32 0.01, %v2293_v11  ;;  %vm2297_vm2 = vcmp.ge.f32.partialorder %v2293_v11, 0.0 }
 0x4c3   :  { %v2301_v16 = vsel %vm2297_vm2, %v2293_v11, %v2299_v13  ;;  %v6692_v11 = vld [vmem:[#allocation19 + $0x8] sm:$0xff]  ;;  %v5653_v13 = vld [vmem:[#allocation21 + $0x70] sm:$0xf] }
 0x4c6   :  { %v2294_v12 = vpop.f32.mrf.mxu0 }
 0x4c7   :  { %v2295_v14 = vadd.f32 %v2294_v12, %v2234_v9  ;;  %v6693_v9 = vld [vmem:[#allocation19 + $0x10] sm:$0xff]  ;;  %v6691_v12 = vld [vmem:[#allocation19] sm:$0xff] }
 0x4c8   :  { %2718 = vmatpush.bf16.msra.mxu1 %v6693_v9 }
 0x4c9   :  { %vm2298_vm3 = vcmp.ge.f32.partialorder %v2295_v14, 0.0  ;;  %v2300_v15 = vmul.f32 0.01, %v2295_v14 }
 0x4cb   :  { %v2302_v18 = vsel %vm2298_vm3, %v2295_v14, %v2300_v15  ;;  %v6714_v14 = vld [vmem:[#allocation21 + $0x74] sm:$0xf0]  ;;  %v6713_v15 = vld [vmem:[#allocation21 + $0x74] sm:$0xf] }
 0x4cc   :  { %v2303_v19 = vpack.c.bf16 %v2302_v18, %v2301_v16  ;;  %2719 = vmatpush.bf16.msra.mxu1 %v6692_v11  ;;  %v5654_v16 = vor.u32 %v6714_v14, %v5653_v13  ;;  %v5655_v18 = vld [vmem:[#allocation21 + $0x78] sm:$0xf0]  ;;  %v6746_v11 = vld [vmem:[#allocation22 + $0xf4] sm:$0xf0] }
 0x4cd   :  { %v5658_v21 = vor.u32 %v6713_v15, %v5655_v18  ;;  %v5719_v13 = vld [vmem:[#allocation22 + $0x78] sm:$0xf0]  ;;  %v5782_v14 = vor.u32 %v6746_v11, %v5781_v8  ;;  %v6737_v8 = vld [vmem:[#allocation22 + $0xb4] sm:$0xf] }
 0x4ce   :  { %2377 = vmatmul.bf16.vlgmr.msrb.gmra.mxu1 %v2303_v19  ;;  %v5645_v19 = vld [vmem:[#allocation21 + $0x60] sm:$0xf]  ;;  %2837 = vmatpush.bf16.msra.mxu2 %v5654_v16  ;;  %v6745_v16 = vld [vmem:[#allocation22 + $0xf4] sm:$0xf]  ;;  %v5783_v18 = vld [vmem:[#allocation22 + $0xf8] sm:$0xf0] }
 0x4cf   :  { %v5646_v24 = vor.u32 %v6712_v20, %v5645_v19  ;;  %2851 = vmatpush.bf16.msra.mxu3 %v5658_v21  ;;  %v5709_v19 = vld [vmem:[#allocation22 + $0x60] sm:$0xf]  ;;  %v5786_v20 = vor.u32 %v6745_v16, %v5783_v18  ;;  %v6728_v21 = vld [vmem:[#allocation22 + $0x64] sm:$0xf0] }
 0x4d0   :  { %2720 = vmatpush.bf16.msra.mxu1 %v6691_v12  ;;  %v6729_v12 = vld [vmem:[#allocation22 + $0x74] sm:$0xf]  ;;  %v6736_v18 = vld [vmem:[#allocation22 + $0xa4] sm:$0xf0] }
 0x4d1   :  { %v5722_v15 = vor.u32 %v6729_v12, %v5719_v13  ;;  %v5677_v13 = vld [vmem:[#allocation22 + $0x20] sm:$0xf] }
 0x4d2   :  { %2838 = vmatpush.bf16.msra.mxu2 %v5646_v24  ;;  %v5710_v24 = vor.u32 %v6728_v21, %v5709_v19  ;;  %v6719_v19 = vld [vmem:[#allocation22 + $0x24] sm:$0xf] }
 0x4d3   :  { %2852 = vmatpush.bf16.msra.mxu3 %v5650_v25  ;;  %v5774_v25 = vor.u32 %v6744_v23, %v5773_v22  ;;  %v6735_v23 = vld [vmem:[#allocation22 + $0xa4] sm:$0xf] }
 0x4d4   :  { %3092 = vmatpush.bf16.msrb.mxu1 %v5782_v14  ;;  %v6720_v14 = vld [vmem:[#allocation22 + $0x24] sm:$0xf0] }
 0x4d5   :  { %v5678_v16 = vor.u32 %v6720_v14, %v5677_v13 }
 0x4d8   :  { %3093 = vmatpush.bf16.msrb.mxu1 %v5774_v25 }
 0x54b   :  { %v2378_v28 = vpop.f32.mrf.mxu1 }
 0x54c   :  { %v2379_v30 = vadd.f32 %v2378_v28, %v2320_v29  ;;  %v6709_v28 = vld [vmem:[#allocation21 + $0x54] sm:$0xf] }
 0x54e   :  { %v2385_v32 = vmul.f32 0.01, %v2379_v30  ;;  %vm2383_vm4 = vcmp.ge.f32.partialorder %v2379_v30, 0.0 }
 0x550   :  { %v2387_v35 = vsel %vm2383_vm4, %v2379_v30, %v2385_v32  ;;  %v5638_v30 = vor.u32 %v6710_v27, %v5637_v26  ;;  %v5629_v32 = vld [vmem:[#allocation21 + $0x40] sm:$0xf]  ;;  %v6727_v26 = vld [vmem:[#allocation22 + $0x64] sm:$0xf]  ;;  %v5711_v27 = vld [vmem:[#allocation22 + $0x68] sm:$0xf0] }
 0x552   :  { %2839 = vmatpush.bf16.msra.mxu2 %v5638_v30  ;;  %v5775_v30 = vld [vmem:[#allocation22 + $0xe8] sm:$0xf0] }
 0x553   :  { %v2380_v31 = vpop.f32.mrf.mxu1 }
 0x554   :  { %v2381_v33 = vadd.f32 %v2380_v31, %v2320_v29  ;;  %v5639_v29 = vld [vmem:[#allocation21 + $0x58] sm:$0xf0] }
 0x555   :  { %v5642_v31 = vor.u32 %v6709_v28, %v5639_v29  ;;  %v6743_v28 = vld [vmem:[#allocation22 + $0xe4] sm:$0xf]  ;;  %v5714_v29 = vor.u32 %v6727_v26, %v5711_v27  ;;  %v5669_v26 = vld [vmem:[#allocation22 + $0x10] sm:$0xf]  ;;  %v6718_v27 = vld [vmem:[#allocation22 + $0x14] sm:$0xf0] }
 0x556   :  { %vm2384_vm5 = vcmp.ge.f32.partialorder %v2381_v33, 0.0  ;;  %v2386_v34 = vmul.f32 0.01, %v2381_v33 }
 0x557   :  { %2853 = vmatpush.bf16.msra.mxu3 %v5642_v31  ;;  %v5701_v31 = vld [vmem:[#allocation22 + $0x50] sm:$0xf] }
 0x558   :  { %v2388_v36 = vsel %vm2384_vm5, %v2381_v33, %v2386_v34  ;;  %v6708_v33 = vld [vmem:[#allocation21 + $0x44] sm:$0xf0]  ;;  %v6707_v34 = vld [vmem:[#allocation21 + $0x44] sm:$0xf] }
 0x559   :  { %v2389_v37 = vpack.c.bf16 %v2388_v36, %v2387_v35  ;;  %v5631_v35 = vld [vmem:[#allocation21 + $0x48] sm:$0xf0]  ;;  %v5630_v36 = vor.u32 %v6708_v33, %v5629_v32  ;;  %v6726_v32 = vld [vmem:[#allocation22 + $0x54] sm:$0xf0]  ;;  %v5778_v33 = vor.u32 %v6743_v28, %v5775_v30  ;;  %v5733_v28 = vld [vmem:[#allocation22 + $0x90] sm:$0xf] }
 0x55a   :  { %v6734_v30 = vld [vmem:[#allocation22 + $0x94] sm:$0xf0] }
 0x55b   :  { %2463 = vmatmul.bf16.vlgmr.msrb.gmra.mxu2 %v2389_v37  ;;  %v5634_v37 = vor.u32 %v6707_v34, %v5631_v35  ;;  %v5765_v34 = vld [vmem:[#allocation22 + $0xd0] sm:$0xf]  ;;  %v6742_v35 = vld [vmem:[#allocation22 + $0xd4] sm:$0xf0] }
 0x55c   :  { %2840 = vmatpush.bf16.msra.mxu2 %v5630_v36  ;;  %v6725_v36 = vld [vmem:[#allocation22 + $0x54] sm:$0xf] }
 0x55d   :  { %2854 = vmatpush.bf16.msra.mxu3 %v5634_v37  ;;  %v5702_v37 = vor.u32 %v6726_v32, %v5701_v31  ;;  %v6717_v31 = vld [vmem:[#allocation22 + $0x14] sm:$0xf]  ;;  %v5671_v32 = vld [vmem:[#allocation22 + $0x18] sm:$0xf0] }
 0x5de   :  { %v2464_v49 = vpop.f32.mrf.mxu2 }
 0x5df   :  { %v2465_v39 = vadd.f32 %v2464_v49, %v2406_v50 }
 0x5e1   :  { %v2471_v44 = vmul.f32 0.01, %v2465_v39  ;;  %vm2469_vm6 = vcmp.ge.f32.partialorder %v2465_v39, 0.0 }
 0x5e3   :  { %v2473_v52 = vsel %vm2469_vm6, %v2465_v39, %v2471_v44  ;;  %v5621_v39 = vld [vmem:[#allocation21 + $0x30] sm:$0xf]  ;;  %v6705_v44 = vld [vmem:[#allocation21 + $0x34] sm:$0xf] }
 0x5e6   :  { %v2466_v43 = vpop.f32.mrf.mxu2 }
 0x5e7   :  { %v2467_v47 = vadd.f32 %v2466_v43, %v2406_v50  ;;  %v6706_v43 = vld [vmem:[#allocation21 + $0x34] sm:$0xf0] }
 0x5e9   :  { %vm2470_vm7 = vcmp.ge.f32.partialorder %v2467_v47, 0.0  ;;  %v2472_v51 = vmul.f32 0.01, %v2467_v47 }
 0x5eb   :  { %v2474_v7 = vsel %vm2470_vm7, %v2467_v47, %v2472_v51  ;;  %v5622_v47 = vor.u32 %v6706_v43, %v5621_v39  ;;  %v5623_v51 = vld [vmem:[#allocation21 + $0x38] sm:$0xf0]  ;;  %v6723_v39 = vld [vmem:[#allocation22 + $0x44] sm:$0xf]  ;;  %v5695_v43 = vld [vmem:[#allocation22 + $0x48] sm:$0xf0] }
 0x5ec   :  { %v2475_v53 = vpack.c.bf16 %v2474_v7, %v2473_v52  ;;  %v5626_v52 = vor.u32 %v6705_v44, %v5623_v51  ;;  %v5613_v7 = vld [vmem:[#allocation21 + $0x20] sm:$0xf]  ;;  %v6739_v44 = vld [vmem:[#allocation22 + $0xc4] sm:$0xf] }
 0x5ed   :  { %2841 = vmatpush.bf16.msra.mxu2 %v5622_v47  ;;  %v5759_v47 = vld [vmem:[#allocation22 + $0xc8] sm:$0xf0] }
 0x5ee   :  { %2549 = vmatmul.bf16.vlgmr.msrb.gmra.mxu3 %v2475_v53  ;;  %v6704_v53 = vld [vmem:[#allocation21 + $0x24] sm:$0xf0] }
 0x5ef   :  { %2855 = vmatpush.bf16.msra.mxu3 %v5626_v52  ;;  %v5614_v17 = vor.u32 %v6704_v53, %v5613_v7  ;;  %v5698_v7 = vor.u32 %v6723_v39, %v5695_v43  ;;  %v5762_v53 = vor.u32 %v6739_v44, %v5759_v47  ;;  %v5727_v39 = vld [vmem:[#allocation22 + $0x88] sm:$0xf0]  ;;  %v5845_v44 = vld [vmem:[#allocation24 + $0x70] sm:$0xf]  ;;  %v6762_v47 = vld [vmem:[#allocation24 + $0x74] sm:$0xf0] }
 0x5f1   :  { %2842 = vmatpush.bf16.msra.mxu2 %v5614_v17  ;;  %v2664_v17 = vld [vmem:[#allocation2 + $0x43] ss:$0 sm:$0xff] }
 0x5f3   :  { %2856 = vmatpush.bf16.msra.mxu3 %v5618_v10 }
 0x5f5   :  { %2843 = vmatpush.bf16.msra.mxu2 %v5606_v59 }
 0x671   :  { %v2550_v60 = vpop.f32.mrf.mxu3 }
 0x672   :  { %v2551_v62 = vadd.f32 %v2550_v60, %v2492_v61  ;;  %v5607_v60 = vld [vmem:[#allocation21 + $0x18] sm:$0xf0] }
 0x674   :  { %v2557_v0 = vmul.f32 0.01, %v2551_v62  ;;  %vm2555_vm8 = vcmp.ge.f32.partialorder %v2551_v62, 0.0 }
 0x676   :  { %v2559_v4 = vsel %vm2555_vm8, %v2551_v62, %v2557_v0  ;;  %v5597_v62 = vld [vmem:[#allocation21] sm:$0xf]  ;;  %v6699_v0 = vld [vmem:[#allocation21 + $0x4] sm:$0xf] }
 0x679   :  { %v2552_v63 = vpop.f32.mrf.mxu3 }
 0x67a   :  { %v2553_v2 = vadd.f32 %v2552_v63, %v2492_v61  ;;  %v5610_v61 = vor.u32 %v6701_v57, %v5607_v60  ;;  %v6700_v63 = vld [vmem:[#allocation21 + $0x4] sm:$0xf0] }
 0x67c   :  { %vm2556_vm9 = vcmp.ge.f32.partialorder %v2553_v2, 0.0  ;;  %v2558_v3 = vmul.f32 0.01, %v2553_v2  ;;  %2857 = vmatpush.bf16.msra.mxu3 %v5610_v61 }
 0x67e   :  { %v2560_v5 = vsel %vm2556_vm9, %v2553_v2, %v2558_v3  ;;  %v5598_v2 = vor.u32 %v6700_v63, %v5597_v62  ;;  %v5599_v3 = vld [vmem:[#allocation21 + $0x8] sm:$0xf0]  ;;  %v5685_v62 = vld [vmem:[#allocation22 + $0x30] sm:$0xf]  ;;  %v6722_v63 = vld [vmem:[#allocation22 + $0x34] sm:$0xf0] }
 0x67f   :  { %v2561_v6 = vpack.c.bf16 %v2560_v5, %v2559_v4  ;;  %v5602_v4 = vor.u32 %v6699_v0, %v5599_v3  ;;  %v5717_v5 = vld [vmem:[#allocation22 + $0x70] sm:$0xf]  ;;  %v6738_v3 = vld [vmem:[#allocation22 + $0xb4] sm:$0xf0] }
 0x680   :  { %2844 = vmatpush.bf16.msra.mxu2 %v5598_v2  ;;  %v5749_v0 = vld [vmem:[#allocation22 + $0xb0] sm:$0xf]  ;;  %v5686_v2 = vor.u32 %v6722_v63, %v5685_v62 }
 0x681   :  { %2635 = vmatmul.bf16.vlgmr.msra.gmra.mxu0 %v2561_v6  ;;  %2858 = vmatpush.bf16.msra.mxu3 %v5602_v4  ;;  %v6730_v6 = vld [vmem:[#allocation22 + $0x74] sm:$0xf0]  ;;  %v6721_v4 = vld [vmem:[#allocation22 + $0x34] sm:$0xf] }
 0x682   :  { %v5718_v9 = vor.u32 %v6730_v6, %v5717_v5  ;;  %v5750_v5 = vor.u32 %v6738_v3, %v5749_v0  ;;  %v5687_v6 = vld [vmem:[#allocation22 + $0x38] sm:$0xf0]  ;;  %v5829_v0 = vld [vmem:[#allocation24 + $0x50] sm:$0xf]  ;;  %v6757_v3 = vld [vmem:[#allocation24 + $0x54] sm:$0xf] }
 0x683   :  { %v5690_v11 = vor.u32 %v6721_v4, %v5687_v6  ;;  %v5831_v4 = vld [vmem:[#allocation24 + $0x58] sm:$0xf0]  ;;  %v6776_v6 = vld [vmem:[#allocation24 + $0xe4] sm:$0xf0] }
 0x684   :  { %3078 = vmatpush.bf16.msrb.mxu0 %v5718_v9  ;;  %3106 = vmatpush.bf16.msrb.mxu2 %v5722_v15  ;;  %v5751_v9 = vld [vmem:[#allocation22 + $0xb8] sm:$0xf0]  ;;  %v5741_v15 = vld [vmem:[#allocation22 + $0xa0] sm:$0xf]  ;;  %v5834_v14 = vor.u32 %v6757_v3, %v5831_v4 }
 0x685   :  { %3120 = vmatpush.bf16.msrb.mxu3 %v5786_v20  ;;  %v5754_v12 = vor.u32 %v6737_v8, %v5751_v9  ;;  %v5679_v20 = vld [vmem:[#allocation22 + $0x28] sm:$0xf0]  ;;  %v5742_v21 = vor.u32 %v6736_v18, %v5741_v15  ;;  %v6775_v9 = vld [vmem:[#allocation24 + $0xe4] sm:$0xf]  ;;  %v5821_v15 = vld [vmem:[#allocation24 + $0x40] sm:$0xf] }
 0x686   :  { %v5682_v22 = vor.u32 %v6719_v19, %v5679_v20  ;;  %v6755_v18 = vld [vmem:[#allocation24 + $0x44] sm:$0xf]  ;;  %v5823_v19 = vld [vmem:[#allocation24 + $0x48] sm:$0xf0]  ;;  %v5879_v4 = vld [vmem:[#allocation24 + $0xb8] sm:$0xf0] }
 0x688   :  { %3079 = vmatpush.bf16.msrb.mxu0 %v5710_v24  ;;  %3107 = vmatpush.bf16.msrb.mxu2 %v5714_v29  ;;  %v5743_v24 = vld [vmem:[#allocation22 + $0xa8] sm:$0xf0]  ;;  %v5670_v29 = vor.u32 %v6718_v27, %v5669_v26 }
 0x689   :  { %3121 = vmatpush.bf16.msrb.mxu3 %v5778_v33  ;;  %v5746_v25 = vor.u32 %v6735_v23, %v5743_v24  ;;  %v5734_v33 = vor.u32 %v6734_v30, %v5733_v28 }
 0x68c   :  { %3080 = vmatpush.bf16.msrb.mxu0 %v5702_v37 }
 0x6fe   :  { %v2636_v38 = vpop.f32.mrf.mxu0 }
 0x6ff   :  { %v2637_v41 = vadd.f32 %v2636_v38, %v2578_v40  ;;  %v5703_v38 = vld [vmem:[#allocation22 + $0x58] sm:$0xf0] }
 0x701   :  { %v2643_v45 = vmul.f32 0.01, %v2637_v41  ;;  %vm2641_vm10 = vcmp.ge.f32.partialorder %v2637_v41, 0.0 }
 0x703   :  { %v2645_v1 = vsel %vm2641_vm10, %v2637_v41, %v2643_v45  ;;  %v5767_v41 = vld [vmem:[#allocation22 + $0xd8] sm:$0xf0]  ;;  %v5706_v45 = vor.u32 %v6725_v36, %v5703_v38  ;;  %v5661_v38 = vld [vmem:[#allocation22] sm:$0xf] }
 0x704   :  { %v5735_v36 = vld [vmem:[#allocation22 + $0x98] sm:$0xf0] }
 0x705   :  { %3108 = vmatpush.bf16.msrb.mxu2 %v5706_v45  ;;  %v6732_v45 = vld [vmem:[#allocation22 + $0x84] sm:$0xf0] }
 0x706   :  { %v2638_v42 = vpop.f32.mrf.mxu0 }
 0x707   :  { %v2639_v46 = vadd.f32 %v2638_v42, %v2578_v40  ;;  %v6741_v40 = vld [vmem:[#allocation22 + $0xd4] sm:$0xf]  ;;  %v5766_v42 = vor.u32 %v6742_v35, %v5765_v34  ;;  %v5674_v34 = vor.u32 %v6717_v31, %v5671_v32 }
 0x708   :  { %v6733_v35 = vld [vmem:[#allocation22 + $0x94] sm:$0xf] }
 0x709   :  { %vm2642_vm11 = vcmp.ge.f32.partialorder %v2639_v46, 0.0  ;;  %v2644_v48 = vmul.f32 0.01, %v2639_v46  ;;  %3094 = vmatpush.bf16.msrb.mxu1 %v5766_v42  ;;  %3109 = vmatpush.bf16.msrb.mxu2 %v5698_v7  ;;  %v5738_v37 = vor.u32 %v6733_v35, %v5735_v36  ;;  %v5847_v7 = vld [vmem:[#allocation24 + $0x78] sm:$0xf0] }
 0x70b   :  { %v2646_v49 = vsel %vm2642_vm11, %v2639_v46, %v2644_v48  ;;  %v5693_v46 = vld [vmem:[#allocation22 + $0x40] sm:$0xf]  ;;  %v6724_v48 = vld [vmem:[#allocation22 + $0x44] sm:$0xf0] }
 0x70c   :  { %v2647_v50 = vpack.c.bf16 %v2646_v49, %v2645_v1  ;;  %v5757_v1 = vld [vmem:[#allocation22 + $0xc0] sm:$0xf]  ;;  %v5770_v49 = vor.u32 %v6741_v40, %v5767_v41  ;;  %v5694_v51 = vor.u32 %v6724_v48, %v5693_v46  ;;  %v6716_v40 = vld [vmem:[#allocation22 + $0x4] sm:$0xf0]  ;;  %v6715_v46 = vld [vmem:[#allocation22 + $0x4] sm:$0xf] }
 0x70d   :  { %3110 = vmatpush.bf16.msrb.mxu2 %v5690_v11  ;;  %v5725_v41 = vld [vmem:[#allocation22 + $0x80] sm:$0xf]  ;;  %v5662_v42 = vor.u32 %v6716_v40, %v5661_v38  ;;  %v5663_v48 = vld [vmem:[#allocation22 + $0x8] sm:$0xf0] }
 0x70e   :  { %2721 = vmatmul.bf16.vlgmr.msra.gmra.mxu1 %v2647_v50  ;;  %v6740_v50 = vld [vmem:[#allocation22 + $0xc4] sm:$0xf0]  ;;  %3122 = vmatpush.bf16.msrb.mxu3 %v5770_v49  ;;  %v5666_v49 = vor.u32 %v6715_v46, %v5663_v48  ;;  %v5903_v11 = vld [vmem:[#allocation24 + $0xe8] sm:$0xf0]  ;;  %v5893_v46 = vld [vmem:[#allocation24 + $0xd0] sm:$0xf] }
 0x70f   :  { %v5758_v52 = vor.u32 %v6740_v50, %v5757_v1  ;;  %3081 = vmatpush.bf16.msrb.mxu0 %v5694_v51  ;;  %v5726_v1 = vor.u32 %v6732_v45, %v5725_v41  ;;  %v6731_v50 = vld [vmem:[#allocation22 + $0x84] sm:$0xf]  ;;  %v6761_v51 = vld [vmem:[#allocation24 + $0x74] sm:$0xf]  ;;  %v5906_v13 = vor.u32 %v6775_v9, %v5903_v11  ;;  %v6774_v48 = vld [vmem:[#allocation24 + $0xd4] sm:$0xf0] }
 0x710   :  { %v5730_v43 = vor.u32 %v6731_v50, %v5727_v39  ;;  %v5895_v50 = vld [vmem:[#allocation24 + $0xd8] sm:$0xf0]  ;;  %v6749_v9 = vld [vmem:[#allocation24 + $0x14] sm:$0xf] }
 0x711   :  { %3095 = vmatpush.bf16.msrb.mxu1 %v5758_v52  ;;  %3111 = vmatpush.bf16.msrb.mxu2 %v5682_v22  ;;  %v5846_v52 = vor.u32 %v6762_v47, %v5845_v44  ;;  %v2751_v22 = vld [vmem:[#allocation2 + $0x44] ss:$8 sm:$0x3]  ;;  %v6754_v44 = vld [vmem:[#allocation24 + $0x34] sm:$0xf0] }
 0x712   :  { %3123 = vmatpush.bf16.msrb.mxu3 %v5762_v53  ;;  %v5837_v53 = vld [vmem:[#allocation24 + $0x60] sm:$0xf]  ;;  %v2754_v26 = vperm.slane %v2751_v22, 1  ;;  %v6753_v47 = vld [vmem:[#allocation24 + $0x34] sm:$0xf] }
 0x713   :  { %3082 = vmatpush.bf16.msrb.mxu0 %v5686_v2  ;;  %v6758_v2 = vld [vmem:[#allocation24 + $0x54] sm:$0xf0] }
 0x715   :  { %3096 = vmatpush.bf16.msrb.mxu1 %v5750_v5  ;;  %3112 = vmatpush.bf16.msrb.mxu2 %v5674_v34  ;;  %v5901_v5 = vld [vmem:[#allocation24 + $0xe0] sm:$0xf] }
 0x716   :  { %3124 = vmatpush.bf16.msrb.mxu3 %v5754_v12  ;;  %v5902_v8 = vor.u32 %v6776_v6, %v5901_v5  ;;  %v5830_v12 = vor.u32 %v6758_v2, %v5829_v0  ;;  %v6770_v0 = vld [vmem:[#allocation24 + $0xb4] sm:$0xf0]  ;;  %v6769_v2 = vld [vmem:[#allocation24 + $0xb4] sm:$0xf]  ;;  %v5797_v6 = vld [vmem:[#allocation24 + $0x10] sm:$0xf] }
 0x717   :  { %3083 = vmatpush.bf16.msrb.mxu0 %v5678_v16  ;;  %v6756_v16 = vld [vmem:[#allocation24 + $0x44] sm:$0xf0]  ;;  %v5882_v5 = vor.u32 %v6769_v2, %v5879_v4 }
 0x718   :  { %v5822_v20 = vor.u32 %v6756_v16, %v5821_v15  ;;  %v6768_v15 = vld [vmem:[#allocation24 + $0xa4] sm:$0xf0]  ;;  %v6767_v16 = vld [vmem:[#allocation24 + $0xa4] sm:$0xf] }
 0x719   :  { %3097 = vmatpush.bf16.msrb.mxu1 %v5742_v21  ;;  %3113 = vmatpush.bf16.msrb.mxu2 %v5666_v49  ;;  %v5826_v21 = vor.u32 %v6755_v18, %v5823_v19  ;;  %v5894_v49 = vor.u32 %v6774_v48, %v5893_v46  ;;  %v5871_v19 = vld [vmem:[#allocation24 + $0xa8] sm:$0xf0]  ;;  %v6835_v46 = vld [vmem:[#allocation25 + $0x1c4] sm:$0xf] }
 0x71a   :  { %3125 = vmatpush.bf16.msrb.mxu3 %v5746_v25  ;;  %v2753_v25 = vperm.slane %v2751_v22, 0  ;;  %v6748_v22 = vld [vmem:[#allocation24 + $0x4] sm:$0xf0] }
 0x71b   :  { %3084 = vmatpush.bf16.msrb.mxu0 %v5670_v29 }
 0x71d   :  { %3098 = vmatpush.bf16.msrb.mxu1 %v5734_v33 }
 0x71e   :  { %3126 = vmatpush.bf16.msrb.mxu3 %v5738_v37 }
 0x71f   :  { %3085 = vmatpush.bf16.msrb.mxu0 %v5662_v42 }
 0x721   :  { %3099 = vmatpush.bf16.msrb.mxu1 %v5726_v1  ;;  %v6773_v1 = vld [vmem:[#allocation24 + $0xd4] sm:$0xf] }
 0x722   :  { %3127 = vmatpush.bf16.msrb.mxu3 %v5730_v43  ;;  %v5898_v39 = vor.u32 %v6773_v1, %v5895_v50  ;;  %v5813_v43 = vld [vmem:[#allocation24 + $0x30] sm:$0xf]  ;;  %v6143_v1 = vld [vmem:[#allocation25 + $0x1e0] sm:$0xf0]  ;;  %v6831_v50 = vld [vmem:[#allocation25 + $0x19c] sm:$0xf0] }
 0x723   :  { %3347 = vmatpush.bf16.msra.mxu0 %v5846_v52  ;;  %v5815_v52 = vld [vmem:[#allocation24 + $0x38] sm:$0xf0] }
 0x78b   :  { %v2722_v58 = vpop.f32.mrf.mxu1 }
 0x78c   :  { %v2723_v54 = vadd.f32 %v2722_v58, %v2664_v17  ;;  %v6760_v58 = vld [vmem:[#allocation24 + $0x64] sm:$0xf0] }
 0x78e   :  { %v2729_v55 = vmul.f32 0.01, %v2723_v54  ;;  %vm2727_vm12 = vcmp.ge.f32.partialorder %v2723_v54, 0.0 }
 0x790   :  { %v2731_v59 = vsel %vm2727_vm12, %v2723_v54, %v2729_v55  ;;  %v6759_v54 = vld [vmem:[#allocation24 + $0x64] sm:$0xf]  ;;  %v5909_v55 = vld [vmem:[#allocation24 + $0xf0] sm:$0xf] }
 0x793   :  { %v2724_v10 = vpop.f32.mrf.mxu1 }
 0x794   :  { %v2725_v56 = vadd.f32 %v2724_v10, %v2664_v17  ;;  %v5850_v17 = vor.u32 %v6761_v51, %v5847_v7  ;;  %v5839_v10 = vld [vmem:[#allocation24 + $0x68] sm:$0xf0]  ;;  %v5814_v51 = vor.u32 %v6754_v44, %v5813_v43  ;;  %v5818_v7 = vor.u32 %v6753_v47, %v5815_v52  ;;  %v6827_v43 = vld [vmem:[#allocation25 + $0x184] sm:$0xf]  ;;  %v6397_v47 = vld [vmem:[#allocation25 + $0x3c0] sm:$0xf] }
 0x795   :  { %v6111_v44 = vld [vmem:[#allocation25 + $0x1a0] sm:$0xf0]  ;;  %v6903_v52 = vld [vmem:[#allocation25 + $0x3dc] sm:$0xf0] }
 0x796   :  { %vm2728_vm13 = vcmp.ge.f32.partialorder %v2725_v56, 0.0  ;;  %v2730_v57 = vmul.f32 0.01, %v2725_v56 }
 0x798   :  { %v2732_v60 = vsel %vm2728_vm13, %v2725_v56, %v2730_v57  ;;  %v5838_v56 = vor.u32 %v6760_v58, %v5837_v53  ;;  %v6778_v57 = vld [vmem:[#allocation24 + $0xf4] sm:$0xf0]  ;;  %v5885_v53 = vld [vmem:[#allocation24 + $0xc0] sm:$0xf]  ;;  %v6772_v58 = vld [vmem:[#allocation24 + $0xc4] sm:$0xf0] }
 0x799   :  { %v2733_v61 = vpack.c.bf16 %v2732_v60, %v2731_v59  ;;  %v6777_v59 = vld [vmem:[#allocation24 + $0xf4] sm:$0xf]  ;;  %v5911_v60 = vld [vmem:[#allocation24 + $0xf8] sm:$0xf0]  ;;  %v5910_v62 = vor.u32 %v6778_v57, %v5909_v55  ;;  %v6752_v57 = vld [vmem:[#allocation24 + $0x24] sm:$0xf0] }
 0x79a   :  { %v5914_v63 = vor.u32 %v6777_v59, %v5911_v60  ;;  %3348 = vmatpush.bf16.msra.mxu0 %v5838_v56  ;;  %v5805_v56 = vld [vmem:[#allocation24 + $0x20] sm:$0xf]  ;;  %v6751_v59 = vld [vmem:[#allocation24 + $0x24] sm:$0xf] }
 0x79b   :  { %2845 = vmatmul.bf16.vlgmr.msra.gmra.mxu2 %v2733_v61  ;;  %2859 = vmatmul.bf16.vlgmr.msra.gmra.mxu3 %v2733_v61  ;;  %v5842_v61 = vor.u32 %v6759_v54, %v5839_v10  ;;  %v5886_v54 = vor.u32 %v6772_v58, %v5885_v53  ;;  %v5887_v10 = vld [vmem:[#allocation24 + $0xc8] sm:$0xf0]  ;;  %v5806_v60 = vor.u32 %v6752_v57, %v5805_v56  ;;  %v6399_v53 = vld [vmem:[#allocation25 + $0x3e0] sm:$0xf0] }
 0x79c   :  { %3375 = vmatpush.bf16.msra.mxu2 %v5850_v17  ;;  %3361 = vmatpush.bf16.msra.mxu1 %v5910_v62  ;;  %v6771_v17 = vld [vmem:[#allocation24 + $0xc4] sm:$0xf]  ;;  %v6114_v58 = vor.u32 %v6827_v43, %v6111_v44 }
 0x79d   :  { %3389 = vmatpush.bf16.msra.mxu3 %v5914_v63  ;;  %v5890_v55 = vor.u32 %v6771_v17, %v5887_v10  ;;  %v5877_v63 = vld [vmem:[#allocation24 + $0xb0] sm:$0xf]  ;;  %v6398_v17 = vor.u32 %v6903_v52, %v6397_v47  ;;  %v6077_v10 = vld [vmem:[#allocation25 + $0x140] sm:$0xf]  ;;  %v6819_v56 = vld [vmem:[#allocation25 + $0x144] sm:$0xf] }
 0x79e   :  { %3349 = vmatpush.bf16.msra.mxu0 %v5830_v12  ;;  %v5878_v3 = vor.u32 %v6770_v0, %v5877_v63  ;;  %v5799_v12 = vld [vmem:[#allocation24 + $0x18] sm:$0xf0]  ;;  %v6079_v57 = vld [vmem:[#allocation25 + $0x160] sm:$0xf0] }
 0x79f   :  { %v6367_v63 = vld [vmem:[#allocation25 + $0x3a0] sm:$0xf0] }
 0x7a0   :  { %3376 = vmatpush.bf16.msra.mxu2 %v5842_v61  ;;  %3362 = vmatpush.bf16.msra.mxu1 %v5902_v8  ;;  %v5807_v61 = vld [vmem:[#allocation24 + $0x28] sm:$0xf0]  ;;  %v6750_v8 = vld [vmem:[#allocation24 + $0x14] sm:$0xf0]  ;;  %v6795_v47 = vld [vmem:[#allocation25 + $0x84] sm:$0xf] }
 0x7a1   :  { %3390 = vmatpush.bf16.msra.mxu3 %v5906_v13  ;;  %v5810_v62 = vor.u32 %v6751_v59, %v5807_v61  ;;  %v5798_v11 = vor.u32 %v6750_v8, %v5797_v6  ;;  %v5802_v13 = vor.u32 %v6749_v9, %v5799_v12  ;;  %v6365_v59 = vld [vmem:[#allocation25 + $0x380] sm:$0xf]  ;;  %v6082_v8 = vor.u32 %v6819_v56, %v6079_v57  ;;  %v6883_v12 = vld [vmem:[#allocation25 + $0x344] sm:$0xf] }
 0x7a2   :  { %3350 = vmatpush.bf16.msra.mxu0 %v5822_v20  ;;  %v5874_v20 = vor.u32 %v6767_v16, %v5871_v19  ;;  %v6815_v6 = vld [vmem:[#allocation25 + $0x11c] sm:$0xf0]  ;;  %v6335_v16 = vld [vmem:[#allocation25 + $0x360] sm:$0xf0] }
 0x7a3   :  { %v6333_v9 = vld [vmem:[#allocation25 + $0x340] sm:$0xf]  ;;  %v6338_v19 = vor.u32 %v6883_v12, %v6335_v16 }
 0x7a4   :  { %3377 = vmatpush.bf16.msra.mxu2 %v5834_v14  ;;  %3363 = vmatpush.bf16.msra.mxu1 %v5894_v49  ;;  %v5869_v14 = vld [vmem:[#allocation24 + $0xa0] sm:$0xf] }
 0x7a5   :  { %3391 = vmatpush.bf16.msra.mxu3 %v5898_v39  ;;  %v5870_v18 = vor.u32 %v6768_v15, %v5869_v14  ;;  %v6109_v49 = vld [vmem:[#allocation25 + $0x180] sm:$0xf]  ;;  %v6146_v39 = vor.u32 %v6835_v46, %v6143_v1  ;;  %v6811_v14 = vld [vmem:[#allocation25 + $0x104] sm:$0xf] }
 0x7a6   :  { %3351 = vmatpush.bf16.msra.mxu0 %v5814_v51  ;;  %v6110_v51 = vor.u32 %v6831_v50, %v6109_v49  ;;  %v6047_v15 = vld [vmem:[#allocation25 + $0x120] sm:$0xf0]  ;;  %v5981_v50 = vld [vmem:[#allocation25 + $0x80] sm:$0xf] }
 0x7a7   :  { %v6271_v46 = vld [vmem:[#allocation25 + $0x2e0] sm:$0xf0] }
 0x7a8   :  { %3378 = vmatpush.bf16.msra.mxu2 %v5826_v21  ;;  %3364 = vmatpush.bf16.msra.mxu1 %v5886_v54  ;;  %v5789_v21 = vld [vmem:[#allocation24] sm:$0xf] }
 0x7a9   :  { %3392 = vmatpush.bf16.msra.mxu3 %v5890_v55  ;;  %v6823_v55 = vld [vmem:[#allocation25 + $0x15c] sm:$0xf0] }
 0x7aa   :  { %3352 = vmatpush.bf16.msra.mxu0 %v5806_v60  ;;  %v6895_v60 = vld [vmem:[#allocation25 + $0x39c] sm:$0xf0] }
 0x7ab   :  { %v6366_v61 = vor.u32 %v6895_v60, %v6365_v59  ;;  %v6791_v60 = vld [vmem:[#allocation25 + $0x5c] sm:$0xf0] }
 0x7ac   :  { %3379 = vmatpush.bf16.msra.mxu2 %v5818_v7  ;;  %3365 = vmatpush.bf16.msra.mxu1 %v5878_v3  ;;  %v6899_v7 = vld [vmem:[#allocation25 + $0x3c4] sm:$0xf]  ;;  %v6078_v3 = vor.u32 %v6823_v55, %v6077_v10  ;;  %v6863_v10 = vld [vmem:[#allocation25 + $0x29c] sm:$0xf0] }
 0x7ad   :  { %3393 = vmatpush.bf16.msra.mxu3 %v5882_v5  ;;  %v6402_v54 = vor.u32 %v6899_v7, %v6399_v53  ;;  %v6045_v5 = vld [vmem:[#allocation25 + $0x100] sm:$0xf]  ;;  %v6239_v55 = vld [vmem:[#allocation25 + $0x2a0] sm:$0xf0] }
 0x7ae   :  { %3353 = vmatpush.bf16.msra.mxu0 %v5798_v11  ;;  %v6887_v11 = vld [vmem:[#allocation25 + $0x35c] sm:$0xf0] }
 0x7b0   :  { %3380 = vmatpush.bf16.msra.mxu2 %v5810_v62  ;;  %3366 = vmatpush.bf16.msra.mxu1 %v5870_v18  ;;  %v6891_v62 = vld [vmem:[#allocation25 + $0x384] sm:$0xf]  ;;  %v6334_v18 = vor.u32 %v6887_v11, %v6333_v9 }
 0x7b1   :  { %3394 = vmatpush.bf16.msra.mxu3 %v5874_v20  ;;  %v6370_v4 = vor.u32 %v6891_v62, %v6367_v63  ;;  %v6301_v20 = vld [vmem:[#allocation25 + $0x300] sm:$0xf]  ;;  %v6787_v62 = vld [vmem:[#allocation25 + $0x44] sm:$0xf] }
 0x7b2   :  { %v5951_v63 = vld [vmem:[#allocation25 + $0x60] sm:$0xf0] }
 0x7b4   :  { %3381 = vmatpush.bf16.msra.mxu2 %v5802_v13 }
 0x81e   :  { %v2846_v23 = vpop.f32.mrf.mxu2  ;;  %v2860_v24 = vpop.f32.mrf.mxu3 }
 0x81f   :  { %v2847_v27 = vadd.f32 %v2846_v23, %v2753_v25  ;;  %v2861_v28 = vadd.f32 %v2860_v24, %v2754_v26  ;;  %v6747_v23 = vld [vmem:[#allocation24 + $0x4] sm:$0xf]  ;;  %v5790_v24 = vor.u32 %v6748_v22, %v5789_v21  ;;  %v6046_v21 = vor.u32 %v6815_v6, %v6045_v5  ;;  %v6879_v22 = vld [vmem:[#allocation25 + $0x31c] sm:$0xf0] }
 0x820   :  { %v5917_v5 = vld [vmem:[#allocation25] sm:$0xf] }
 0x821   :  { %v2869_v31 = vmul.f32 0.01, %v2847_v27  ;;  %v2870_v32 = vmul.f32 0.01, %v2861_v28  ;;  %vm2865_vm14 = vcmp.ge.f32.partialorder %v2847_v27, 0.0  ;;  %vm2866_vm15 = vcmp.ge.f32.partialorder %v2861_v28, 0.0  ;;  %3354 = vmatpush.bf16.msra.mxu0 %v5790_v24 }
 0x822   :  { %v6303_v24 = vld [vmem:[#allocation25 + $0x320] sm:$0xf0]  ;;  %v6783_v6 = vld [vmem:[#allocation25 + $0x1c] sm:$0xf0] }
 0x823   :  { %v2873_v37 = vsel %vm2865_vm14, %v2847_v27, %v2869_v31  ;;  %v2874_v38 = vsel %vm2866_vm15, %v2861_v28, %v2870_v32  ;;  %v5861_v27 = vld [vmem:[#allocation24 + $0x90] sm:$0xf]  ;;  %v6766_v28 = vld [vmem:[#allocation24 + $0x94] sm:$0xf0]  ;;  %v5863_v31 = vld [vmem:[#allocation24 + $0x98] sm:$0xf0] }
 0x826   :  { %v2848_v29 = vpop.f32.mrf.mxu2  ;;  %v2862_v30 = vpop.f32.mrf.mxu3 }
 0x827   :  { %v2849_v33 = vadd.f32 %v2848_v29, %v2753_v25  ;;  %v2863_v34 = vadd.f32 %v2862_v30, %v2754_v26  ;;  %v5791_v25 = vld [vmem:[#allocation24 + $0x8] sm:$0xf0]  ;;  %v6765_v29 = vld [vmem:[#allocation24 + $0x94] sm:$0xf]  ;;  %v5862_v30 = vor.u32 %v6766_v28, %v5861_v27  ;;  %v6013_v27 = vld [vmem:[#allocation25 + $0xc0] sm:$0xf] }
 0x828   :  { %v5794_v26 = vor.u32 %v6747_v23, %v5791_v25  ;;  %v5866_v32 = vor.u32 %v6765_v29, %v5863_v31  ;;  %v6875_v23 = vld [vmem:[#allocation25 + $0x304] sm:$0xf]  ;;  %v6807_v28 = vld [vmem:[#allocation25 + $0xdc] sm:$0xf0] }
 0x829   :  { %vm2867_vm0 = vcmp.ge.f32.partialorder %v2849_v33, 0.0  ;;  %v2871_v35 = vmul.f32 0.01, %v2849_v33  ;;  %vm2868_vm1 = vcmp.ge.f32.partialorder %v2863_v34, 0.0  ;;  %v2872_v36 = vmul.f32 0.01, %v2863_v34  ;;  %3367 = vmatpush.bf16.msra.mxu1 %v5862_v30 }
 0x82a   :  { %3382 = vmatpush.bf16.msra.mxu2 %v5794_v26  ;;  %3395 = vmatpush.bf16.msra.mxu3 %v5866_v32  ;;  %v6050_v26 = vor.u32 %v6811_v14, %v6047_v15  ;;  %v6803_v30 = vld [vmem:[#allocation25 + $0xc4] sm:$0xf] }
 0x82b   :  { %v2875_v40 = vsel %vm2867_vm0, %v2849_v33, %v2871_v35  ;;  %v2876_v41 = vsel %vm2868_vm1, %v2863_v34, %v2872_v36  ;;  %v5853_v33 = vld [vmem:[#allocation24 + $0x80] sm:$0xf]  ;;  %v6764_v34 = vld [vmem:[#allocation24 + $0x84] sm:$0xf0]  ;;  %v6763_v35 = vld [vmem:[#allocation24 + $0x84] sm:$0xf] }
 0x82c   :  { %v2877_v42 = vpack.c.bf16 %v2875_v40, %v2873_v37  ;;  %v2878_v45 = vpack.c.bf16 %v2876_v41, %v2874_v38  ;;  %v5854_v36 = vor.u32 %v6764_v34, %v5853_v33  ;;  %v5855_v37 = vld [vmem:[#allocation24 + $0x88] sm:$0xf0]  ;;  %v6015_v31 = vld [vmem:[#allocation25 + $0xe0] sm:$0xf0]  ;;  %v6302_v34 = vor.u32 %v6879_v22, %v6301_v20 }
 0x82d   :  { %v7817_v38 = vld [vmem:[#allocation2 + $0x45] ss:$8 sm:$0x3]  ;;  %v5858_v40 = vor.u32 %v6763_v35, %v5855_v37  ;;  %v6306_v35 = vor.u32 %v6875_v23, %v6303_v24  ;;  %v6018_v49 = vor.u32 %v6803_v30, %v6015_v31  ;;  %v6149_v23 = vld [vmem:[#allocation25 + $0x1c8] sm:$0xf]  ;;  %v5918_v31 = vor.u32 %v6783_v6, %v5917_v5 }
 0x82e   :  { %3086 = vmatmul.bf16.vlgmr.msrb.gmra.mxu0 %v2877_v42  ;;  %3100 = vmatmul.bf16.vlgmr.msrb.gmra.mxu1 %v2878_v45  ;;  %v2914_v41 = vperm.slane %v7817_v38, 0  ;;  %v2915_v25 = vperm.slane %v7817_v38, 1  ;;  %v6851_v14 = vld [vmem:[#allocation25 + $0x244] sm:$0xf]  ;;  %v6840_v24 = vld [vmem:[#allocation25 + $0x1e4] sm:$0xf0] }
 0x82f   :  { %3114 = vmatmul.bf16.vlgmr.msrb.gmra.mxu2 %v2877_v42  ;;  %3128 = vmatmul.bf16.vlgmr.msrb.gmra.mxu3 %v2878_v45  ;;  %v6141_v42 = vld [vmem:[#allocation25 + $0x1c0] sm:$0xf]  ;;  %v6207_v15 = vld [vmem:[#allocation25 + $0x260] sm:$0xf0]  ;;  %v6151_v38 = vld [vmem:[#allocation25 + $0x1e8] sm:$0xf0] }
 0x830   :  { %3368 = vmatpush.bf16.msra.mxu1 %v5854_v36  ;;  %3396 = vmatpush.bf16.msra.mxu3 %v5858_v40  ;;  %v6839_v45 = vld [vmem:[#allocation25 + $0x1dc] sm:$0xf0]  ;;  %v6014_v40 = vor.u32 %v6807_v28, %v6013_v27  ;;  %v6779_v20 = vld [vmem:[#allocation25 + $0x4] sm:$0xf]  ;;  %v6210_v27 = vor.u32 %v6851_v14, %v6207_v15  ;;  %v6341_v6 = vld [vmem:[#allocation25 + $0x348] sm:$0xf] }
 0x831   :  { %v6142_v48 = vor.u32 %v6839_v45, %v6141_v42  ;;  %4234 = vmatpush.bf16.msrb.mxu2 %v6146_v39  ;;  %v6269_v36 = vld [vmem:[#allocation25 + $0x2c0] sm:$0xf]  ;;  %v6867_v45 = vld [vmem:[#allocation25 + $0x2c4] sm:$0xf]  ;;  %v6021_v14 = vld [vmem:[#allocation25 + $0xc8] sm:$0xf] }
 0x832   :  { %v6871_v42 = vld [vmem:[#allocation25 + $0x2dc] sm:$0xf0]  ;;  %v6274_v53 = vor.u32 %v6867_v45, %v6271_v46  ;;  %v6900_v45 = vld [vmem:[#allocation25 + $0x3cc] sm:$0xf]  ;;  %v6808_v15 = vld [vmem:[#allocation25 + $0xe4] sm:$0xf0] }
 0x833   :  { %4206 = vmatpush.bf16.msrb.mxu0 %v6142_v48  ;;  %v6799_v39 = vld [vmem:[#allocation25 + $0x9c] sm:$0xf0]  ;;  %v6270_v7 = vor.u32 %v6871_v42, %v6269_v36  ;;  %v6150_v42 = vor.u32 %v6840_v24, %v6149_v23  ;;  %v6407_v46 = vld [vmem:[#allocation25 + $0x3e8] sm:$0xf0] }
 0x834   :  { %4220 = vmatpush.bf16.msrb.mxu1 %v6398_v17  ;;  %4248 = vmatpush.bf16.msrb.mxu3 %v6402_v54  ;;  %v6237_v17 = vld [vmem:[#allocation25 + $0x280] sm:$0xf]  ;;  %v5982_v54 = vor.u32 %v6799_v39, %v5981_v50  ;;  %v6832_v50 = vld [vmem:[#allocation25 + $0x1a4] sm:$0xf0]  ;;  %v6876_v23 = vld [vmem:[#allocation25 + $0x30c] sm:$0xf] }
 0x835   :  { %4235 = vmatpush.bf16.msrb.mxu2 %v6114_v58  ;;  %v5949_v58 = vld [vmem:[#allocation25 + $0x40] sm:$0xf] }
 0x836   :  { %v5950_v12 = vor.u32 %v6791_v60, %v5949_v58  ;;  %v6173_v28 = vld [vmem:[#allocation25 + $0x200] sm:$0xf]  ;;  %v6085_v58 = vld [vmem:[#allocation25 + $0x148] sm:$0xf] }
 0x837   :  { %4207 = vmatpush.bf16.msrb.mxu0 %v6110_v51  ;;  %v5983_v51 = vld [vmem:[#allocation25 + $0xa0] sm:$0xf0] }
 0x838   :  { %4221 = vmatpush.bf16.msrb.mxu1 %v6366_v61  ;;  %4249 = vmatpush.bf16.msrb.mxu3 %v6370_v4  ;;  %v5986_v59 = vor.u32 %v6795_v47, %v5983_v51 }
 0x839   :  { %4236 = vmatpush.bf16.msrb.mxu2 %v6082_v8  ;;  %v6205_v8 = vld [vmem:[#allocation25 + $0x240] sm:$0xf] }
 0x83b   :  { %4208 = vmatpush.bf16.msrb.mxu0 %v6078_v3  ;;  %v6238_v3 = vor.u32 %v6863_v10, %v6237_v17  ;;  %v6824_v17 = vld [vmem:[#allocation25 + $0x164] sm:$0xf0] }
 0x83c   :  { %4222 = vmatpush.bf16.msrb.mxu1 %v6334_v18  ;;  %4250 = vmatpush.bf16.msrb.mxu3 %v6338_v19  ;;  %v5954_v19 = vor.u32 %v6787_v62, %v5951_v63  ;;  %v6086_v10 = vor.u32 %v6824_v17, %v6085_v58  ;;  %v6053_v62 = vld [vmem:[#allocation25 + $0x108] sm:$0xf]  ;;  %v5927_v58 = vld [vmem:[#allocation25 + $0x28] sm:$0xf0] }
 0x83d   :  { %4237 = vmatpush.bf16.msrb.mxu2 %v6050_v26  ;;  %v6836_v26 = vld [vmem:[#allocation25 + $0x1cc] sm:$0xf]  ;;  %v6816_v63 = vld [vmem:[#allocation25 + $0x124] sm:$0xf0] }
 0x83f   :  { %4209 = vmatpush.bf16.msrb.mxu0 %v6046_v21  ;;  %v5919_v21 = vld [vmem:[#allocation25 + $0x20] sm:$0xf0] }
 0x840   :  { %4223 = vmatpush.bf16.msrb.mxu1 %v6302_v34  ;;  %4251 = vmatpush.bf16.msrb.mxu3 %v6306_v35  ;;  %v6405_v34 = vld [vmem:[#allocation25 + $0x3c8] sm:$0xf] }
 0x841   :  { %4238 = vmatpush.bf16.msrb.mxu2 %v6018_v49  ;;  %v6904_v35 = vld [vmem:[#allocation25 + $0x3e4] sm:$0xf0] }
 0x842   :  { %v6117_v49 = vld [vmem:[#allocation25 + $0x188] sm:$0xf]  ;;  %v6406_v51 = vor.u32 %v6904_v35, %v6405_v34  ;;  %v6868_v34 = vld [vmem:[#allocation25 + $0x2cc] sm:$0xf] }
 0x843   :  { %4210 = vmatpush.bf16.msrb.mxu0 %v6014_v40  ;;  %v5922_v40 = vor.u32 %v6779_v20, %v5919_v21  ;;  %v6309_v21 = vld [vmem:[#allocation25 + $0x308] sm:$0xf] }
 0x844   :  { %4224 = vmatpush.bf16.msrb.mxu1 %v6270_v7  ;;  %4252 = vmatpush.bf16.msrb.mxu3 %v6274_v53  ;;  %v6118_v7 = vor.u32 %v6832_v50, %v6117_v49  ;;  %v6245_v49 = vld [vmem:[#allocation25 + $0x288] sm:$0xf] }
 0x845   :  { %4239 = vmatpush.bf16.msrb.mxu2 %v5986_v59  ;;  %v6892_v59 = vld [vmem:[#allocation25 + $0x38c] sm:$0xf]  ;;  %v6864_v50 = vld [vmem:[#allocation25 + $0x2a4] sm:$0xf0] }
 0x847   :  { %4211 = vmatpush.bf16.msrb.mxu0 %v5982_v54  ;;  %v6820_v54 = vld [vmem:[#allocation25 + $0x14c] sm:$0xf] }
 0x848   :  { %4225 = vmatpush.bf16.msrb.mxu1 %v6238_v3  ;;  %v6812_v3 = vld [vmem:[#allocation25 + $0x10c] sm:$0xf] }
 0x849   :  { %4240 = vmatpush.bf16.msrb.mxu2 %v5954_v19  ;;  %v6023_v19 = vld [vmem:[#allocation25 + $0xe8] sm:$0xf0] }
 0x84b   :  { %4212 = vmatpush.bf16.msrb.mxu0 %v5950_v12  ;;  %v6343_v12 = vld [vmem:[#allocation25 + $0x368] sm:$0xf0] }
 0x84d   :  { %4241 = vmatpush.bf16.msrb.mxu2 %v5922_v40  ;;  %v5957_v40 = vld [vmem:[#allocation25 + $0x48] sm:$0xf] }
 0x84f   :  { %4213 = vmatpush.bf16.msrb.mxu0 %v5918_v31 }
 0x8ab   :  { %v3087_v0 = vpop.f32.mrf.mxu0  ;;  %v3101_v2 = vpop.f32.mrf.mxu1 }
 0x8ac   :  { %v3088_v13 = vadd.f32 %v3087_v0, %v2914_v41 }
 0x8ae   :  { %v3102_v29 = vadd.f32 %v3101_v2, %v3088_v13  ;;  %v6855_v13 = vld [vmem:[#allocation25 + $0x25c] sm:$0xf0] }
 0x8b0   :  { %v3138_v43 = vmul.f32 0.01, %v3102_v29  ;;  %vm3134_vm2 = vcmp.ge.f32.partialorder %v3102_v29, 0.0 }
 0x8b2   :  { %v3115_v32 = vpop.f32.mrf.mxu2  ;;  %v3129_v33 = vpop.f32.mrf.mxu3  ;;  %v3142_v61 = vsel %vm3134_vm2, %v3102_v29, %v3138_v43  ;;  %v6847_v29 = vld [vmem:[#allocation25 + $0x21c] sm:$0xf0]  ;;  %v6828_v43 = vld [vmem:[#allocation25 + $0x18c] sm:$0xf] }
 0x8b3   :  { %v3089_v37 = vpop.f32.mrf.mxu0  ;;  %v3116_v48 = vadd.f32 %v3115_v32, %v2915_v25  ;;  %v3103_v44 = vpop.f32.mrf.mxu1  ;;  %v6843_v32 = vld [vmem:[#allocation25 + $0x204] sm:$0xf]  ;;  %v6174_v39 = vor.u32 %v6847_v29, %v6173_v28  ;;  %v6796_v28 = vld [vmem:[#allocation25 + $0x8c] sm:$0xf] }
 0x8b4   :  { %v3090_v1 = vadd.f32 %v3089_v37, %v2914_v41  ;;  %v6859_v41 = vld [vmem:[#allocation25 + $0x284] sm:$0xf] }
 0x8b5   :  { %v3130_v56 = vadd.f32 %v3129_v33, %v3116_v48  ;;  %v6242_v4 = vor.u32 %v6859_v41, %v6239_v55  ;;  %v6175_v33 = vld [vmem:[#allocation25 + $0x220] sm:$0xf0]  ;;  %v6087_v41 = vld [vmem:[#allocation25 + $0x168] sm:$0xf0] }
 0x8b6   :  { %v3104_v52 = vadd.f32 %v3103_v44, %v3090_v1  ;;  %v6154_v1 = vor.u32 %v6836_v26, %v6151_v38  ;;  %v6119_v44 = vld [vmem:[#allocation25 + $0x1a8] sm:$0xf0]  ;;  %v6178_v47 = vor.u32 %v6843_v32, %v6175_v33  ;;  %v6090_v55 = vor.u32 %v6820_v54, %v6087_v41  ;;  %v6277_v32 = vld [vmem:[#allocation25 + $0x2c8] sm:$0xf] }
 0x8b7   :  { %vm3135_vm4 = vcmp.ge.f32.partialorder %v3130_v56, 0.0  ;;  %v3139_v16 = vmul.f32 0.01, %v3130_v56  ;;  %4253 = vmatpush.bf16.msrb.mxu3 %v6242_v4  ;;  %v6122_v53 = vor.u32 %v6828_v43, %v6119_v44  ;;  %v6055_v4 = vld [vmem:[#allocation25 + $0x128] sm:$0xf0]  ;;  %v6246_v43 = vor.u32 %v6864_v50, %v6245_v49 }
 0x8b8   :  { %vm3136_vm3 = vcmp.ge.f32.partialorder %v3104_v52, 0.0  ;;  %v3140_v57 = vmul.f32 0.01, %v3104_v52  ;;  %v6058_v5 = vor.u32 %v6812_v3, %v6055_v4  ;;  %v6311_v26 = vld [vmem:[#allocation25 + $0x328] sm:$0xf0] }
 0x8b9   :  { %v3143_v36 = vsel %vm3135_vm4, %v3130_v56, %v3139_v16  ;;  %v6373_v56 = vld [vmem:[#allocation25 + $0x388] sm:$0xf]  ;;  %v6804_v16 = vld [vmem:[#allocation25 + $0xcc] sm:$0xf]  ;;  %v6314_v38 = vor.u32 %v6876_v23, %v6311_v26  ;;  %v6837_v23 = vld [vmem:[#allocation25 + $0x1d4] sm:$0xf] }
 0x8ba   :  { %v3144_v0 = vsel %vm3136_vm3, %v3104_v52, %v3140_v57  ;;  %v3117_v2 = vpop.f32.mrf.mxu2  ;;  %v3131_v18 = vpop.f32.mrf.mxu3  ;;  %v6410_v52 = vor.u32 %v6900_v45, %v6407_v46  ;;  %v6896_v57 = vld [vmem:[#allocation25 + $0x3a4] sm:$0xf0]  ;;  %v6026_v20 = vor.u32 %v6804_v16, %v6023_v19  ;;  %v6788_v45 = vld [vmem:[#allocation25 + $0x4c] sm:$0xf] }
 0x8bb   :  { %v3146_v9 = vpack.c.bf16 %v3144_v0, %v3142_v61  ;;  %v3118_v11 = vadd.f32 %v3117_v2, %v2915_v25  ;;  %v6206_v25 = vor.u32 %v6855_v13, %v6205_v8  ;;  %4254 = vmatpush.bf16.msrb.mxu3 %v6210_v27  ;;  %v6374_v60 = vor.u32 %v6896_v57, %v6373_v56  ;;  %v6375_v61 = vld [vmem:[#allocation25 + $0x3a8] sm:$0xf0]  ;;  %v6888_v8 = vld [vmem:[#allocation25 + $0x364] sm:$0xf0] }
 0x8bc   :  { %v6378_v0 = vor.u32 %v6892_v59, %v6375_v61  ;;  %v6054_v2 = vor.u32 %v6816_v63, %v6053_v62  ;;  %v6800_v27 = vld [vmem:[#allocation25 + $0xa4] sm:$0xf0]  ;;  %v6247_v44 = vld [vmem:[#allocation25 + $0x2a8] sm:$0xf0] }
 0x8bd   :  { %v3132_v22 = vadd.f32 %v3131_v18, %v3118_v11  ;;  %3355 = vmatmul.bf16.vlgmr.msra.gmra.mxu0 %v3146_v9  ;;  %3383 = vmatmul.bf16.vlgmr.msra.gmra.mxu2 %v3146_v9  ;;  %v6884_v9 = vld [vmem:[#allocation25 + $0x34c] sm:$0xf]  ;;  %v6342_v11 = vor.u32 %v6888_v8, %v6341_v6  ;;  %v6022_v18 = vor.u32 %v6808_v15, %v6021_v14  ;;  %v6872_v33 = vld [vmem:[#allocation25 + $0x2e4] sm:$0xf0] }
 0x8be   :  { %4226 = vmatpush.bf16.msrb.mxu1 %v6206_v25  ;;  %4262 = vmatpush.bf16.msra.mxu0 %v6150_v42  ;;  %v6346_v13 = vor.u32 %v6884_v9, %v6343_v12  ;;  %v5989_v25 = vld [vmem:[#allocation25 + $0x88] sm:$0xf]  ;;  %v6278_v35 = vor.u32 %v6872_v33, %v6277_v32  ;;  %v6852_v41 = vld [vmem:[#allocation25 + $0x24c] sm:$0xf] }
 0x8bf   :  { %vm3137_vm5 = vcmp.ge.f32.partialorder %v3132_v22, 0.0  ;;  %v3141_v30 = vmul.f32 0.01, %v3132_v22  ;;  %4290 = vmatpush.bf16.msra.mxu2 %v6154_v1  ;;  %4255 = vmatpush.bf16.msrb.mxu3 %v6178_v47  ;;  %v5990_v29 = vor.u32 %v6800_v27, %v5989_v25  ;;  %v6792_v42 = vld [vmem:[#allocation25 + $0x64] sm:$0xf0] }
 0x8c0   :  { %v5958_v46 = vor.u32 %v6792_v42, %v5957_v40  ;;  %v6213_v54 = vld [vmem:[#allocation25 + $0x248] sm:$0xf]  ;;  %v6215_v56 = vld [vmem:[#allocation25 + $0x268] sm:$0xf0]  ;;  %v6413_v42 = vld [vmem:[#allocation25 + $0x3d0] sm:$0xf] }
 0x8c1   :  { %v3145_v37 = vsel %vm3137_vm5, %v3132_v22, %v3141_v30  ;;  %v6880_v22 = vld [vmem:[#allocation25 + $0x324] sm:$0xf0]  ;;  %v5991_v30 = vld [vmem:[#allocation25 + $0xa8] sm:$0xf0]  ;;  %v6218_v57 = vor.u32 %v6852_v41, %v6215_v56  ;;  %v6383_v41 = vld [vmem:[#allocation25 + $0x3b0] sm:$0xf0] }
 0x8c2   :  { %v3147_v48 = vpack.c.bf16 %v3145_v37, %v3143_v36  ;;  %4227 = vmatpush.bf16.msrb.mxu1 %v6174_v39  ;;  %4263 = vmatpush.bf16.msra.mxu0 %v6118_v7  ;;  %v6310_v24 = vor.u32 %v6880_v22, %v6309_v21  ;;  %v5994_v31 = vor.u32 %v6796_v28, %v5991_v30  ;;  %v6279_v36 = vld [vmem:[#allocation25 + $0x2e8] sm:$0xf0]  ;;  %v6181_v59 = vld [vmem:[#allocation25 + $0x208] sm:$0xf]  ;;  %v6841_v21 = vld [vmem:[#allocation25 + $0x1ec] sm:$0xf0] }
 0x8c3   :  { %4291 = vmatpush.bf16.msra.mxu2 %v6122_v53  ;;  %v6282_v37 = vor.u32 %v6868_v34, %v6279_v36  ;;  %v6860_v39 = vld [vmem:[#allocation25 + $0x28c] sm:$0xf]  ;;  %v6833_v34 = vld [vmem:[#allocation25 + $0x1ac] sm:$0xf0]  ;;  %v6127_v36 = vld [vmem:[#allocation25 + $0x1b0] sm:$0xf0] }
 0x8c4   :  { %3369 = vmatmul.bf16.vlgmr.msra.gmra.mxu1 %v3147_v48  ;;  %3397 = vmatmul.bf16.vlgmr.msra.gmra.mxu3 %v3147_v48  ;;  %v5959_v48 = vld [vmem:[#allocation25 + $0x68] sm:$0xf0]  ;;  %v6250_v47 = vor.u32 %v6860_v39, %v6247_v44  ;;  %v6093_v39 = vld [vmem:[#allocation25 + $0x150] sm:$0xf]  ;;  %v6821_v44 = vld [vmem:[#allocation25 + $0x154] sm:$0xf] }
 0x8c5   :  { %4304 = vmatpush.bf16.msra.mxu3 %v6410_v52  ;;  %v5962_v1 = vor.u32 %v6788_v45, %v5959_v48  ;;  %v6784_v52 = vld [vmem:[#allocation25 + $0x24] sm:$0xf0]  ;;  %v6780_v7 = vld [vmem:[#allocation25 + $0xc] sm:$0xf]  ;;  %v6905_v45 = vld [vmem:[#allocation25 + $0x3ec] sm:$0xf0] }
 0x8c6   :  { %4276 = vmatpush.bf16.msra.mxu1 %v6406_v51  ;;  %4264 = vmatpush.bf16.msra.mxu0 %v6086_v10  ;;  %v5925_v51 = vld [vmem:[#allocation25 + $0x8] sm:$0xf]  ;;  %v5930_v17 = vor.u32 %v6780_v7, %v5927_v58  ;;  %v6844_v62 = vld [vmem:[#allocation25 + $0x20c] sm:$0xf]  ;;  %v6415_v48 = vld [vmem:[#allocation25 + $0x3f0] sm:$0xf0]  ;;  %v6414_v7 = vor.u32 %v6905_v45, %v6413_v42 }
 0x8c7   :  { %4292 = vmatpush.bf16.msra.mxu2 %v6090_v55  ;;  %v5926_v53 = vor.u32 %v6784_v52, %v5925_v51  ;;  %v6856_v10 = vld [vmem:[#allocation25 + $0x264] sm:$0xf0]  ;;  %v6183_v63 = vld [vmem:[#allocation25 + $0x228] sm:$0xf0]  ;;  %v6381_v58 = vld [vmem:[#allocation25 + $0x390] sm:$0xf] }
 0x8c8   :  { %v6214_v55 = vor.u32 %v6856_v10, %v6213_v54  ;;  %v3181_v3 = vld [vmem:[#allocation2 + $0x46] ss:$8 sm:$0x3]  ;;  %v6897_v54 = vld [vmem:[#allocation25 + $0x3ac] sm:$0xf0] }
 0x8c9   :  { %4305 = vmatpush.bf16.msra.mxu3 %v6378_v0  ;;  %v6186_v0 = vor.u32 %v6844_v62, %v6183_v63  ;;  %v3183_v4 = vperm.slane %v3181_v3, 0  ;;  %v3184_v12 = vperm.slane %v3181_v3, 1  ;;  %v6893_v10 = vld [vmem:[#allocation25 + $0x394] sm:$0xf]  ;;  %v6382_v62 = vor.u32 %v6897_v54, %v6381_v58  ;;  %v6253_v45 = vld [vmem:[#allocation25 + $0x290] sm:$0xf] }
 0x8ca   :  { %4277 = vmatpush.bf16.msra.mxu1 %v6374_v60  ;;  %4265 = vmatpush.bf16.msra.mxu0 %v6054_v2  ;;  %v6848_v60 = vld [vmem:[#allocation25 + $0x224] sm:$0xf0]  ;;  %v6386_v63 = vor.u32 %v6893_v10, %v6383_v41  ;;  %v6885_v3 = vld [vmem:[#allocation25 + $0x354] sm:$0xf]  ;;  %v6838_v58 = vld [vmem:[#allocation25 + $0x1dc] sm:$0xf] }
 0x8cb   :  { %4293 = vmatpush.bf16.msra.mxu2 %v6058_v5  ;;  %v6182_v61 = vor.u32 %v6848_v60, %v6181_v59  ;;  %v6817_v59 = vld [vmem:[#allocation25 + $0x12c] sm:$0xf0]  ;;  %v6813_v60 = vld [vmem:[#allocation25 + $0x114] sm:$0xf]  ;;  %v6167_v54 = vld [vmem:[#allocation25 + $0x1f8] sm:$0xf0] }
 0x8cc   :  { %v6221_v10 = vld [vmem:[#allocation25 + $0x250] sm:$0xf] }
 0x8cd   :  { %4306 = vmatpush.bf16.msra.mxu3 %v6346_v13  ;;  %v6857_v41 = vld [vmem:[#allocation25 + $0x26c] sm:$0xf0] }
 0x8ce   :  { %4278 = vmatpush.bf16.msra.mxu1 %v6342_v11  ;;  %4266 = vmatpush.bf16.msra.mxu0 %v6022_v18 }
 0x8cf   :  { %4294 = vmatpush.bf16.msra.mxu2 %v6026_v20  ;;  %v6157_v20 = vld [vmem:[#allocation25 + $0x1d0] sm:$0xf] }
 0x8d0   :  { %v6158_v25 = vor.u32 %v6841_v21, %v6157_v20 }
 0x8d1   :  { %4307 = vmatpush.bf16.msra.mxu3 %v6314_v38 }
 0x8d2   :  { %4279 = vmatpush.bf16.msra.mxu1 %v6310_v24  ;;  %4267 = vmatpush.bf16.msra.mxu0 %v5990_v29  ;;  %v6159_v24 = vld [vmem:[#allocation25 + $0x1f0] sm:$0xf0] }
 0x8d3   :  { %4295 = vmatpush.bf16.msra.mxu2 %v5994_v31  ;;  %v6162_v30 = vor.u32 %v6837_v23, %v6159_v24  ;;  %v6125_v31 = vld [vmem:[#allocation25 + $0x190] sm:$0xf]  ;;  %v6797_v24 = vld [vmem:[#allocation25 + $0x94] sm:$0xf] }
 0x8d4   :  { %v6126_v49 = vor.u32 %v6833_v34, %v6125_v31  ;;  %v6801_v23 = vld [vmem:[#allocation25 + $0xac] sm:$0xf0] }
 0x8d5   :  { %4308 = vmatpush.bf16.msra.mxu3 %v6282_v37  ;;  %v5965_v34 = vld [vmem:[#allocation25 + $0x50] sm:$0xf] }
 0x8d6   :  { %4280 = vmatpush.bf16.msra.mxu1 %v6278_v35  ;;  %4268 = vmatpush.bf16.msra.mxu0 %v5958_v46  ;;  %v6829_v35 = vld [vmem:[#allocation25 + $0x194] sm:$0xf] }
 0x8d7   :  { %4296 = vmatpush.bf16.msra.mxu2 %v5962_v1  ;;  %v6901_v46 = vld [vmem:[#allocation25 + $0x3d4] sm:$0xf]  ;;  %v6130_v50 = vor.u32 %v6829_v35, %v6127_v36  ;;  %v6793_v35 = vld [vmem:[#allocation25 + $0x6c] sm:$0xf0] }
 0x8d8   :  { %v6789_v36 = vld [vmem:[#allocation25 + $0x54] sm:$0xf] }
 0x8d9   :  { %4309 = vmatpush.bf16.msra.mxu3 %v6250_v47  ;;  %v6095_v47 = vld [vmem:[#allocation25 + $0x170] sm:$0xf0] }
 0x8da   :  { %4281 = vmatpush.bf16.msra.mxu1 %v6246_v43  ;;  %4269 = vmatpush.bf16.msra.mxu0 %v5926_v53  ;;  %v6825_v43 = vld [vmem:[#allocation25 + $0x16c] sm:$0xf0]  ;;  %v6418_v53 = vor.u32 %v6901_v46, %v6415_v48  ;;  %v6098_v56 = vor.u32 %v6821_v44, %v6095_v47  ;;  %v6861_v48 = vld [vmem:[#allocation25 + $0x294] sm:$0xf] }
 0x8db   :  { %4297 = vmatpush.bf16.msra.mxu2 %v5930_v17  ;;  %v6865_v46 = vld [vmem:[#allocation25 + $0x2ac] sm:$0xf0]  ;;  %v6781_v44 = vld [vmem:[#allocation25 + $0x14] sm:$0xf] }
 0x8dc   :  { %v5935_v47 = vld [vmem:[#allocation25 + $0x30] sm:$0xf0] }
 0x8dd   :  { %4310 = vmatpush.bf16.msra.mxu3 %v6218_v57  ;;  %v6061_v57 = vld [vmem:[#allocation25 + $0x110] sm:$0xf] }
 0x8de   :  { %4282 = vmatpush.bf16.msra.mxu1 %v6214_v55  ;;  %v6094_v55 = vor.u32 %v6825_v43, %v6093_v39  ;;  %v5933_v39 = vld [vmem:[#allocation25 + $0x10] sm:$0xf] }
 0x8df   :  { %v6785_v43 = vld [vmem:[#allocation25 + $0x2c] sm:$0xf0] }
 0x8e1   :  { %4311 = vmatpush.bf16.msra.mxu3 %v6186_v0  ;;  %v6349_v0 = vld [vmem:[#allocation25 + $0x350] sm:$0xf] }
 0x8e2   :  { %4283 = vmatpush.bf16.msra.mxu1 %v6182_v61  ;;  %v6063_v61 = vld [vmem:[#allocation25 + $0x130] sm:$0xf0] }
 0x93a   :  { %v3356_v2 = vpop.f32.mrf.mxu0 }
 0x93b   :  { %v3357_v8 = vadd.f32 %v3356_v2, %v3183_v4  ;;  %v6889_v2 = vld [vmem:[#allocation25 + $0x36c] sm:$0xf0] }
 0x940   :  { %v3384_v6 = vpop.f32.mrf.mxu2 }
 0x941   :  { %v3370_v5 = vpop.f32.mrf.mxu1  ;;  %v3385_v18 = vadd.f32 %v3384_v6, %v3184_v12  ;;  %v6066_v6 = vor.u32 %v6813_v60, %v6063_v61  ;;  %v6170_v61 = vor.u32 %v6838_v58, %v6167_v54 }
 0x942   :  { %v3358_v9 = vpop.f32.mrf.mxu0  ;;  %v3371_v11 = vadd.f32 %v3370_v5, %v3357_v8  ;;  %v6062_v5 = vor.u32 %v6817_v59, %v6061_v57  ;;  %v6029_v8 = vld [vmem:[#allocation25 + $0xd0] sm:$0xf]  ;;  %v5934_v57 = vor.u32 %v6785_v43, %v5933_v39  ;;  %v5938_v59 = vor.u32 %v6781_v44, %v5935_v47  ;;  %v6806_v39 = vld [vmem:[#allocation25 + $0xdc] sm:$0xf] }
 0x943   :  { %v3359_v14 = vadd.f32 %v3358_v9, %v3183_v4  ;;  %v6351_v4 = vld [vmem:[#allocation25 + $0x370] sm:$0xf0]  ;;  %v6809_v9 = vld [vmem:[#allocation25 + $0xec] sm:$0xf0]  ;;  %v6039_v43 = vld [vmem:[#allocation25 + $0xf8] sm:$0xf0] }
 0x944   :  { %v3407_v16 = vmul.f32 0.01, %v3371_v11  ;;  %vm3403_vm6 = vcmp.ge.f32.partialorder %v3371_v11, 0.0  ;;  %v6030_v20 = vor.u32 %v6809_v9, %v6029_v8  ;;  %v6845_v8 = vld [vmem:[#allocation25 + $0x214] sm:$0xf]  ;;  %v6042_v54 = vor.u32 %v6806_v39, %v6039_v43 }
 0x945   :  { %v6191_v9 = vld [vmem:[#allocation25 + $0x230] sm:$0xf0] }
 0x946   :  { %v3411_v27 = vsel %vm3403_vm6, %v3371_v11, %v3407_v16  ;;  %v6805_v11 = vld [vmem:[#allocation25 + $0xd4] sm:$0xf]  ;;  %v6881_v16 = vld [vmem:[#allocation25 + $0x32c] sm:$0xf0] }
 0x947   :  { %v3398_v13 = vpop.f32.mrf.mxu3 }
 0x948   :  { %v3386_v22 = vpop.f32.mrf.mxu2  ;;  %v3399_v26 = vadd.f32 %v3398_v13, %v3385_v18  ;;  %v6350_v13 = vor.u32 %v6889_v2, %v6349_v0  ;;  %v6877_v18 = vld [vmem:[#allocation25 + $0x314] sm:$0xf]  ;;  %v6830_v0 = vld [vmem:[#allocation25 + $0x19c] sm:$0xf]  ;;  %v6222_v2 = vor.u32 %v6857_v41, %v6221_v10  ;;  %v6005_v10 = vld [vmem:[#allocation25 + $0x98] sm:$0xf] }
 0x949   :  { %v3372_v15 = vpop.f32.mrf.mxu1  ;;  %v3387_v29 = vadd.f32 %v3386_v22, %v3184_v12  ;;  %v6031_v12 = vld [vmem:[#allocation25 + $0xf0] sm:$0xf0]  ;;  %v5997_v22 = vld [vmem:[#allocation25 + $0x90] sm:$0xf]  ;;  %v6802_v41 = vld [vmem:[#allocation25 + $0xb4] sm:$0xf0] }
 0x94a   :  { %v3373_v19 = vadd.f32 %v3372_v15, %v3359_v14  ;;  %v3408_v37 = vmul.f32 0.01, %v3399_v26  ;;  %vm3404_vm8 = vcmp.ge.f32.partialorder %v3399_v26, 0.0  ;;  %v6354_v14 = vor.u32 %v6885_v3, %v6351_v4  ;;  %v6317_v15 = vld [vmem:[#allocation25 + $0x310] sm:$0xf] }
 0x94b   :  { %v6034_v21 = vor.u32 %v6805_v11, %v6031_v12  ;;  %v5998_v31 = vor.u32 %v6801_v23, %v5997_v22  ;;  %v6135_v4 = vld [vmem:[#allocation25 + $0x1b8] sm:$0xf0]  ;;  %v6421_v11 = vld [vmem:[#allocation25 + $0x3d8] sm:$0xf] }
 0x94c   :  { %vm3405_vm7 = vcmp.ge.f32.partialorder %v3373_v19, 0.0  ;;  %v3409_v38 = vmul.f32 0.01, %v3373_v19  ;;  %v3412_v51 = vsel %vm3404_vm8, %v3399_v26, %v3408_v37  ;;  %v5999_v26 = vld [vmem:[#allocation25 + $0xb0] sm:$0xf0] }
 0x94d   :  { %v5967_v37 = vld [vmem:[#allocation25 + $0x70] sm:$0xf0]  ;;  %v6906_v12 = vld [vmem:[#allocation25 + $0x3f4] sm:$0xf0]  ;;  %v6822_v22 = vld [vmem:[#allocation25 + $0x15c] sm:$0xf] }
 0x94e   :  { %v3413_v28 = vsel %vm3405_vm7, %v3373_v19, %v3409_v38  ;;  %v6319_v19 = vld [vmem:[#allocation25 + $0x330] sm:$0xf0]  ;;  %v6318_v38 = vor.u32 %v6881_v16, %v6317_v15  ;;  %v6138_v16 = vor.u32 %v6830_v0, %v6135_v4  ;;  %v6103_v23 = vld [vmem:[#allocation25 + $0x178] sm:$0xf0]  ;;  %v6006_v0 = vor.u32 %v6802_v41, %v6005_v10  ;;  %v6794_v4 = vld [vmem:[#allocation25 + $0x74] sm:$0xf0] }
 0x94f   :  { %v7831_v32 = vpack.c.bf16 %v3413_v28, %v3411_v27  ;;  %v3400_v33 = vpop.f32.mrf.mxu3  ;;  %v6285_v27 = vld [vmem:[#allocation25 + $0x2d0] sm:$0xf] }
 0x950   :  { %v3401_v40 = vadd.f32 %v3400_v33, %v3387_v29  ;;  %v6873_v28 = vld [vmem:[#allocation25 + $0x2ec] sm:$0xf0]  ;;  %v6869_v29 = vld [vmem:[#allocation25 + $0x2d4] sm:$0xf]  ;;  %v6002_v33 = vor.u32 %v6797_v24, %v5999_v26  ;;  %v6422_v24 = vor.u32 %v6906_v12, %v6421_v11  ;;  %v6261_v11 = vld [vmem:[#allocation25 + $0x298] sm:$0xf] }
 0x951   :  { %4214 = vmatmul.bf16.vlgmr.msrb.gmra.mxu0 %v7831_v32  ;;  %4242 = vmatmul.bf16.vlgmr.msrb.gmra.mxu2 %v7831_v32  ;;  %v6866_v12 = vld [vmem:[#allocation25 + $0x2b4] sm:$0xf0] }
 0x952   :  { %vm3406_vm9 = vcmp.ge.f32.partialorder %v3401_v40, 0.0  ;;  %v3410_v1 = vmul.f32 0.01, %v3401_v40  ;;  %4318 = vmatpush.bf16.msrb.mxu0 %v6158_v25  ;;  %4346 = vmatpush.bf16.msrb.mxu2 %v6162_v30  ;;  %v6322_v25 = vor.u32 %v6877_v18, %v6319_v19  ;;  %v6287_v30 = vld [vmem:[#allocation25 + $0x2f0] sm:$0xf0] }
 0x953   :  { %v6290_v42 = vor.u32 %v6869_v29, %v6287_v30  ;;  %v6101_v18 = vld [vmem:[#allocation25 + $0x158] sm:$0xf]  ;;  %v6106_v30 = vor.u32 %v6822_v22, %v6103_v23  ;;  %v6262_v22 = vor.u32 %v6866_v12, %v6261_v11 }
 0x954   :  { %v3414_v52 = vsel %vm3406_vm9, %v3401_v40, %v3410_v1  ;;  %v6286_v40 = vor.u32 %v6873_v28, %v6285_v27  ;;  %v6255_v1 = vld [vmem:[#allocation25 + $0x2b0] sm:$0xf0]  ;;  %v6894_v27 = vld [vmem:[#allocation25 + $0x39c] sm:$0xf] }
 0x955   :  { %v7835_v17 = vpack.c.bf16 %v3414_v52, %v3412_v51  ;;  %v6165_v51 = vld [vmem:[#allocation25 + $0x1d8] sm:$0xf]  ;;  %v6391_v28 = vld [vmem:[#allocation25 + $0x3b8] sm:$0xf0] }
 0x956   :  { %4319 = vmatpush.bf16.msrb.mxu0 %v6126_v49  ;;  %4347 = vmatpush.bf16.msrb.mxu2 %v6130_v50  ;;  %v5966_v49 = vor.u32 %v6793_v35, %v5965_v34  ;;  %v5970_v50 = vor.u32 %v6789_v36, %v5967_v37  ;;  %v6842_v52 = vld [vmem:[#allocation25 + $0x1f4] sm:$0xf0]  ;;  %v6814_v34 = vld [vmem:[#allocation25 + $0x11c] sm:$0xf]  ;;  %v6394_v37 = vor.u32 %v6894_v27, %v6391_v28 }
 0x957   :  { %4228 = vmatmul.bf16.vlgmr.msrb.gmra.mxu1 %v7835_v17  ;;  %4256 = vmatmul.bf16.vlgmr.msrb.gmra.mxu3 %v7835_v17  ;;  %v6166_v60 = vor.u32 %v6842_v52, %v6165_v51  ;;  %v6071_v35 = vld [vmem:[#allocation25 + $0x138] sm:$0xf0]  ;;  %v6325_v51 = vld [vmem:[#allocation25 + $0x318] sm:$0xf] }
 0x958   :  { %4332 = vmatpush.bf16.msrb.mxu1 %v6414_v7  ;;  %4360 = vmatpush.bf16.msrb.mxu3 %v6418_v53  ;;  %v6254_v7 = vor.u32 %v6865_v46, %v6253_v45  ;;  %v6258_v53 = vor.u32 %v6861_v48, %v6255_v1  ;;  %v6886_v45 = vld [vmem:[#allocation25 + $0x35c] sm:$0xf]  ;;  %v6074_v1 = vor.u32 %v6814_v34, %v6071_v35  ;;  %v6882_v52 = vld [vmem:[#allocation25 + $0x334] sm:$0xf0] }
 0x959   :  { %v6359_v46 = vld [vmem:[#allocation25 + $0x378] sm:$0xf0] }
 0x95a   :  { %4320 = vmatpush.bf16.msrb.mxu0 %v6094_v55  ;;  %4348 = vmatpush.bf16.msrb.mxu2 %v6098_v56  ;;  %v6853_v55 = vld [vmem:[#allocation25 + $0x254] sm:$0xf]  ;;  %v6362_v47 = vor.u32 %v6886_v45, %v6359_v46  ;;  %v6846_v34 = vld [vmem:[#allocation25 + $0x21c] sm:$0xf] }
 0x95b   :  { %v6223_v56 = vld [vmem:[#allocation25 + $0x270] sm:$0xf0]  ;;  %v6199_v35 = vld [vmem:[#allocation25 + $0x238] sm:$0xf0] }
 0x95c   :  { %4333 = vmatpush.bf16.msrb.mxu1 %v6382_v62  ;;  %4361 = vmatpush.bf16.msrb.mxu3 %v6386_v63  ;;  %v6133_v62 = vld [vmem:[#allocation25 + $0x198] sm:$0xf]  ;;  %v6226_v3 = vor.u32 %v6853_v55, %v6223_v56  ;;  %v6798_v55 = vld [vmem:[#allocation25 + $0x9c] sm:$0xf] }
 0x95d   :  { %v6834_v63 = vld [vmem:[#allocation25 + $0x1b4] sm:$0xf0]  ;;  %v6007_v56 = vld [vmem:[#allocation25 + $0xb8] sm:$0xf0] }
 0x95e   :  { %4321 = vmatpush.bf16.msrb.mxu0 %v6062_v5  ;;  %4349 = vmatpush.bf16.msrb.mxu2 %v6066_v6  ;;  %v6189_v5 = vld [vmem:[#allocation25 + $0x210] sm:$0xf]  ;;  %v6134_v15 = vor.u32 %v6834_v63, %v6133_v62  ;;  %v6870_v62 = vld [vmem:[#allocation25 + $0x2dc] sm:$0xf] }
 0x95f   :  { %v6849_v6 = vld [vmem:[#allocation25 + $0x22c] sm:$0xf0]  ;;  %v6295_v63 = vld [vmem:[#allocation25 + $0x2f8] sm:$0xf0] }
 0x960   :  { %4334 = vmatpush.bf16.msrb.mxu1 %v6350_v13  ;;  %4362 = vmatpush.bf16.msrb.mxu3 %v6354_v14  ;;  %v6902_v13 = vld [vmem:[#allocation25 + $0x3dc] sm:$0xf]  ;;  %v6190_v19 = vor.u32 %v6849_v6, %v6189_v5 }
 0x961   :  { %4270 = vmatmul.bf16.vlgmr.msra.gmra.mxu0 %v7831_v32  ;;  %4298 = vmatmul.bf16.vlgmr.msra.gmra.mxu2 %v7831_v32  ;;  %v6423_v14 = vld [vmem:[#allocation25 + $0x3f8] sm:$0xf0] }
 0x962   :  { %4322 = vmatpush.bf16.msrb.mxu0 %v6030_v20  ;;  %4350 = vmatpush.bf16.msrb.mxu2 %v6034_v21  ;;  %v6194_v20 = vor.u32 %v6845_v8, %v6191_v9  ;;  %v6826_v21 = vld [vmem:[#allocation25 + $0x174] sm:$0xf0]  ;;  %v6426_v26 = vor.u32 %v6902_v13, %v6423_v14  ;;  %v6790_v5 = vld [vmem:[#allocation25 + $0x5c] sm:$0xf]  ;;  %v6298_v9 = vor.u32 %v6870_v62, %v6295_v63 }
 0x963   :  { %v6102_v29 = vor.u32 %v6826_v21, %v6101_v18  ;;  %v5975_v6 = vld [vmem:[#allocation25 + $0x78] sm:$0xf0]  ;;  %v5941_v18 = vld [vmem:[#allocation25 + $0x18] sm:$0xf] }
 0x964   :  { %4335 = vmatpush.bf16.msrb.mxu1 %v6318_v38  ;;  %4363 = vmatpush.bf16.msrb.mxu3 %v6322_v25  ;;  %v6389_v38 = vld [vmem:[#allocation25 + $0x398] sm:$0xf]  ;;  %v6862_v13 = vld [vmem:[#allocation25 + $0x29c] sm:$0xf] }
 0x965   :  { %v6898_v25 = vld [vmem:[#allocation25 + $0x3b4] sm:$0xf0]  ;;  %v6263_v14 = vld [vmem:[#allocation25 + $0x2b8] sm:$0xf0] }
 0x966   :  { %4323 = vmatpush.bf16.msrb.mxu0 %v5998_v31  ;;  %4351 = vmatpush.bf16.msrb.mxu2 %v6002_v33  ;;  %v6069_v31 = vld [vmem:[#allocation25 + $0x118] sm:$0xf]  ;;  %v6390_v36 = vor.u32 %v6898_v25, %v6389_v38  ;;  %v5943_v21 = vld [vmem:[#allocation25 + $0x38] sm:$0xf0]  ;;  %v6266_v23 = vor.u32 %v6862_v13, %v6263_v14 }
 0x967   :  { %4284 = vmatmul.bf16.vlgmr.msra.gmra.mxu1 %v7835_v17  ;;  %4312 = vmatmul.bf16.vlgmr.msra.gmra.mxu3 %v7835_v17  ;;  %v6818_v33 = vld [vmem:[#allocation25 + $0x134] sm:$0xf0]  ;;  %v6854_v38 = vld [vmem:[#allocation25 + $0x25c] sm:$0xf] }
 0x968   :  { %4336 = vmatpush.bf16.msrb.mxu1 %v6286_v40  ;;  %4364 = vmatpush.bf16.msrb.mxu3 %v6290_v42  ;;  %v6357_v40 = vld [vmem:[#allocation25 + $0x358] sm:$0xf]  ;;  %v6070_v48 = vor.u32 %v6818_v33, %v6069_v31  ;;  %v6231_v25 = vld [vmem:[#allocation25 + $0x278] sm:$0xf0] }
 0x969   :  { %v6890_v42 = vld [vmem:[#allocation25 + $0x374] sm:$0xf0] }
 0x96a   :  { %4324 = vmatpush.bf16.msrb.mxu0 %v5966_v49  ;;  %4352 = vmatpush.bf16.msrb.mxu2 %v5970_v50  ;;  %v6037_v49 = vld [vmem:[#allocation25 + $0xd8] sm:$0xf]  ;;  %v6358_v44 = vor.u32 %v6890_v42, %v6357_v40  ;;  %v3546_v40 = vld [vmem:[#allocation2 + $0x47] ss:$8 sm:$0xf] }
 0x96b   :  { %v6810_v50 = vld [vmem:[#allocation25 + $0xf4] sm:$0xf0]  ;;  %v3547_v42 = vld [vmem:[#allocation2 + $0x47] ss:$8 sm:$0xf0] }
 0x96c   :  { %4337 = vmatpush.bf16.msrb.mxu1 %v6254_v7  ;;  %4365 = vmatpush.bf16.msrb.mxu3 %v6258_v53  ;;  %v6878_v7 = vld [vmem:[#allocation25 + $0x31c] sm:$0xf]  ;;  %v6038_v58 = vor.u32 %v6810_v50, %v6037_v49  ;;  %v6197_v31 = vld [vmem:[#allocation25 + $0x218] sm:$0xf]  ;;  %v7851_v45 = vor.u32 %v3547_v42, %v3546_v40 }
 0x96d   :  { %v6327_v53 = vld [vmem:[#allocation25 + $0x338] sm:$0xf0]  ;;  %v6850_v33 = vld [vmem:[#allocation25 + $0x234] sm:$0xf0] }
 0x96e   :  { %4325 = vmatpush.bf16.msrb.mxu0 %v5934_v57  ;;  %4353 = vmatpush.bf16.msrb.mxu2 %v5938_v59  ;;  %v6326_v57 = vor.u32 %v6882_v52, %v6325_v51  ;;  %v6330_v59 = vor.u32 %v6878_v7, %v6327_v53  ;;  %v3551_v43 = vperm.slane %v7851_v45, 1 }
 0x970   :  { %4338 = vmatpush.bf16.msrb.mxu1 %v6222_v2  ;;  %4366 = vmatpush.bf16.msrb.mxu3 %v6226_v3  ;;  %v6010_v2 = vor.u32 %v6798_v55, %v6007_v56  ;;  %v5973_v3 = vld [vmem:[#allocation25 + $0x58] sm:$0xf] }
 0x971   :  { %4326 = vmatmul.bf16.vlgmr.msrb.gmra.mxu0 %v7831_v32  ;;  %4354 = vmatmul.bf16.vlgmr.msrb.gmra.mxu2 %v7831_v32 }
 0x972   :  { %4374 = vmatpush.bf16.msra.mxu0 %v6166_v60  ;;  %4402 = vmatpush.bf16.msra.mxu2 %v6170_v61  ;;  %v6293_v60 = vld [vmem:[#allocation25 + $0x2d8] sm:$0xf] }
 0x973   :  { %v6874_v61 = vld [vmem:[#allocation25 + $0x2f4] sm:$0xf0] }
 0x974   :  { %4339 = vmatpush.bf16.msrb.mxu1 %v6190_v19  ;;  %4367 = vmatpush.bf16.msrb.mxu3 %v6194_v20  ;;  %v6294_v8 = vor.u32 %v6874_v61, %v6293_v60  ;;  %v6786_v19 = vld [vmem:[#allocation25 + $0x34] sm:$0xf0]  ;;  %v6782_v20 = vld [vmem:[#allocation25 + $0x1c] sm:$0xf] }
 0x975   :  { %v5942_v27 = vor.u32 %v6786_v19, %v5941_v18  ;;  %v5946_v28 = vor.u32 %v6782_v20, %v5943_v21 }
 0x976   :  { %4375 = vmatpush.bf16.msra.mxu0 %v6134_v15  ;;  %4403 = vmatpush.bf16.msra.mxu2 %v6138_v16  ;;  %v5974_v15 = vor.u32 %v6794_v4, %v5973_v3  ;;  %v5978_v16 = vor.u32 %v6790_v5, %v5975_v6  ;;  %v3553_v5 = vperm.slane %v7851_v45, 3 }
 0x977   :  { %4340 = vmatmul.bf16.vlgmr.msrb.gmra.mxu1 %v7835_v17  ;;  %4368 = vmatmul.bf16.vlgmr.msrb.gmra.mxu3 %v7835_v17 }
 0x978   :  { %4388 = vmatpush.bf16.msra.mxu1 %v6422_v24  ;;  %4416 = vmatpush.bf16.msra.mxu3 %v6426_v26  ;;  %v6229_v24 = vld [vmem:[#allocation25 + $0x258] sm:$0xf] }
 0x979   :  { %v6858_v26 = vld [vmem:[#allocation25 + $0x274] sm:$0xf0] }
 0x97a   :  { %4376 = vmatpush.bf16.msra.mxu0 %v6102_v29  ;;  %4404 = vmatpush.bf16.msra.mxu2 %v6106_v30  ;;  %v6230_v29 = vor.u32 %v6858_v26, %v6229_v24  ;;  %v6234_v30 = vor.u32 %v6854_v38, %v6231_v25  ;;  %v3554_v24 = vperm.slane %v7851_v45, 4 }
 0x97c   :  { %4389 = vmatpush.bf16.msra.mxu1 %v6390_v36  ;;  %4417 = vmatpush.bf16.msra.mxu3 %v6394_v37  ;;  %v6198_v36 = vor.u32 %v6850_v33, %v6197_v31  ;;  %v6202_v37 = vor.u32 %v6846_v34, %v6199_v35  ;;  %v3555_v34 = vperm.slane %v7851_v45, 5 }
 0x97e   :  { %4377 = vmatpush.bf16.msra.mxu0 %v6070_v48  ;;  %4405 = vmatpush.bf16.msra.mxu2 %v6074_v1  ;;  %v3550_v48 = vperm.slane %v7851_v45, 0 }
 0x980   :  { %4390 = vmatpush.bf16.msra.mxu1 %v6358_v44  ;;  %4418 = vmatpush.bf16.msra.mxu3 %v6362_v47 }
 0x982   :  { %4378 = vmatpush.bf16.msra.mxu0 %v6038_v58  ;;  %4406 = vmatpush.bf16.msra.mxu2 %v6042_v54 }
 0x984   :  { %4391 = vmatpush.bf16.msra.mxu1 %v6326_v57  ;;  %4419 = vmatpush.bf16.msra.mxu3 %v6330_v59  ;;  %v3552_v57 = vperm.slane %v7851_v45, 2 }
 0x986   :  { %4379 = vmatpush.bf16.msra.mxu0 %v6006_v0  ;;  %4407 = vmatpush.bf16.msra.mxu2 %v6010_v2 }
 0x988   :  { %4392 = vmatpush.bf16.msra.mxu1 %v6294_v8  ;;  %4420 = vmatpush.bf16.msra.mxu3 %v6298_v9 }
 0x98a   :  { %4380 = vmatpush.bf16.msra.mxu0 %v5974_v15  ;;  %4408 = vmatpush.bf16.msra.mxu2 %v5978_v16 }
 0x98c   :  { %4393 = vmatpush.bf16.msra.mxu1 %v6262_v22  ;;  %4421 = vmatpush.bf16.msra.mxu3 %v6266_v23 }
 0x98e   :  { %4381 = vmatpush.bf16.msra.mxu0 %v5942_v27  ;;  %4409 = vmatpush.bf16.msra.mxu2 %v5946_v28 }
 0x990   :  { %4394 = vmatpush.bf16.msra.mxu1 %v6230_v29  ;;  %4422 = vmatpush.bf16.msra.mxu3 %v6234_v30 }
 0x991   :  { %4382 = vmatmul.bf16.vlgmr.msra.gmra.mxu0 %v7831_v32  ;;  %4410 = vmatmul.bf16.vlgmr.msra.gmra.mxu2 %v7831_v32 }
 0x994   :  { %4395 = vmatpush.bf16.msra.mxu1 %v6198_v36  ;;  %4423 = vmatpush.bf16.msra.mxu3 %v6202_v37 }
 0x997   :  { %4396 = vmatmul.bf16.vlgmr.msra.gmra.mxu1 %v7835_v17  ;;  %4424 = vmatmul.bf16.vlgmr.msra.gmra.mxu3 %v7835_v17 }
 0x9ce   :  { %v4215_v46 = vpop.f32.mrf.mxu0 }
 0x9cf   :  { %v4216_v1 = vadd.f32 %v4215_v46, %v3550_v48 }
 0x9d4   :  { %v4229_v49 = vpop.f32.mrf.mxu1  ;;  %v4243_v50 = vpop.f32.mrf.mxu2 }
 0x9d5   :  { %v4230_v39 = vadd.f32 %v4229_v49, %v4216_v1  ;;  %v4244_v51 = vadd.f32 %v4243_v50, %v3551_v43 }
 0x9d6   :  { %v4217_v32 = vpop.f32.mrf.mxu0 }
 0x9d7   :  { %vm4430_vm10 = vcmp.ge.f32.partialorder %v4230_v39, 0.0  ;;  %v4446_v44 = vmul.f32 0.01, %v4230_v39  ;;  %v4218_v52 = vadd.f32 %v4217_v32, %v3550_v48 }
 0x9d9   :  { %v4462_v47 = vsel %vm4430_vm10, %v4230_v39, %v4446_v44 }
 0x9da   :  { %4478 = vst [vmem:[%s7927_s18] sm:$0xff] %v4462_v47  ;;  %v4257_v17 = vpop.f32.mrf.mxu3 }
 0x9db   :  { %v4258_v7 = vadd.f32 %v4257_v17, %v4244_v51 }
 0x9dc   :  { %v4231_v53 = vpop.f32.mrf.mxu1  ;;  %v4245_v58 = vpop.f32.mrf.mxu2 }
 0x9dd   :  { %vm4431_vm11 = vcmp.ge.f32.partialorder %v4258_v7, 0.0  ;;  %v4447_v54 = vmul.f32 0.01, %v4258_v7  ;;  %v4232_v10 = vadd.f32 %v4231_v53, %v4218_v52  ;;  %v4246_v60 = vadd.f32 %v4245_v58, %v3551_v43 }
 0x9de   :  { %v4271_v41 = vpop.f32.mrf.mxu0 }
 0x9df   :  { %v4463_v55 = vsel %vm4431_vm11, %v4258_v7, %v4447_v54  ;;  %vm4438_vm12 = vcmp.ge.f32.partialorder %v4232_v10, 0.0  ;;  %v4454_v56 = vmul.f32 0.01, %v4232_v10  ;;  %v4272_v62 = vadd.f32 %v4271_v41, %v3552_v57 }
 0x9e0   :  { %4479 = vst [vmem:[%s7927_s18 + $0x8] sm:$0xff] %v4463_v55  ;;  %v3556_v54 = vperm.slane %v7851_v45, 6 }
 0x9e1   :  { %v4470_v59 = vsel %vm4438_vm12, %v4232_v10, %v4454_v56 }
 0x9e2   :  { %4486 = vst [vmem:[%s7927_s18 + $0x40] sm:$0xff] %v4470_v59  ;;  %v4259_v61 = vpop.f32.mrf.mxu3 }
 0x9e3   :  { %v4260_v63 = vadd.f32 %v4259_v61, %v4246_v60 }
 0x9e4   :  { %v4285_v0 = vpop.f32.mrf.mxu1  ;;  %v4299_v2 = vpop.f32.mrf.mxu2 }
 0x9e5   :  { %vm4439_vm13 = vcmp.ge.f32.partialorder %v4260_v63, 0.0  ;;  %v4455_v3 = vmul.f32 0.01, %v4260_v63  ;;  %v4286_v4 = vadd.f32 %v4285_v0, %v4272_v62  ;;  %v4300_v12 = vadd.f32 %v4299_v2, %v3553_v5 }
 0x9e6   :  { %v4273_v6 = vpop.f32.mrf.mxu0 }
 0x9e7   :  { %v4471_v8 = vsel %vm4439_vm13, %v4260_v63, %v4455_v3  ;;  %vm4432_vm14 = vcmp.ge.f32.partialorder %v4286_v4, 0.0  ;;  %v4448_v9 = vmul.f32 0.01, %v4286_v4  ;;  %v4274_v14 = vadd.f32 %v4273_v6, %v3552_v57 }
 0x9e8   :  { %4487 = vst [vmem:[%s7927_s18 + $0x48] sm:$0xff] %v4471_v8  ;;  %v3557_v57 = vperm.slane %v7851_v45, 7 }
 0x9e9   :  { %v4464_v11 = vsel %vm4432_vm14, %v4286_v4, %v4448_v9 }
 0x9ea   :  { %4480 = vst [vmem:[%s7927_s18 + $0x10] sm:$0xff] %v4464_v11  ;;  %v4313_v13 = vpop.f32.mrf.mxu3 }
 0x9eb   :  { %v4314_v15 = vadd.f32 %v4313_v13, %v4300_v12 }
 0x9ec   :  { %v4287_v16 = vpop.f32.mrf.mxu1  ;;  %v4301_v18 = vpop.f32.mrf.mxu2 }
 0x9ed   :  { %vm4433_vm15 = vcmp.ge.f32.partialorder %v4314_v15, 0.0  ;;  %v4449_v19 = vmul.f32 0.01, %v4314_v15  ;;  %v4288_v20 = vadd.f32 %v4287_v16, %v4274_v14  ;;  %v4302_v38 = vadd.f32 %v4301_v18, %v3553_v5 }
 0x9ee   :  { %v4327_v23 = vpop.f32.mrf.mxu0 }
 0x9ef   :  { %v4465_v21 = vsel %vm4433_vm15, %v4314_v15, %v4449_v19  ;;  %vm4440_vm0 = vcmp.ge.f32.partialorder %v4288_v20, 0.0  ;;  %v4456_v22 = vmul.f32 0.01, %v4288_v20  ;;  %v4328_v28 = vadd.f32 %v4327_v23, %v3554_v24 }
 0x9f0   :  { %4481 = vst [vmem:[%s7927_s18 + $0x18] sm:$0xff] %v4465_v21 }
 0x9f1   :  { %v4472_v26 = vsel %vm4440_vm0, %v4288_v20, %v4456_v22 }
 0x9f2   :  { %4488 = vst [vmem:[%s7927_s18 + $0x50] sm:$0xff] %v4472_v26  ;;  %v4315_v25 = vpop.f32.mrf.mxu3 }
 0x9f3   :  { %v4316_v27 = vadd.f32 %v4315_v25, %v4302_v38 }
 0x9f4   :  { %v4341_v30 = vpop.f32.mrf.mxu1  ;;  %v4355_v31 = vpop.f32.mrf.mxu2 }
 0x9f5   :  { %vm4441_vm1 = vcmp.ge.f32.partialorder %v4316_v27, 0.0  ;;  %v4457_v29 = vmul.f32 0.01, %v4316_v27  ;;  %v4342_v33 = vadd.f32 %v4341_v30, %v4328_v28  ;;  %v4356_v42 = vadd.f32 %v4355_v31, %v3555_v34 }
 0x9f6   :  { %v4329_v37 = vpop.f32.mrf.mxu0 }
 0x9f7   :  { %v4473_v35 = vsel %vm4441_vm1, %v4316_v27, %v4457_v29  ;;  %vm4434_vm2 = vcmp.ge.f32.partialorder %v4342_v33, 0.0  ;;  %v4450_v36 = vmul.f32 0.01, %v4342_v33  ;;  %v4330_v48 = vadd.f32 %v4329_v37, %v3554_v24 }
 0x9f8   :  { %4489 = vst [vmem:[%s7927_s18 + $0x58] sm:$0xff] %v4473_v35 }
 0x9f9   :  { %v4466_v40 = vsel %vm4434_vm2, %v4342_v33, %v4450_v36 }
 0x9fa   :  { %4482 = vst [vmem:[%s7927_s18 + $0x20] sm:$0xff] %v4466_v40  ;;  %v4369_v46 = vpop.f32.mrf.mxu3 }
 0x9fb   :  { %v4370_v1 = vadd.f32 %v4369_v46, %v4356_v42 }
 0x9fc   :  { %v4343_v49 = vpop.f32.mrf.mxu1  ;;  %v4357_v43 = vpop.f32.mrf.mxu2 }
 0x9fd   :  { %vm4435_vm3 = vcmp.ge.f32.partialorder %v4370_v1, 0.0  ;;  %v4451_v50 = vmul.f32 0.01, %v4370_v1  ;;  %v4344_v39 = vadd.f32 %v4343_v49, %v4330_v48  ;;  %v4358_v51 = vadd.f32 %v4357_v43, %v3555_v34 }
 0x9ff   :  { %v4467_v32 = vsel %vm4435_vm3, %v4370_v1, %v4451_v50  ;;  %vm4442_vm4 = vcmp.ge.f32.partialorder %v4344_v39, 0.0  ;;  %v4458_v44 = vmul.f32 0.01, %v4344_v39 }
 0xa00   :  { %4483 = vst [vmem:[%s7927_s18 + $0x28] sm:$0xff] %v4467_v32 }
 0xa01   :  { %v4474_v47 = vsel %vm4442_vm4, %v4344_v39, %v4458_v44 }
 0xa02   :  { %4490 = vst [vmem:[%s7927_s18 + $0x60] sm:$0xff] %v4474_v47  ;;  %v4371_v17 = vpop.f32.mrf.mxu3 }
 0xa03   :  { %v4372_v52 = vadd.f32 %v4371_v17, %v4358_v51 }
 0xa05   :  { %vm4443_vm5 = vcmp.ge.f32.partialorder %v4372_v52, 0.0  ;;  %v4459_v7 = vmul.f32 0.01, %v4372_v52 }
 0xa07   :  { %v4475_v53 = vsel %vm4443_vm5, %v4372_v52, %v4459_v7 }
 0xa08   :  { %4491 = vst [vmem:[%s7927_s18 + $0x68] sm:$0xff] %v4475_v53 }
 0xa0e   :  { %v4383_v58 = vpop.f32.mrf.mxu0 }
 0xa0f   :  { %v4384_v10 = vadd.f32 %v4383_v58, %v3556_v54 }
 0xa14   :  { %v4397_v41 = vpop.f32.mrf.mxu1  ;;  %v4411_v55 = vpop.f32.mrf.mxu2 }
 0xa15   :  { %v4398_v56 = vadd.f32 %v4397_v41, %v4384_v10  ;;  %v4412_v62 = vadd.f32 %v4411_v55, %v3557_v57 }
 0xa16   :  { %v4385_v60 = vpop.f32.mrf.mxu0 }
 0xa17   :  { %vm4436_vm6 = vcmp.ge.f32.partialorder %v4398_v56, 0.0  ;;  %v4452_v59 = vmul.f32 0.01, %v4398_v56  ;;  %v4386_v0 = vadd.f32 %v4385_v60, %v3556_v54 }
 0xa19   :  { %v4468_v61 = vsel %vm4436_vm6, %v4398_v56, %v4452_v59 }
 0xa1a   :  { %4484 = vst [vmem:[%s7927_s18 + $0x30] sm:$0xff] %v4468_v61  ;;  %v4425_v63 = vpop.f32.mrf.mxu3 }
 0xa1b   :  { %v4426_v2 = vadd.f32 %v4425_v63, %v4412_v62 }
 0xa1c   :  { %v4399_v3 = vpop.f32.mrf.mxu1  ;;  %v4413_v6 = vpop.f32.mrf.mxu2 }
 0xa1d   :  { %vm4437_vm7 = vcmp.ge.f32.partialorder %v4426_v2, 0.0  ;;  %v4453_v4 = vmul.f32 0.01, %v4426_v2  ;;  %v4400_v5 = vadd.f32 %v4399_v3, %v4386_v0  ;;  %v4414_v11 = vadd.f32 %v4413_v6, %v3557_v57 }
 0xa1f   :  { %v4469_v8 = vsel %vm4437_vm7, %v4426_v2, %v4453_v4  ;;  %vm4444_vm8 = vcmp.ge.f32.partialorder %v4400_v5, 0.0  ;;  %v4460_v45 = vmul.f32 0.01, %v4400_v5 }
 0xa20   :  { %4485 = vst [vmem:[%s7927_s18 + $0x38] sm:$0xff] %v4469_v8 }
 0xa21   :  { %v4476_v9 = vsel %vm4444_vm8, %v4400_v5, %v4460_v45 }
 0xa22   :  { %4492 = vst [vmem:[%s7927_s18 + $0x70] sm:$0xff] %v4476_v9  ;;  %v4427_v12 = vpop.f32.mrf.mxu3 }
 0xa23   :  { %v4428_v13 = vadd.f32 %v4427_v12, %v4414_v11 }
 0xa25   :  { %vm4445_vm9 = vcmp.ge.f32.partialorder %v4428_v13, 0.0  ;;  %v4461_v14 = vmul.f32 0.01, %v4428_v13 }
 0xa27   :  { %v4477_v15 = vsel %vm4445_vm9, %v4428_v13, %v4461_v14 }
 0xa28   :  { %4493 = vst [vmem:[%s7927_s18 + $0x78] sm:$0xff] %v4477_v15 }
 0xa29   :  { %4498 = vsyncpa [#allocation3], 1 }
 0xa2a   :  { %4499 = vsyncpa [#allocation5], 1 }
 0xa2b   :  { %4500 = vsyncpa [#allocation8], 1 }
 0xa2c   :  { %4501 = vsyncpa [#allocation11], 1 }
 0xa2d   :  { %4502 = vsyncpa [#allocation14], 1 }
 0xa2e   :  { %4503 = vsyncpa [#allocation17], 1 }
 0xa2f   :  { %4504 = vsyncpa [#allocation20], 1 }
 0xa30   :  { %4505 = vsyncpa [#allocation23], 1 }
 0xa31   :  { %4506 = vsyncpa [#allocation26], 1 }

</bundles_post_ra>
